<compile_context>
chip_gen: v5e
topology: v5e:2x2
jax: 0.10.0
libtpu: 0.0.40
codegen_flags: <defaults>
</compile_context>

<pallas_src>
import functools

import jax
import jax.numpy as jnp
from jax.experimental import pallas as pl
from jax.experimental.pallas import tpu as pltpu

STEP = 2          # module's `step`
INPUT_SIZE = 1 * STEP
HIDDEN_SIZE = 48
OUTPUT_SIZE = 1   # head below is specialised to output_size == 1

_HP = 128                     # hidden size padded to one 128-lane tile per gate
_G = 4 * _HP                  # packed gate width: [ i | f | g | o ], 128-aligned
_MAX_T_BLK = 256              # timesteps fused per grid step (VMEM-bounded for v5e/v7x)
_HIGHEST = jax.lax.Precision.HIGHEST

# Perf review: casting the recurrent matmul operands to bf16 cuts the per-step
# MXU pass count ~3x on the strictly serial critical path.  Kept at f32 by
# default (review: "verify against the 1e-4 tolerance before committing");
# flip to jnp.bfloat16 after validating accuracy for your sequence lengths.
RECURRENT_MATMUL_DTYPE = jnp.float32


def _lstm_kernel(x_ref, wih_ref, bias_ref, whh_ref, wout_ref, y_ref,
                 gi_scr, h_hist, h_scr, c_scr, *, t_blk, seq_len, unroll):
    """One grid step = one block of `t_blk` LSTM timesteps + fused Linear head.

    x_ref    : (t_blk, b_pad, I)    raw inputs for this time block
    wih_ref  : (I, 4*HP)            W_ih^T, gate-tile packed (padded cols zero)
    bias_ref : (1, 4*HP)            b_ih + b_hh, gate-tile packed
    whh_ref  : (HP, 4*HP)           W_hh^T, gate-tile packed (rows >= H zero)
    wout_ref : (1, HP)              Linear-head weights (lanes >= H zero)
    y_ref    : (t_blk, b_pad, 1)    per-timestep head output
    gi_scr   : (t_blk, b_pad, 4*HP) input-projection scratch
    h_hist   : (t_blk, b_pad, HP)   per-step hidden states (for the fused head)
    h_scr/c_scr : (b_pad, HP)       recurrent state, persists across blocks
    """
    tb = pl.program_id(0)
    input_size = x_ref.shape[-1]

    @pl.when(tb == 0)
    def _():
        h_scr[...] = jnp.zeros_like(h_scr)
        c_scr[...] = jnp.zeros_like(c_scr)

    # ---- Fused input projection (off the serial path).  I is tiny (2), so
    # this is `I` broadcast FMAs on the VPU rather than a K=2 MXU pass.
    # Accumulate directly into the scratch to bound live VMEM temporaries.
    x_blk = x_ref[...]                                     # (t_blk, b_pad, I)
    gi_scr[...] = bias_ref[...] + x_blk[:, :, 0:1] * wih_ref[0:1, :]
    for i in range(1, input_size):
        gi_scr[...] += x_blk[:, :, i:i + 1] * wih_ref[i:i + 1, :]

    whh = whh_ref[...]        # hoisted; dtype may be bf16 (RECURRENT_MATMUL_DTYPE)

    def step(t, carry):
        h, c = carry
        # (b_pad, 128) @ (128, 512) on the MXU; gate pre-activations land
        # 128-lane aligned so the slices below are tile-aligned.
        gates = gi_scr[t] + jnp.dot(h.astype(whh.dtype), whh,
                                    preferred_element_type=jnp.float32)
        # PyTorch LSTM gate order: i, f, g, o.  Padded lanes (>= H) stay
        # exactly zero: packed weight/bias columns >= H are zero, so their
        # pre-activations are 0, c_pad stays 0 and h_pad = 0.5*tanh(0) = 0.
        i_g = jax.nn.sigmoid(gates[:, 0 * _HP:1 * _HP])
        f_g = jax.nn.sigmoid(gates[:, 1 * _HP:2 * _HP])
        g_g = jnp.tanh(gates[:, 2 * _HP:3 * _HP])
        o_g = jax.nn.sigmoid(gates[:, 3 * _HP:4 * _HP])
        c_new = f_g * c + i_g * g_g
        h_new = o_g * jnp.tanh(c_new)
        h_hist[t] = h_new                                  # VMEM only, no HBM
        return h_new, c_new

    carry0 = (h_scr[...], c_scr[...])
    if seq_len % t_blk == 0:
        # All blocks full: static trip count -> unrollable for LLO visibility.
        h_fin, c_fin = jax.lax.fori_loop(0, t_blk, step, carry0, unroll=unroll)
    else:
        # Partial last block: run only the valid steps (the serial recurrence
        # is the whole kernel, so padded tail steps would be pure waste).
        n_valid = jnp.minimum(t_blk, seq_len - tb * t_blk)
        h_fin, c_fin = jax.lax.fori_loop(0, n_valid, step, carry0)

    h_scr[...] = h_fin
    c_scr[...] = c_fin

    # ---- Fused Linear head (output_size == 1): one VPU multiply + XLU lane
    # reduce per block.  Rows past the valid length (partial last block) hold
    # stale data; they are sliced off in the wrapper and never feed back.
    y_ref[...] = jnp.sum(h_hist[...] * wout_ref[...], axis=-1, keepdims=True)


def _pack_gate_cols(w, hp):
    """(K, 4H) -> (K, 4*hp): gate chunk k (width H) placed at column k*hp."""
    k_dim, four_h = w.shape
    h = four_h // 4
    cols = [jnp.pad(w[:, k * h:(k + 1) * h], ((0, 0), (0, hp - h)))
            for k in range(4)]
    return jnp.concatenate(cols, axis=1)


@jax.jit
def rnn_forward(x, w_ih, w_hh, b_ih, b_hh, w_out, b_out):
    """x: (B, T, INPUT_SIZE) float32 -> (B, T, OUTPUT_SIZE) float32."""
    B, T, I = x.shape
    H = HIDDEN_SIZE

    b_pad = max(8, -(-B // 8) * 8)                 # batch padded to sublane multiple
    t_blk = T if T <= _MAX_T_BLK else _MAX_T_BLK   # timesteps fused per grid step
    n_blk = -(-T // t_blk)
    t_pad = n_blk * t_blk
    unroll = True if t_blk <= 8 else 8

    # Gate-tile-packed weights: each of the 4 gates owns one 128-lane tile so
    # every gate slice in the kernel is tile-aligned; padded rows/cols are
    # exactly zero (keeps padded hidden lanes zero through the recurrence).
    wih_p = _pack_gate_cols(w_ih.T.astype(jnp.float32), _HP)                # (I, 4*HP)
    whh_p = jnp.pad(_pack_gate_cols(w_hh.T.astype(jnp.float32), _HP),
                    ((0, _HP - H), (0, 0))).astype(RECURRENT_MATMUL_DTYPE)  # (HP, 4*HP)
    bias_p = _pack_gate_cols((b_ih + b_hh).reshape(1, 4 * H)
                             .astype(jnp.float32), _HP)                     # (1, 4*HP)
    wout_p = jnp.pad(w_out.astype(jnp.float32), ((0, 0), (0, _HP - H)))     # (1, HP)

    # Raw inputs only (time-major, padded with jnp.pad); the 512-lane gate
    # projection is computed inside the kernel -> no padded activation tensor
    # ever hits HBM.
    x_t = jnp.pad(jnp.transpose(x.astype(jnp.float32), (1, 0, 2)),
                  ((0, t_pad - T), (0, b_pad - B), (0, 0)))                 # (t_pad, b_pad, I)

    kernel = functools.partial(_lstm_kernel, t_blk=t_blk, seq_len=T, unroll=unroll)

    y_tb = pl.pallas_call(
        kernel,
        out_shape=jax.ShapeDtypeStruct((t_pad, b_pad, 1), jnp.float32),
        grid_spec=pltpu.PrefetchScalarGridSpec(
            num_scalar_prefetch=0,
            grid=(n_blk,),
            in_specs=[
                pl.BlockSpec((t_blk, b_pad, I), lambda tb: (tb, 0, 0)),   # x block
                pl.BlockSpec((I, _G), lambda tb: (0, 0)),                 # W_ih^T packed
                pl.BlockSpec((1, _G), lambda tb: (0, 0)),                 # bias packed
                pl.BlockSpec((_HP, _G), lambda tb: (0, 0)),               # W_hh^T packed
                pl.BlockSpec((1, _HP), lambda tb: (0, 0)),                # head weights
            ],
            out_specs=pl.BlockSpec((t_blk, b_pad, 1), lambda tb: (tb, 0, 0)),
            scratch_shapes=[
                pltpu.VMEM((t_blk, b_pad, _G), jnp.float32),    # gi (input projection)
                pltpu.VMEM((t_blk, b_pad, _HP), jnp.float32),   # h history for fused head
                pltpu.VMEM((b_pad, _HP), jnp.float32),          # h carry (across blocks)
                pltpu.VMEM((b_pad, _HP), jnp.float32),          # c carry (across blocks)
            ],
        ),
        # Single serial (time) axis.  ~15 MiB peak VMEM at t_blk=256, b_pad=8;
        # 32 MiB scoped limit is safe on v5e/v6e (128 MiB) and v7x (64 MiB).
        compiler_params=pltpu.CompilerParams(
            dimension_semantics=("arbitrary",),
            vmem_limit_bytes=32 * 1024 * 1024,
        ),
    )(x_t, wih_p, bias_p, whh_p, wout_p)

    # Tiny epilogue (one fused XLA op): slice the valid region, back to
    # batch-first, add the head bias.
    y = jnp.transpose(y_tb[:T, :B, :], (1, 0, 2)) + b_out
    return y


def _reference_forward(x, w_ih, w_hh, b_ih, b_hh, w_out, b_out):
    """Pure-JAX LSTM+Linear reference (mirrors torch.nn.LSTM semantics)."""
    B, T, I = x.shape
    H = HIDDEN_SIZE

    def cell(carry, x_t):
        h, c = carry
        gates = (jnp.dot(x_t, w_ih.T, precision=_HIGHEST) + b_ih
                 + jnp.dot(h, w_hh.T, precision=_HIGHEST) + b_hh)
        i = jax.nn.sigmoid(gates[:, 0 * H:1 * H])
        f = jax.nn.sigmoid(gates[:, 1 * H:2 * H])
        g = jnp.tanh(gates[:, 2 * H:3 * H])
        o = jax.nn.sigmoid(gates[:, 3 * H:4 * H])
        c_new = f * c + i * g
        h_new = o * jnp.tanh(c_new)
        return (h_new, c_new), h_new

    h0 = jnp.zeros((B, H), jnp.float32)
    c0 = jnp.zeros((B, H), jnp.float32)
    _, hs = jax.lax.scan(cell, (h0, c0), jnp.transpose(x, (1, 0, 2)))
    hs = jnp.transpose(hs, (1, 0, 2))                                 # (B, T, H)
    return jnp.dot(hs, w_out.T, precision=_HIGHEST) + b_out


if __name__ == "__main__":
    key = jax.random.PRNGKey(0)
    B, T = 2, 8
    H, I, O = HIDDEN_SIZE, INPUT_SIZE, OUTPUT_SIZE

    ks = jax.random.split(key, 8)
    bound = 1.0 / jnp.sqrt(H)
    # Deterministic init mimicking PyTorch's U(-1/sqrt(H), 1/sqrt(H)).
    w_ih = jax.random.uniform(ks[0], (4 * H, I), jnp.float32, -bound, bound)
    w_hh = jax.random.uniform(ks[1], (4 * H, H), jnp.float32, -bound, bound)
    b_ih = jax.random.uniform(ks[2], (4 * H,), jnp.float32, -bound, bound)
    b_hh = jax.random.uniform(ks[3], (4 * H,), jnp.float32, -bound, bound)
    w_out = jax.random.uniform(ks[4], (O, H), jnp.float32, -bound, bound)
    b_out = jax.random.uniform(ks[5], (O,), jnp.float32, -bound, bound)

    x = jax.random.normal(ks[6], (B, T, I), jnp.float32)

    y = rnn_forward(x, w_ih, w_hh, b_ih, b_hh, w_out, b_out)
    y = jax.block_until_ready(y)

    y_ref = _reference_forward(x, w_ih, w_hh, b_ih, b_hh, w_out, b_out)
    assert y.shape == (B, T, O)
    # Documented tolerance: the in-kernel recurrent dot uses Mosaic's default
    # f32 matmul precision (bf16-pass decomposition) vs. the HIGHEST reference.
    assert jnp.allclose(y, y_ref, atol=1e-4, rtol=1e-4)

    print("KERNEL_OK")
</pallas_src>

<mosaic_0001>
module attributes {stable_mosaic.version = 11 : i64} {
  func.func @_lstm_kernel(%arg0: i32, %arg1: memref<8x8x2xf32, #tpu.memory_space<vmem>>, %arg2: memref<2x512xf32, #tpu.memory_space<vmem>>, %arg3: memref<1x512xf32, #tpu.memory_space<vmem>>, %arg4: memref<128x512xf32, #tpu.memory_space<vmem>>, %arg5: memref<1x128xf32, #tpu.memory_space<vmem>>, %arg6: memref<8x8x1xf32, #tpu.memory_space<vmem>>, %arg7: memref<8x8x512xf32, #tpu.memory_space<vmem>>, %arg8: memref<8x8x128xf32, #tpu.memory_space<vmem>>, %arg9: memref<8x128xf32, #tpu.memory_space<vmem>>, %arg10: memref<8x128xf32, #tpu.memory_space<vmem>>) attributes {dimension_semantics = [#tpu.dimension_semantics<arbitrary>], iteration_bounds = array<i64: 1>, scalar_prefetch = 0 : i64, scratch_operands = 4 : i64, tpu.core_type = #tpu.core_type<tc>, window_params = [{transform_indices = @transform_0, window_bounds = array<i64: 8, 8, 2>}, {pipeline_mode = #tpu.pipeline_mode<synchronous>, transform_indices = @transform_1, window_bounds = array<i64: 2, 512>}, {pipeline_mode = #tpu.pipeline_mode<synchronous>, transform_indices = @transform_2, window_bounds = array<i64: 1, 512>}, {pipeline_mode = #tpu.pipeline_mode<synchronous>, transform_indices = @transform_3, window_bounds = array<i64: 128, 512>}, {pipeline_mode = #tpu.pipeline_mode<synchronous>, transform_indices = @transform_4, window_bounds = array<i64: 1, 128>}, {transform_indices = @transform_5, window_bounds = array<i64: 8, 8, 1>}]} {
    %c0_i32 = arith.constant 0 : i32
    %0 = arith.cmpi eq, %arg0, %c0_i32 : i32
    %1 = arith.extui %0 : i1 to i32
    %c0_i32_0 = arith.constant 0 : i32
    %2 = arith.cmpi ne, %1, %c0_i32_0 : i32
    scf.if %2 {
      %cst_100 = arith.constant 0.000000e+00 : f32
      %309 = vector.broadcast %cst_100 : f32 to vector<8x128xf32>
      %c0_101 = arith.constant 0 : index
      %c0_102 = arith.constant 0 : index
      %310 = vector.load %arg9[%c0_101, %c0_102] : memref<8x128xf32, #tpu.memory_space<vmem>>, vector<8x128xf32>
      tpu.vector_store %arg9[%c0_101, %c0_102], %309 {strides = array<i32>} : memref<8x128xf32, #tpu.memory_space<vmem>>, vector<8x128xf32>,
      %cst_103 = arith.constant 0.000000e+00 : f32
      %311 = vector.broadcast %cst_103 : f32 to vector<8x128xf32>
      %c0_104 = arith.constant 0 : index
      %c0_105 = arith.constant 0 : index
      %312 = vector.load %arg10[%c0_104, %c0_105] : memref<8x128xf32, #tpu.memory_space<vmem>>, vector<8x128xf32>
      tpu.vector_store %arg10[%c0_104, %c0_105], %311 {strides = array<i32>} : memref<8x128xf32, #tpu.memory_space<vmem>>, vector<8x128xf32>,
    } else {
    }
    %c0 = arith.constant 0 : index
    %c0_1 = arith.constant 0 : index
    %c0_2 = arith.constant 0 : index
    %3 = vector.load %arg1[%c0, %c0_1, %c0_2] : memref<8x8x2xf32, #tpu.memory_space<vmem>>, vector<8x8x2xf32>
    %c0_3 = arith.constant 0 : index
    %c0_4 = arith.constant 0 : index
    %4 = vector.load %arg3[%c0_3, %c0_4] : memref<1x512xf32, #tpu.memory_space<vmem>>, vector<1x512xf32>
    %5 = vector.extract_strided_slice %3 {offsets = [0, 0, 0], sizes = [8, 8, 1], strides = [1, 1, 1]} : vector<8x8x2xf32> to vector<8x8x1xf32>
    %c0_5 = arith.constant 0 : index
    %c0_6 = arith.constant 0 : index
    %6 = vector.load %arg2[%c0_5, %c0_6] : memref<2x512xf32, #tpu.memory_space<vmem>>, vector<1x512xf32>
    %7 = vector.shape_cast %6 : vector<1x512xf32> to vector<1x1x512xf32>
    %8 = vector.broadcast %5 : vector<8x8x1xf32> to vector<8x8x512xf32>
    %9 = vector.broadcast %7 : vector<1x1x512xf32> to vector<8x8x512xf32>
    %10 = arith.mulf %8, %9 : vector<8x8x512xf32>
    %11 = vector.shape_cast %4 : vector<1x512xf32> to vector<1x1x512xf32>
    %12 = vector.broadcast %11 : vector<1x1x512xf32> to vector<8x8x512xf32>
    %13 = arith.addf %12, %10 : vector<8x8x512xf32>
    %c0_7 = arith.constant 0 : index
    %c0_8 = arith.constant 0 : index
    %c0_9 = arith.constant 0 : index
    %14 = vector.load %arg7[%c0_7, %c0_8, %c0_9] : memref<8x8x512xf32, #tpu.memory_space<vmem>>, vector<8x8x512xf32>
    tpu.vector_store %arg7[%c0_7, %c0_8, %c0_9], %13 {strides = array<i32>} : memref<8x8x512xf32, #tpu.memory_space<vmem>>, vector<8x8x512xf32>,
    %c0_10 = arith.constant 0 : index
    %c0_11 = arith.constant 0 : index
    %c0_12 = arith.constant 0 : index
    %15 = vector.load %arg7[%c0_10, %c0_11, %c0_12] : memref<8x8x512xf32, #tpu.memory_space<vmem>>, vector<8x8x512xf32>
    %16 = vector.extract_strided_slice %3 {offsets = [0, 0, 1], sizes = [8, 8, 1], strides = [1, 1, 1]} : vector<8x8x2xf32> to vector<8x8x1xf32>
    %c1 = arith.constant 1 : index
    %c0_13 = arith.constant 0 : index
    %17 = vector.load %arg2[%c1, %c0_13] : memref<2x512xf32, #tpu.memory_space<vmem>>, vector<1x512xf32>
    %18 = vector.shape_cast %17 : vector<1x512xf32> to vector<1x1x512xf32>
    %19 = vector.broadcast %16 : vector<8x8x1xf32> to vector<8x8x512xf32>
    %20 = vector.broadcast %18 : vector<1x1x512xf32> to vector<8x8x512xf32>
    %21 = arith.mulf %19, %20 : vector<8x8x512xf32>
    %22 = arith.addf %15, %21 : vector<8x8x512xf32>
    %c0_14 = arith.constant 0 : index
    %c0_15 = arith.constant 0 : index
    %c0_16 = arith.constant 0 : index
    %23 = vector.load %arg7[%c0_14, %c0_15, %c0_16] : memref<8x8x512xf32, #tpu.memory_space<vmem>>, vector<8x8x512xf32>
    tpu.vector_store %arg7[%c0_14, %c0_15, %c0_16], %22 {strides = array<i32>} : memref<8x8x512xf32, #tpu.memory_space<vmem>>, vector<8x8x512xf32>,
    %c0_17 = arith.constant 0 : index
    %c0_18 = arith.constant 0 : index
    %24 = vector.load %arg4[%c0_17, %c0_18] : memref<128x512xf32, #tpu.memory_space<vmem>>, vector<128x512xf32>
    %c0_19 = arith.constant 0 : index
    %c0_20 = arith.constant 0 : index
    %25 = vector.load %arg9[%c0_19, %c0_20] : memref<8x128xf32, #tpu.memory_space<vmem>>, vector<8x128xf32>
    %c0_21 = arith.constant 0 : index
    %c0_22 = arith.constant 0 : index
    %26 = vector.load %arg10[%c0_21, %c0_22] : memref<8x128xf32, #tpu.memory_space<vmem>>, vector<8x128xf32>
    %c0_i32_23 = arith.constant 0 : i32
    %27 = arith.index_cast %c0_i32_23 : i32 to index
    %c0_24 = arith.constant 0 : index
    %c0_25 = arith.constant 0 : index
    %28 = vector.load %arg7[%27, %c0_24, %c0_25] : memref<8x8x512xf32, #tpu.memory_space<vmem>>, vector<1x8x512xf32>
    %29 = vector.shape_cast %28 : vector<1x8x512xf32> to vector<8x512xf32>
    %cst = arith.constant dense<0.000000e+00> : vector<8x512xf32>
    %30 = tpu.matmul %25, %24, %cst {dimension_numbers = #tpu.dot_dimension_numbers<[1], [0], [0], [1], [0, 0, 1, 1], [], []>} : vector<8x128xf32>, vector<128x512xf32>, vector<8x512xf32> -> vector<8x512xf32>
    %31 = arith.addf %29, %30 : vector<8x512xf32>
    %32 = vector.extract_strided_slice %31 {offsets = [0, 0], sizes = [8, 128], strides = [1, 1]} : vector<8x512xf32> to vector<8x128xf32>
    %33 = arith.negf %32 : vector<8x128xf32>
    %34 = math.exp %33 : vector<8x128xf32>
    %cst_26 = arith.constant 1.000000e+00 : f32
    %35 = vector.broadcast %cst_26 : f32 to vector<8x128xf32>
    %36 = arith.addf %35, %34 : vector<8x128xf32>
    %37 = arith.divf %35, %36 : vector<8x128xf32>
    %38 = vector.extract_strided_slice %31 {offsets = [0, 128], sizes = [8, 128], strides = [1, 1]} : vector<8x512xf32> to vector<8x128xf32>
    %39 = arith.negf %38 : vector<8x128xf32>
    %40 = math.exp %39 : vector<8x128xf32>
    %cst_27 = arith.constant 1.000000e+00 : f32
    %41 = vector.broadcast %cst_27 : f32 to vector<8x128xf32>
    %42 = arith.addf %41, %40 : vector<8x128xf32>
    %43 = arith.divf %41, %42 : vector<8x128xf32>
    %44 = vector.extract_strided_slice %31 {offsets = [0, 256], sizes = [8, 128], strides = [1, 1]} : vector<8x512xf32> to vector<8x128xf32>
    %45 = math.tanh %44 : vector<8x128xf32>
    %46 = vector.extract_strided_slice %31 {offsets = [0, 384], sizes = [8, 128], strides = [1, 1]} : vector<8x512xf32> to vector<8x128xf32>
    %47 = arith.negf %46 : vector<8x128xf32>
    %48 = math.exp %47 : vector<8x128xf32>
    %cst_28 = arith.constant 1.000000e+00 : f32
    %49 = vector.broadcast %cst_28 : f32 to vector<8x128xf32>
    %50 = arith.addf %49, %48 : vector<8x128xf32>
    %51 = arith.divf %49, %50 : vector<8x128xf32>
    %52 = arith.mulf %43, %26 : vector<8x128xf32>
    %53 = arith.mulf %37, %45 : vector<8x128xf32>
    %54 = arith.addf %52, %53 : vector<8x128xf32>
    %55 = math.tanh %54 : vector<8x128xf32>
    %56 = arith.mulf %51, %55 : vector<8x128xf32>
    %57 = arith.index_cast %c0_i32_23 : i32 to index
    %c0_29 = arith.constant 0 : index
    %c0_30 = arith.constant 0 : index
    %58 = vector.load %arg8[%57, %c0_29, %c0_30] : memref<8x8x128xf32, #tpu.memory_space<vmem>>, vector<1x8x128xf32>
    %59 = vector.shape_cast %58 : vector<1x8x128xf32> to vector<8x128xf32>
    %60 = vector.shape_cast %56 : vector<8x128xf32> to vector<1x8x128xf32>
    tpu.vector_store %arg8[%57, %c0_29, %c0_30], %60 {strides = array<i32>} : memref<8x8x128xf32, #tpu.memory_space<vmem>>, vector<1x8x128xf32>,
    %c1_i32 = arith.constant 1 : i32
    %61 = arith.index_cast %c1_i32 : i32 to index
    %c0_31 = arith.constant 0 : index
    %c0_32 = arith.constant 0 : index
    %62 = vector.load %arg7[%61, %c0_31, %c0_32] : memref<8x8x512xf32, #tpu.memory_space<vmem>>, vector<1x8x512xf32>
    %63 = vector.shape_cast %62 : vector<1x8x512xf32> to vector<8x512xf32>
    %cst_33 = arith.constant dense<0.000000e+00> : vector<8x512xf32>
    %64 = tpu.matmul %56, %24, %cst_33 {dimension_numbers = #tpu.dot_dimension_numbers<[1], [0], [0], [1], [0, 0, 1, 1], [], []>} : vector<8x128xf32>, vector<128x512xf32>, vector<8x512xf32> -> vector<8x512xf32>
    %65 = arith.addf %63, %64 : vector<8x512xf32>
    %66 = vector.extract_strided_slice %65 {offsets = [0, 0], sizes = [8, 128], strides = [1, 1]} : vector<8x512xf32> to vector<8x128xf32>
    %67 = arith.negf %66 : vector<8x128xf32>
    %68 = math.exp %67 : vector<8x128xf32>
    %cst_34 = arith.constant 1.000000e+00 : f32
    %69 = vector.broadcast %cst_34 : f32 to vector<8x128xf32>
    %70 = arith.addf %69, %68 : vector<8x128xf32>
    %71 = arith.divf %69, %70 : vector<8x128xf32>
    %72 = vector.extract_strided_slice %65 {offsets = [0, 128], sizes = [8, 128], strides = [1, 1]} : vector<8x512xf32> to vector<8x128xf32>
    %73 = arith.negf %72 : vector<8x128xf32>
    %74 = math.exp %73 : vector<8x128xf32>
    %cst_35 = arith.constant 1.000000e+00 : f32
    %75 = vector.broadcast %cst_35 : f32 to vector<8x128xf32>
    %76 = arith.addf %75, %74 : vector<8x128xf32>
    %77 = arith.divf %75, %76 : vector<8x128xf32>
    %78 = vector.extract_strided_slice %65 {offsets = [0, 256], sizes = [8, 128], strides = [1, 1]} : vector<8x512xf32> to vector<8x128xf32>
    %79 = math.tanh %78 : vector<8x128xf32>
    %80 = vector.extract_strided_slice %65 {offsets = [0, 384], sizes = [8, 128], strides = [1, 1]} : vector<8x512xf32> to vector<8x128xf32>
    %81 = arith.negf %80 : vector<8x128xf32>
    %82 = math.exp %81 : vector<8x128xf32>
    %cst_36 = arith.constant 1.000000e+00 : f32
    %83 = vector.broadcast %cst_36 : f32 to vector<8x128xf32>
    %84 = arith.addf %83, %82 : vector<8x128xf32>
    %85 = arith.divf %83, %84 : vector<8x128xf32>
    %86 = arith.mulf %77, %54 : vector<8x128xf32>
    %87 = arith.mulf %71, %79 : vector<8x128xf32>
    %88 = arith.addf %86, %87 : vector<8x128xf32>
    %89 = math.tanh %88 : vector<8x128xf32>
    %90 = arith.mulf %85, %89 : vector<8x128xf32>
    %91 = arith.index_cast %c1_i32 : i32 to index
    %c0_37 = arith.constant 0 : index
    %c0_38 = arith.constant 0 : index
    %92 = vector.load %arg8[%91, %c0_37, %c0_38] : memref<8x8x128xf32, #tpu.memory_space<vmem>>, vector<1x8x128xf32>
    %93 = vector.shape_cast %92 : vector<1x8x128xf32> to vector<8x128xf32>
    %94 = vector.shape_cast %90 : vector<8x128xf32> to vector<1x8x128xf32>
    tpu.vector_store %arg8[%91, %c0_37, %c0_38], %94 {strides = array<i32>} : memref<8x8x128xf32, #tpu.memory_space<vmem>>, vector<1x8x128xf32>,
    %c2_i32 = arith.constant 2 : i32
    %95 = arith.index_cast %c2_i32 : i32 to index
    %c0_39 = arith.constant 0 : index
    %c0_40 = arith.constant 0 : index
    %96 = vector.load %arg7[%95, %c0_39, %c0_40] : memref<8x8x512xf32, #tpu.memory_space<vmem>>, vector<1x8x512xf32>
    %97 = vector.shape_cast %96 : vector<1x8x512xf32> to vector<8x512xf32>
    %cst_41 = arith.constant dense<0.000000e+00> : vector<8x512xf32>
    %98 = tpu.matmul %90, %24, %cst_41 {dimension_numbers = #tpu.dot_dimension_numbers<[1], [0], [0], [1], [0, 0, 1, 1], [], []>} : vector<8x128xf32>, vector<128x512xf32>, vector<8x512xf32> -> vector<8x512xf32>
    %99 = arith.addf %97, %98 : vector<8x512xf32>
    %100 = vector.extract_strided_slice %99 {offsets = [0, 0], sizes = [8, 128], strides = [1, 1]} : vector<8x512xf32> to vector<8x128xf32>
    %101 = arith.negf %100 : vector<8x128xf32>
    %102 = math.exp %101 : vector<8x128xf32>
    %cst_42 = arith.constant 1.000000e+00 : f32
    %103 = vector.broadcast %cst_42 : f32 to vector<8x128xf32>
    %104 = arith.addf %103, %102 : vector<8x128xf32>
    %105 = arith.divf %103, %104 : vector<8x128xf32>
    %106 = vector.extract_strided_slice %99 {offsets = [0, 128], sizes = [8, 128], strides = [1, 1]} : vector<8x512xf32> to vector<8x128xf32>
    %107 = arith.negf %106 : vector<8x128xf32>
    %108 = math.exp %107 : vector<8x128xf32>
    %cst_43 = arith.constant 1.000000e+00 : f32
    %109 = vector.broadcast %cst_43 : f32 to vector<8x128xf32>
    %110 = arith.addf %109, %108 : vector<8x128xf32>
    %111 = arith.divf %109, %110 : vector<8x128xf32>
    %112 = vector.extract_strided_slice %99 {offsets = [0, 256], sizes = [8, 128], strides = [1, 1]} : vector<8x512xf32> to vector<8x128xf32>
    %113 = math.tanh %112 : vector<8x128xf32>
    %114 = vector.extract_strided_slice %99 {offsets = [0, 384], sizes = [8, 128], strides = [1, 1]} : vector<8x512xf32> to vector<8x128xf32>
    %115 = arith.negf %114 : vector<8x128xf32>
    %116 = math.exp %115 : vector<8x128xf32>
    %cst_44 = arith.constant 1.000000e+00 : f32
    %117 = vector.broadcast %cst_44 : f32 to vector<8x128xf32>
    %118 = arith.addf %117, %116 : vector<8x128xf32>
    %119 = arith.divf %117, %118 : vector<8x128xf32>
    %120 = arith.mulf %111, %88 : vector<8x128xf32>
    %121 = arith.mulf %105, %113 : vector<8x128xf32>
    %122 = arith.addf %120, %121 : vector<8x128xf32>
    %123 = math.tanh %122 : vector<8x128xf32>
    %124 = arith.mulf %119, %123 : vector<8x128xf32>
    %125 = arith.index_cast %c2_i32 : i32 to index
    %c0_45 = arith.constant 0 : index
    %c0_46 = arith.constant 0 : index
    %126 = vector.load %arg8[%125, %c0_45, %c0_46] : memref<8x8x128xf32, #tpu.memory_space<vmem>>, vector<1x8x128xf32>
    %127 = vector.shape_cast %126 : vector<1x8x128xf32> to vector<8x128xf32>
    %128 = vector.shape_cast %124 : vector<8x128xf32> to vector<1x8x128xf32>
    tpu.vector_store %arg8[%125, %c0_45, %c0_46], %128 {strides = array<i32>} : memref<8x8x128xf32, #tpu.memory_space<vmem>>, vector<1x8x128xf32>,
    %c3_i32 = arith.constant 3 : i32
    %129 = arith.index_cast %c3_i32 : i32 to index
    %c0_47 = arith.constant 0 : index
    %c0_48 = arith.constant 0 : index
    %130 = vector.load %arg7[%129, %c0_47, %c0_48] : memref<8x8x512xf32, #tpu.memory_space<vmem>>, vector<1x8x512xf32>
    %131 = vector.shape_cast %130 : vector<1x8x512xf32> to vector<8x512xf32>
    %cst_49 = arith.constant dense<0.000000e+00> : vector<8x512xf32>
    %132 = tpu.matmul %124, %24, %cst_49 {dimension_numbers = #tpu.dot_dimension_numbers<[1], [0], [0], [1], [0, 0, 1, 1], [], []>} : vector<8x128xf32>, vector<128x512xf32>, vector<8x512xf32> -> vector<8x512xf32>
    %133 = arith.addf %131, %132 : vector<8x512xf32>
    %134 = vector.extract_strided_slice %133 {offsets = [0, 0], sizes = [8, 128], strides = [1, 1]} : vector<8x512xf32> to vector<8x128xf32>
    %135 = arith.negf %134 : vector<8x128xf32>
    %136 = math.exp %135 : vector<8x128xf32>
    %cst_50 = arith.constant 1.000000e+00 : f32
    %137 = vector.broadcast %cst_50 : f32 to vector<8x128xf32>
    %138 = arith.addf %137, %136 : vector<8x128xf32>
    %139 = arith.divf %137, %138 : vector<8x128xf32>
    %140 = vector.extract_strided_slice %133 {offsets = [0, 128], sizes = [8, 128], strides = [1, 1]} : vector<8x512xf32> to vector<8x128xf32>
    %141 = arith.negf %140 : vector<8x128xf32>
    %142 = math.exp %141 : vector<8x128xf32>
    %cst_51 = arith.constant 1.000000e+00 : f32
    %143 = vector.broadcast %cst_51 : f32 to vector<8x128xf32>
    %144 = arith.addf %143, %142 : vector<8x128xf32>
    %145 = arith.divf %143, %144 : vector<8x128xf32>
    %146 = vector.extract_strided_slice %133 {offsets = [0, 256], sizes = [8, 128], strides = [1, 1]} : vector<8x512xf32> to vector<8x128xf32>
    %147 = math.tanh %146 : vector<8x128xf32>
    %148 = vector.extract_strided_slice %133 {offsets = [0, 384], sizes = [8, 128], strides = [1, 1]} : vector<8x512xf32> to vector<8x128xf32>
    %149 = arith.negf %148 : vector<8x128xf32>
    %150 = math.exp %149 : vector<8x128xf32>
    %cst_52 = arith.constant 1.000000e+00 : f32
    %151 = vector.broadcast %cst_52 : f32 to vector<8x128xf32>
    %152 = arith.addf %151, %150 : vector<8x128xf32>
    %153 = arith.divf %151, %152 : vector<8x128xf32>
    %154 = arith.mulf %145, %122 : vector<8x128xf32>
    %155 = arith.mulf %139, %147 : vector<8x128xf32>
    %156 = arith.addf %154, %155 : vector<8x128xf32>
    %157 = math.tanh %156 : vector<8x128xf32>
    %158 = arith.mulf %153, %157 : vector<8x128xf32>
    %159 = arith.index_cast %c3_i32 : i32 to index
    %c0_53 = arith.constant 0 : index
    %c0_54 = arith.constant 0 : index
    %160 = vector.load %arg8[%159, %c0_53, %c0_54] : memref<8x8x128xf32, #tpu.memory_space<vmem>>, vector<1x8x128xf32>
    %161 = vector.shape_cast %160 : vector<1x8x128xf32> to vector<8x128xf32>
    %162 = vector.shape_cast %158 : vector<8x128xf32> to vector<1x8x128xf32>
    tpu.vector_store %arg8[%159, %c0_53, %c0_54], %162 {strides = array<i32>} : memref<8x8x128xf32, #tpu.memory_space<vmem>>, vector<1x8x128xf32>,
    %c4_i32 = arith.constant 4 : i32
    %163 = arith.index_cast %c4_i32 : i32 to index
    %c0_55 = arith.constant 0 : index
    %c0_56 = arith.constant 0 : index
    %164 = vector.load %arg7[%163, %c0_55, %c0_56] : memref<8x8x512xf32, #tpu.memory_space<vmem>>, vector<1x8x512xf32>
    %165 = vector.shape_cast %164 : vector<1x8x512xf32> to vector<8x512xf32>
    %cst_57 = arith.constant dense<0.000000e+00> : vector<8x512xf32>
    %166 = tpu.matmul %158, %24, %cst_57 {dimension_numbers = #tpu.dot_dimension_numbers<[1], [0], [0], [1], [0, 0, 1, 1], [], []>} : vector<8x128xf32>, vector<128x512xf32>, vector<8x512xf32> -> vector<8x512xf32>
    %167 = arith.addf %165, %166 : vector<8x512xf32>
    %168 = vector.extract_strided_slice %167 {offsets = [0, 0], sizes = [8, 128], strides = [1, 1]} : vector<8x512xf32> to vector<8x128xf32>
    %169 = arith.negf %168 : vector<8x128xf32>
    %170 = math.exp %169 : vector<8x128xf32>
    %cst_58 = arith.constant 1.000000e+00 : f32
    %171 = vector.broadcast %cst_58 : f32 to vector<8x128xf32>
    %172 = arith.addf %171, %170 : vector<8x128xf32>
    %173 = arith.divf %171, %172 : vector<8x128xf32>
    %174 = vector.extract_strided_slice %167 {offsets = [0, 128], sizes = [8, 128], strides = [1, 1]} : vector<8x512xf32> to vector<8x128xf32>
    %175 = arith.negf %174 : vector<8x128xf32>
    %176 = math.exp %175 : vector<8x128xf32>
    %cst_59 = arith.constant 1.000000e+00 : f32
    %177 = vector.broadcast %cst_59 : f32 to vector<8x128xf32>
    %178 = arith.addf %177, %176 : vector<8x128xf32>
    %179 = arith.divf %177, %178 : vector<8x128xf32>
    %180 = vector.extract_strided_slice %167 {offsets = [0, 256], sizes = [8, 128], strides = [1, 1]} : vector<8x512xf32> to vector<8x128xf32>
    %181 = math.tanh %180 : vector<8x128xf32>
    %182 = vector.extract_strided_slice %167 {offsets = [0, 384], sizes = [8, 128], strides = [1, 1]} : vector<8x512xf32> to vector<8x128xf32>
    %183 = arith.negf %182 : vector<8x128xf32>
    %184 = math.exp %183 : vector<8x128xf32>
    %cst_60 = arith.constant 1.000000e+00 : f32
    %185 = vector.broadcast %cst_60 : f32 to vector<8x128xf32>
    %186 = arith.addf %185, %184 : vector<8x128xf32>
    %187 = arith.divf %185, %186 : vector<8x128xf32>
    %188 = arith.mulf %179, %156 : vector<8x128xf32>
    %189 = arith.mulf %173, %181 : vector<8x128xf32>
    %190 = arith.addf %188, %189 : vector<8x128xf32>
    %191 = math.tanh %190 : vector<8x128xf32>
    %192 = arith.mulf %187, %191 : vector<8x128xf32>
    %193 = arith.index_cast %c4_i32 : i32 to index
    %c0_61 = arith.constant 0 : index
    %c0_62 = arith.constant 0 : index
    %194 = vector.load %arg8[%193, %c0_61, %c0_62] : memref<8x8x128xf32, #tpu.memory_space<vmem>>, vector<1x8x128xf32>
    %195 = vector.shape_cast %194 : vector<1x8x128xf32> to vector<8x128xf32>
    %196 = vector.shape_cast %192 : vector<8x128xf32> to vector<1x8x128xf32>
    tpu.vector_store %arg8[%193, %c0_61, %c0_62], %196 {strides = array<i32>} : memref<8x8x128xf32, #tpu.memory_space<vmem>>, vector<1x8x128xf32>,
    %c5_i32 = arith.constant 5 : i32
    %197 = arith.index_cast %c5_i32 : i32 to index
    %c0_63 = arith.constant 0 : index
    %c0_64 = arith.constant 0 : index
    %198 = vector.load %arg7[%197, %c0_63, %c0_64] : memref<8x8x512xf32, #tpu.memory_space<vmem>>, vector<1x8x512xf32>
    %199 = vector.shape_cast %198 : vector<1x8x512xf32> to vector<8x512xf32>
    %cst_65 = arith.constant dense<0.000000e+00> : vector<8x512xf32>
    %200 = tpu.matmul %192, %24, %cst_65 {dimension_numbers = #tpu.dot_dimension_numbers<[1], [0], [0], [1], [0, 0, 1, 1], [], []>} : vector<8x128xf32>, vector<128x512xf32>, vector<8x512xf32> -> vector<8x512xf32>
    %201 = arith.addf %199, %200 : vector<8x512xf32>
    %202 = vector.extract_strided_slice %201 {offsets = [0, 0], sizes = [8, 128], strides = [1, 1]} : vector<8x512xf32> to vector<8x128xf32>
    %203 = arith.negf %202 : vector<8x128xf32>
    %204 = math.exp %203 : vector<8x128xf32>
    %cst_66 = arith.constant 1.000000e+00 : f32
    %205 = vector.broadcast %cst_66 : f32 to vector<8x128xf32>
    %206 = arith.addf %205, %204 : vector<8x128xf32>
    %207 = arith.divf %205, %206 : vector<8x128xf32>
    %208 = vector.extract_strided_slice %201 {offsets = [0, 128], sizes = [8, 128], strides = [1, 1]} : vector<8x512xf32> to vector<8x128xf32>
    %209 = arith.negf %208 : vector<8x128xf32>
    %210 = math.exp %209 : vector<8x128xf32>
    %cst_67 = arith.constant 1.000000e+00 : f32
    %211 = vector.broadcast %cst_67 : f32 to vector<8x128xf32>
    %212 = arith.addf %211, %210 : vector<8x128xf32>
    %213 = arith.divf %211, %212 : vector<8x128xf32>
    %214 = vector.extract_strided_slice %201 {offsets = [0, 256], sizes = [8, 128], strides = [1, 1]} : vector<8x512xf32> to vector<8x128xf32>
    %215 = math.tanh %214 : vector<8x128xf32>
    %216 = vector.extract_strided_slice %201 {offsets = [0, 384], sizes = [8, 128], strides = [1, 1]} : vector<8x512xf32> to vector<8x128xf32>
    %217 = arith.negf %216 : vector<8x128xf32>
    %218 = math.exp %217 : vector<8x128xf32>
    %cst_68 = arith.constant 1.000000e+00 : f32
    %219 = vector.broadcast %cst_68 : f32 to vector<8x128xf32>
    %220 = arith.addf %219, %218 : vector<8x128xf32>
    %221 = arith.divf %219, %220 : vector<8x128xf32>
    %222 = arith.mulf %213, %190 : vector<8x128xf32>
    %223 = arith.mulf %207, %215 : vector<8x128xf32>
    %224 = arith.addf %222, %223 : vector<8x128xf32>
    %225 = math.tanh %224 : vector<8x128xf32>
    %226 = arith.mulf %221, %225 : vector<8x128xf32>
    %227 = arith.index_cast %c5_i32 : i32 to index
    %c0_69 = arith.constant 0 : index
    %c0_70 = arith.constant 0 : index
    %228 = vector.load %arg8[%227, %c0_69, %c0_70] : memref<8x8x128xf32, #tpu.memory_space<vmem>>, vector<1x8x128xf32>
    %229 = vector.shape_cast %228 : vector<1x8x128xf32> to vector<8x128xf32>
    %230 = vector.shape_cast %226 : vector<8x128xf32> to vector<1x8x128xf32>
    tpu.vector_store %arg8[%227, %c0_69, %c0_70], %230 {strides = array<i32>} : memref<8x8x128xf32, #tpu.memory_space<vmem>>, vector<1x8x128xf32>,
    %c6_i32 = arith.constant 6 : i32
    %231 = arith.index_cast %c6_i32 : i32 to index
    %c0_71 = arith.constant 0 : index
    %c0_72 = arith.constant 0 : index
    %232 = vector.load %arg7[%231, %c0_71, %c0_72] : memref<8x8x512xf32, #tpu.memory_space<vmem>>, vector<1x8x512xf32>
    %233 = vector.shape_cast %232 : vector<1x8x512xf32> to vector<8x512xf32>
    %cst_73 = arith.constant dense<0.000000e+00> : vector<8x512xf32>
    %234 = tpu.matmul %226, %24, %cst_73 {dimension_numbers = #tpu.dot_dimension_numbers<[1], [0], [0], [1], [0, 0, 1, 1], [], []>} : vector<8x128xf32>, vector<128x512xf32>, vector<8x512xf32> -> vector<8x512xf32>
    %235 = arith.addf %233, %234 : vector<8x512xf32>
    %236 = vector.extract_strided_slice %235 {offsets = [0, 0], sizes = [8, 128], strides = [1, 1]} : vector<8x512xf32> to vector<8x128xf32>
    %237 = arith.negf %236 : vector<8x128xf32>
    %238 = math.exp %237 : vector<8x128xf32>
    %cst_74 = arith.constant 1.000000e+00 : f32
    %239 = vector.broadcast %cst_74 : f32 to vector<8x128xf32>
    %240 = arith.addf %239, %238 : vector<8x128xf32>
    %241 = arith.divf %239, %240 : vector<8x128xf32>
    %242 = vector.extract_strided_slice %235 {offsets = [0, 128], sizes = [8, 128], strides = [1, 1]} : vector<8x512xf32> to vector<8x128xf32>
    %243 = arith.negf %242 : vector<8x128xf32>
    %244 = math.exp %243 : vector<8x128xf32>
    %cst_75 = arith.constant 1.000000e+00 : f32
    %245 = vector.broadcast %cst_75 : f32 to vector<8x128xf32>
    %246 = arith.addf %245, %244 : vector<8x128xf32>
    %247 = arith.divf %245, %246 : vector<8x128xf32>
    %248 = vector.extract_strided_slice %235 {offsets = [0, 256], sizes = [8, 128], strides = [1, 1]} : vector<8x512xf32> to vector<8x128xf32>
    %249 = math.tanh %248 : vector<8x128xf32>
    %250 = vector.extract_strided_slice %235 {offsets = [0, 384], sizes = [8, 128], strides = [1, 1]} : vector<8x512xf32> to vector<8x128xf32>
    %251 = arith.negf %250 : vector<8x128xf32>
    %252 = math.exp %251 : vector<8x128xf32>
    %cst_76 = arith.constant 1.000000e+00 : f32
    %253 = vector.broadcast %cst_76 : f32 to vector<8x128xf32>
    %254 = arith.addf %253, %252 : vector<8x128xf32>
    %255 = arith.divf %253, %254 : vector<8x128xf32>
    %256 = arith.mulf %247, %224 : vector<8x128xf32>
    %257 = arith.mulf %241, %249 : vector<8x128xf32>
    %258 = arith.addf %256, %257 : vector<8x128xf32>
    %259 = math.tanh %258 : vector<8x128xf32>
    %260 = arith.mulf %255, %259 : vector<8x128xf32>
    %261 = arith.index_cast %c6_i32 : i32 to index
    %c0_77 = arith.constant 0 : index
    %c0_78 = arith.constant 0 : index
    %262 = vector.load %arg8[%261, %c0_77, %c0_78] : memref<8x8x128xf32, #tpu.memory_space<vmem>>, vector<1x8x128xf32>
    %263 = vector.shape_cast %262 : vector<1x8x128xf32> to vector<8x128xf32>
    %264 = vector.shape_cast %260 : vector<8x128xf32> to vector<1x8x128xf32>
    tpu.vector_store %arg8[%261, %c0_77, %c0_78], %264 {strides = array<i32>} : memref<8x8x128xf32, #tpu.memory_space<vmem>>, vector<1x8x128xf32>,
    %c7_i32 = arith.constant 7 : i32
    %265 = arith.index_cast %c7_i32 : i32 to index
    %c0_79 = arith.constant 0 : index
    %c0_80 = arith.constant 0 : index
    %266 = vector.load %arg7[%265, %c0_79, %c0_80] : memref<8x8x512xf32, #tpu.memory_space<vmem>>, vector<1x8x512xf32>
    %267 = vector.shape_cast %266 : vector<1x8x512xf32> to vector<8x512xf32>
    %cst_81 = arith.constant dense<0.000000e+00> : vector<8x512xf32>
    %268 = tpu.matmul %260, %24, %cst_81 {dimension_numbers = #tpu.dot_dimension_numbers<[1], [0], [0], [1], [0, 0, 1, 1], [], []>} : vector<8x128xf32>, vector<128x512xf32>, vector<8x512xf32> -> vector<8x512xf32>
    %269 = arith.addf %267, %268 : vector<8x512xf32>
    %270 = vector.extract_strided_slice %269 {offsets = [0, 0], sizes = [8, 128], strides = [1, 1]} : vector<8x512xf32> to vector<8x128xf32>
    %271 = arith.negf %270 : vector<8x128xf32>
    %272 = math.exp %271 : vector<8x128xf32>
    %cst_82 = arith.constant 1.000000e+00 : f32
    %273 = vector.broadcast %cst_82 : f32 to vector<8x128xf32>
    %274 = arith.addf %273, %272 : vector<8x128xf32>
    %275 = arith.divf %273, %274 : vector<8x128xf32>
    %276 = vector.extract_strided_slice %269 {offsets = [0, 128], sizes = [8, 128], strides = [1, 1]} : vector<8x512xf32> to vector<8x128xf32>
    %277 = arith.negf %276 : vector<8x128xf32>
    %278 = math.exp %277 : vector<8x128xf32>
    %cst_83 = arith.constant 1.000000e+00 : f32
    %279 = vector.broadcast %cst_83 : f32 to vector<8x128xf32>
    %280 = arith.addf %279, %278 : vector<8x128xf32>
    %281 = arith.divf %279, %280 : vector<8x128xf32>
    %282 = vector.extract_strided_slice %269 {offsets = [0, 256], sizes = [8, 128], strides = [1, 1]} : vector<8x512xf32> to vector<8x128xf32>
    %283 = math.tanh %282 : vector<8x128xf32>
    %284 = vector.extract_strided_slice %269 {offsets = [0, 384], sizes = [8, 128], strides = [1, 1]} : vector<8x512xf32> to vector<8x128xf32>
    %285 = arith.negf %284 : vector<8x128xf32>
    %286 = math.exp %285 : vector<8x128xf32>
    %cst_84 = arith.constant 1.000000e+00 : f32
    %287 = vector.broadcast %cst_84 : f32 to vector<8x128xf32>
    %288 = arith.addf %287, %286 : vector<8x128xf32>
    %289 = arith.divf %287, %288 : vector<8x128xf32>
    %290 = arith.mulf %281, %258 : vector<8x128xf32>
    %291 = arith.mulf %275, %283 : vector<8x128xf32>
    %292 = arith.addf %290, %291 : vector<8x128xf32>
    %293 = math.tanh %292 : vector<8x128xf32>
    %294 = arith.mulf %289, %293 : vector<8x128xf32>
    %295 = arith.index_cast %c7_i32 : i32 to index
    %c0_85 = arith.constant 0 : index
    %c0_86 = arith.constant 0 : index
    %296 = vector.load %arg8[%295, %c0_85, %c0_86] : memref<8x8x128xf32, #tpu.memory_space<vmem>>, vector<1x8x128xf32>
    %297 = vector.shape_cast %296 : vector<1x8x128xf32> to vector<8x128xf32>
    %298 = vector.shape_cast %294 : vector<8x128xf32> to vector<1x8x128xf32>
    tpu.vector_store %arg8[%295, %c0_85, %c0_86], %298 {strides = array<i32>} : memref<8x8x128xf32, #tpu.memory_space<vmem>>, vector<1x8x128xf32>,
    %c8_i32 = arith.constant 8 : i32
    %c0_87 = arith.constant 0 : index
    %c0_88 = arith.constant 0 : index
    %299 = vector.load %arg9[%c0_87, %c0_88] : memref<8x128xf32, #tpu.memory_space<vmem>>, vector<8x128xf32>
    tpu.vector_store %arg9[%c0_87, %c0_88], %294 {strides = array<i32>} : memref<8x128xf32, #tpu.memory_space<vmem>>, vector<8x128xf32>,
    %c0_89 = arith.constant 0 : index
    %c0_90 = arith.constant 0 : index
    %300 = vector.load %arg10[%c0_89, %c0_90] : memref<8x128xf32, #tpu.memory_space<vmem>>, vector<8x128xf32>
    tpu.vector_store %arg10[%c0_89, %c0_90], %292 {strides = array<i32>} : memref<8x128xf32, #tpu.memory_space<vmem>>, vector<8x128xf32>,
    %c0_91 = arith.constant 0 : index
    %c0_92 = arith.constant 0 : index
    %c0_93 = arith.constant 0 : index
    %301 = vector.load %arg8[%c0_91, %c0_92, %c0_93] : memref<8x8x128xf32, #tpu.memory_space<vmem>>, vector<8x8x128xf32>
    %c0_94 = arith.constant 0 : index
    %c0_95 = arith.constant 0 : index
    %302 = vector.load %arg5[%c0_94, %c0_95] : memref<1x128xf32, #tpu.memory_space<vmem>>, vector<1x128xf32>
    %303 = vector.shape_cast %302 : vector<1x128xf32> to vector<1x1x128xf32>
    %304 = vector.broadcast %303 : vector<1x1x128xf32> to vector<8x8x128xf32>
    %305 = arith.mulf %301, %304 : vector<8x8x128xf32>
    %cst_96 = arith.constant dense<0.000000e+00> : vector<8x8xf32>
    %306 = vector.multi_reduction <add>, %305, %cst_96 [2] : vector<8x8x128xf32> to vector<8x8xf32>
    %307 = vector.shape_cast %306 : vector<8x8xf32> to vector<8x8x1xf32>
    %c0_97 = arith.constant 0 : index
    %c0_98 = arith.constant 0 : index
    %c0_99 = arith.constant 0 : index
    %308 = vector.load %arg6[%c0_97, %c0_98, %c0_99] : memref<8x8x1xf32, #tpu.memory_space<vmem>>, vector<8x8x1xf32>
    tpu.vector_store %arg6[%c0_97, %c0_98, %c0_99], %307 {strides = array<i32>} : memref<8x8x1xf32, #tpu.memory_space<vmem>>, vector<8x8x1xf32>,
    return
  }
  func.func @transform_0(%arg0: i32) -> (i32, i32, i32) {
    %c0_i32 = arith.constant 0 : i32
    %c0_i32_0 = arith.constant 0 : i32
    %c0_i32_1 = arith.constant 0 : i32
    return %arg0, %c0_i32, %c0_i32_0 : i32, i32, i32
  }
  func.func @transform_1(%arg0: i32) -> (i32, i32) {
    %c0_i32 = arith.constant 0 : i32
    %c0_i32_0 = arith.constant 0 : i32
    %c0_i32_1 = arith.constant 0 : i32
    return %c0_i32, %c0_i32_0 : i32, i32
  }
  func.func @transform_2(%arg0: i32) -> (i32, i32) {
    %c0_i32 = arith.constant 0 : i32
    %c0_i32_0 = arith.constant 0 : i32
    %c0_i32_1 = arith.constant 0 : i32
    return %c0_i32, %c0_i32_0 : i32, i32
  }
  func.func @transform_3(%arg0: i32) -> (i32, i32) {
    %c0_i32 = arith.constant 0 : i32
    %c0_i32_0 = arith.constant 0 : i32
    %c0_i32_1 = arith.constant 0 : i32
    return %c0_i32, %c0_i32_0 : i32, i32
  }
  func.func @transform_4(%arg0: i32) -> (i32, i32) {
    %c0_i32 = arith.constant 0 : i32
    %c0_i32_0 = arith.constant 0 : i32
    %c0_i32_1 = arith.constant 0 : i32
    return %c0_i32, %c0_i32_0 : i32, i32
  }
  func.func @transform_5(%arg0: i32) -> (i32, i32, i32) {
    %c0_i32 = arith.constant 0 : i32
    %c0_i32_0 = arith.constant 0 : i32
    %c0_i32_1 = arith.constant 0 : i32
    return %arg0, %c0_i32, %c0_i32_0 : i32, i32, i32
  }
}

</mosaic_0001>

<bundles_post_ra>
// kernel: rnn_forward.1
= control target key start
LH: loop header
LB: loop body
LE: loop exit
PB: predicated region body
PF: predicated region fallthrough
CT: control target
= control target key end

     0   :  { %v3453_v3 = vmov 0   ;;  %vm1695_vm12 = vcmask 7168   ;;  %s3447_s3 = inlined_call_operand.vmem [shape: f32[128,512], index: 3, kind: input, shape index: {}]   ;;  %s3448_s0 = inlined_call_operand.vmem [shape: f32[8,8,2], index: 0, kind: input, shape index: {}]   ;;  %s3449_s4 = inlined_call_operand.vmem [shape: f32[1,128], index: 4, kind: input, shape index: {}]   ;;  %s3450_s1 = inlined_call_operand.vmem [shape: f32[2,512], index: 1, kind: input, shape index: {}]   ;;  %s3451_s2 = inlined_call_operand.vmem [shape: f32[1,512], index: 2, kind: input, shape index: {}]   ;;  %s3452_s5 = inlined_call_operand.vmem [shape: f32[8,8,1], index: 5, kind: output, shape index: {}]  }
   0x1   :  { %v1980_v0 = vld [vmem:[%s3447_s3 + $0x1e0] sm:$0xff]  ;;  %v1985_v1 = vld [vmem:[%s3447_s3 + $0x1e8] sm:$0xff]  ;;  %v1990_v2 = vld [vmem:[%s3447_s3 + $0x1f0] sm:$0xff]  ;;  %1736 = vset.pattern.permute.xlu0 %v3453_v3  ;;  %1738 = vset.pattern.permute.xlu1 %v3453_v3 }
   0x2   :  { %431 = vmatpush.msra.mxu0 %v1980_v0  ;;  %451 = vmatpush.msra.mxu1 %v1985_v1  ;;  %v1999_v4 = vld [vmem:[%s3447_s3 + $0x1f8] sm:$0xff]  ;;  %v2004_v5 = vld [vmem:[%s3447_s3 + $0x1c0] sm:$0xff]  ;;  %v2009_v6 = vld [vmem:[%s3447_s3 + $0x1c8] sm:$0xff] }
   0x3   :  { %471 = vmatpush.msra.mxu2 %v1990_v2  ;;  %491 = vmatpush.msra.mxu3 %v1999_v4  ;;  %v2016_v7 = vld [vmem:[%s3447_s3 + $0x1d0] sm:$0xff]  ;;  %v2021_v8 = vld [vmem:[%s3447_s3 + $0x1d8] sm:$0xff]  ;;  %v2026_v9 = vld [vmem:[%s3447_s3 + $0x1a0] sm:$0xff] }
   0x4   :  { %432 = vmatpush.msra.mxu0 %v2004_v5  ;;  %452 = vmatpush.msra.mxu1 %v2009_v6  ;;  %v2033_v10 = vld [vmem:[%s3447_s3 + $0x1a8] sm:$0xff]  ;;  %v2038_v11 = vld [vmem:[%s3447_s3 + $0x1b0] sm:$0xff]  ;;  %v2043_v12 = vld [vmem:[%s3447_s3 + $0x1b8] sm:$0xff] }
   0x5   :  { %472 = vmatpush.msra.mxu2 %v2016_v7  ;;  %492 = vmatpush.msra.mxu3 %v2021_v8  ;;  %v2050_v13 = vld [vmem:[%s3447_s3 + $0x180] sm:$0xff]  ;;  %v2055_v14 = vld [vmem:[%s3447_s3 + $0x188] sm:$0xff]  ;;  %v2062_v15 = vld [vmem:[%s3447_s3 + $0x190] sm:$0xff] }
   0x6   :  { %433 = vmatpush.msra.mxu0 %v2026_v9  ;;  %453 = vmatpush.msra.mxu1 %v2033_v10  ;;  %v2067_v16 = vld [vmem:[%s3447_s3 + $0x198] sm:$0xff]  ;;  %v2074_v17 = vld [vmem:[%s3447_s3 + $0x160] sm:$0xff]  ;;  %v2079_v18 = vld [vmem:[%s3447_s3 + $0x168] sm:$0xff] }
   0x7   :  { %473 = vmatpush.msra.mxu2 %v2038_v11  ;;  %493 = vmatpush.msra.mxu3 %v2043_v12  ;;  %v2086_v19 = vld [vmem:[%s3447_s3 + $0x170] sm:$0xff]  ;;  %v2091_v20 = vld [vmem:[%s3447_s3 + $0x178] sm:$0xff]  ;;  %v2098_v21 = vld [vmem:[%s3447_s3 + $0x140] sm:$0xff] }
   0x8   :  { %434 = vmatpush.msra.mxu0 %v2050_v13  ;;  %454 = vmatpush.msra.mxu1 %v2055_v14  ;;  %v2103_v22 = vld [vmem:[%s3447_s3 + $0x148] sm:$0xff]  ;;  %v2110_v23 = vld [vmem:[%s3447_s3 + $0x150] sm:$0xff]  ;;  %v2115_v24 = vld [vmem:[%s3447_s3 + $0x158] sm:$0xff] }
   0x9   :  { %474 = vmatpush.msra.mxu2 %v2062_v15  ;;  %494 = vmatpush.msra.mxu3 %v2067_v16  ;;  %v2122_v25 = vld [vmem:[%s3447_s3 + $0x120] sm:$0xff]  ;;  %v2127_v26 = vld [vmem:[%s3447_s3 + $0x128] sm:$0xff]  ;;  %v2134_v27 = vld [vmem:[%s3447_s3 + $0x130] sm:$0xff] }
   0xa   :  { %435 = vmatpush.msra.mxu0 %v2074_v17  ;;  %455 = vmatpush.msra.mxu1 %v2079_v18  ;;  %v2139_v28 = vld [vmem:[%s3447_s3 + $0x138] sm:$0xff]  ;;  %v2146_v29 = vld [vmem:[%s3447_s3 + $0x100] sm:$0xff]  ;;  %v2151_v30 = vld [vmem:[%s3447_s3 + $0x108] sm:$0xff] }
   0xb   :  { %475 = vmatpush.msra.mxu2 %v2086_v19  ;;  %495 = vmatpush.msra.mxu3 %v2091_v20  ;;  %v2158_v31 = vld [vmem:[%s3447_s3 + $0x110] sm:$0xff]  ;;  %v2163_v32 = vld [vmem:[%s3447_s3 + $0x118] sm:$0xff]  ;;  %v2170_v33 = vld [vmem:[%s3447_s3 + $0xe0] sm:$0xff] }
   0xc   :  { %436 = vmatpush.msra.mxu0 %v2098_v21  ;;  %456 = vmatpush.msra.mxu1 %v2103_v22  ;;  %v2175_v34 = vld [vmem:[%s3447_s3 + $0xe8] sm:$0xff]  ;;  %v2182_v35 = vld [vmem:[%s3447_s3 + $0xf0] sm:$0xff]  ;;  %v2187_v36 = vld [vmem:[%s3447_s3 + $0xf8] sm:$0xff] }
   0xd   :  { %476 = vmatpush.msra.mxu2 %v2110_v23  ;;  %496 = vmatpush.msra.mxu3 %v2115_v24  ;;  %3600 = vst [vmem:[#allocation6_spill] sm:$0xff] %v2187_v36  ;;  %v2194_v37 = vld [vmem:[%s3447_s3 + $0xc0] sm:$0xff]  ;;  %v2199_v38 = vld [vmem:[%s3447_s3 + $0xc8] sm:$0xff]  ;;  %v2206_v39 = vld [vmem:[%s3447_s3 + $0xd0] sm:$0xff] }
   0xe   :  { %437 = vmatpush.msra.mxu0 %v2122_v25  ;;  %457 = vmatpush.msra.mxu1 %v2127_v26  ;;  %3601 = vst [vmem:[#allocation7_spill] sm:$0xff] %v2194_v37  ;;  %v2211_v40 = vld [vmem:[%s3447_s3 + $0xd8] sm:$0xff]  ;;  %v2218_v41 = vld [vmem:[%s3447_s3 + $0xa0] sm:$0xff]  ;;  %v2223_v42 = vld [vmem:[%s3447_s3 + $0xa8] sm:$0xff] }
   0xf   :  { %477 = vmatpush.msra.mxu2 %v2134_v27  ;;  %497 = vmatpush.msra.mxu3 %v2139_v28  ;;  %3602 = vst [vmem:[#allocation8_spill] sm:$0xff] %v2199_v38  ;;  %v2230_v43 = vld [vmem:[%s3447_s3 + $0xb0] sm:$0xff]  ;;  %v2235_v44 = vld [vmem:[%s3447_s3 + $0xb8] sm:$0xff]  ;;  %v2242_v45 = vld [vmem:[%s3447_s3 + $0x80] sm:$0xff] }
  0x10   :  { %438 = vmatpush.msra.mxu0 %v2146_v29  ;;  %458 = vmatpush.msra.mxu1 %v2151_v30  ;;  %3603 = vst [vmem:[#allocation9_spill] sm:$0xff] %v2206_v39  ;;  %v2247_v46 = vld [vmem:[%s3447_s3 + $0x88] sm:$0xff]  ;;  %v2254_v47 = vld [vmem:[%s3447_s3 + $0x90] sm:$0xff]  ;;  %v2259_v48 = vld [vmem:[%s3447_s3 + $0x98] sm:$0xff] }
  0x11   :  { %478 = vmatpush.msra.mxu2 %v2158_v31  ;;  %498 = vmatpush.msra.mxu3 %v2163_v32  ;;  %3604 = vst [vmem:[#allocation10_spill] sm:$0xff] %v2211_v40  ;;  %v26_v49 = vld [vmem:[%s3448_s0] sm:$0xff]  ;;  %v2276_v51 = vld [vmem:[%s3447_s3 + $0x68] sm:$0xff]  ;;  %v2281_v52 = vld [vmem:[%s3447_s3 + $0x70] sm:$0xff] }
  0x12   :  { %439 = vmatpush.msra.mxu0 %v2170_v33  ;;  %459 = vmatpush.msra.mxu1 %v2175_v34  ;;  %3605 = vst [vmem:[#allocation11_spill] sm:$0xff] %v2218_v41  ;;  %v2269_v50 = vld [vmem:[%s3447_s3 + $0x60] sm:$0xff]  ;;  %v2288_v53 = vld [vmem:[%s3447_s3 + $0x78] sm:$0xff]  ;;  %v2299_v55 = vld [vmem:[%s3447_s3 + $0x48] sm:$0xff] }
  0x13   :  { %479 = vmatpush.msra.mxu2 %v2182_v35  ;;  %499 = vmatpush.msra.mxu3 %v2187_v36  ;;  %3606 = vst [vmem:[#allocation12_spill] sm:$0xff] %v2223_v42  ;;  %v2293_v54 = vld [vmem:[%s3447_s3 + $0x40] sm:$0xff]  ;;  %v2304_v56 = vld [vmem:[%s3447_s3 + $0x50] sm:$0xff]  ;;  %v2311_v57 = vld [vmem:[%s3447_s3 + $0x58] sm:$0xff] }
  0x14   :  { %440 = vmatpush.msra.mxu0 %v2194_v37  ;;  %460 = vmatpush.msra.mxu1 %v2199_v38  ;;  %3607 = vst [vmem:[#allocation13_spill] sm:$0xff] %v2230_v43  ;;  %v2316_v58 = vld [vmem:[%s3447_s3 + $0x20] sm:$0xff]  ;;  %v2323_v59 = vld [vmem:[%s3447_s3 + $0x28] sm:$0xff]  ;;  %v2328_v60 = vld [vmem:[%s3447_s3 + $0x30] sm:$0xff] }
  0x15   :  { %3608 = vst [vmem:[#allocation14_spill] sm:$0xff] %v2235_v44  ;;  %480 = vmatpush.msra.mxu2 %v2206_v39  ;;  %500 = vmatpush.msra.mxu3 %v2211_v40  ;;  %v2335_v61 = vld [vmem:[%s3447_s3 + $0x38] sm:$0xff]  ;;  %v2340_v62 = vld [vmem:[%s3447_s3] sm:$0xff]  ;;  %v2347_v63 = vld [vmem:[%s3447_s3 + $0x8] sm:$0xff] }
  0x16   :  { %3609 = vst [vmem:[#allocation15_spill] sm:$0xff] %v2242_v45  ;;  %441 = vmatpush.msra.mxu0 %v2218_v41  ;;  %461 = vmatpush.msra.mxu1 %v2223_v42  ;;  %v2352_v3 = vld [vmem:[%s3447_s3 + $0x10] sm:$0xff] }
  0x17   :  { %3610 = vst [vmem:[#allocation16_spill] sm:$0xff] %v2247_v46  ;;  %481 = vmatpush.msra.mxu2 %v2230_v43  ;;  %501 = vmatpush.msra.mxu3 %v2235_v44 }
  0x18   :  { %3611 = vst [vmem:[#allocation17_spill] sm:$0xff] %v2254_v47  ;;  %442 = vmatpush.msra.mxu0 %v2242_v45  ;;  %462 = vmatpush.msra.mxu1 %v2247_v46 }
  0x19   :  { %3612 = vst [vmem:[#allocation18_spill] sm:$0xff] %v2259_v48  ;;  %482 = vmatpush.msra.mxu2 %v2254_v47  ;;  %502 = vmatpush.msra.mxu3 %v2259_v48 }
  0x1a   :  { %3613 = vst [vmem:[#allocation19_spill] sm:$0xff] %v2269_v50  ;;  %38 = vperm.xlu0 %1736, %v26_v49   ;;  %443 = vmatpush.msra.mxu0 %v2269_v50 }
  0x1b   :  { %3614 = vst [vmem:[#allocation20_spill] sm:$0xff] %v2276_v51  ;;  %463 = vmatpush.msra.mxu1 %v2276_v51  ;;  %483 = vmatpush.msra.mxu2 %v2281_v52 }
  0x1c   :  { %3615 = vst [vmem:[#allocation21_spill] sm:$0xff] %v2281_v52  ;;  %503 = vmatpush.msra.mxu3 %v2288_v53  ;;  %444 = vmatpush.msra.mxu0 %v2293_v54 }
  0x1d   :  { %3616 = vst [vmem:[#allocation22_spill] sm:$0xff] %v2288_v53  ;;  %464 = vmatpush.msra.mxu1 %v2299_v55  ;;  %484 = vmatpush.msra.mxu2 %v2304_v56 }
  0x1e   :  { %3617 = vst [vmem:[#allocation23_spill] sm:$0xff] %v2293_v54  ;;  %504 = vmatpush.msra.mxu3 %v2311_v57  ;;  %445 = vmatpush.msra.mxu0 %v2316_v58 }
  0x1f   :  { %3618 = vst [vmem:[#allocation24_spill] sm:$0xff] %v2299_v55  ;;  %465 = vmatpush.msra.mxu1 %v2323_v59  ;;  %485 = vmatpush.msra.mxu2 %v2328_v60 }
  0x20   :  { %3619 = vst [vmem:[#allocation25_spill] sm:$0xff] %v2304_v56  ;;  %505 = vmatpush.msra.mxu3 %v2335_v61  ;;  %446 = vmatpush.msra.mxu0 %v2340_v62 }
  0x21   :  { %3620 = vst [vmem:[#allocation26_spill] sm:$0xff] %v2311_v57  ;;  %v2359_v57 = vld [vmem:[%s3447_s3 + $0x18] sm:$0xff]  ;;  %466 = vmatpush.msra.mxu1 %v2347_v63  ;;  %486 = vmatpush.msra.mxu2 %v2352_v3 }
  0x22   :  { %3621 = vst [vmem:[#allocation27_spill] sm:$0xff] %v2316_v58  ;;  %506 = vmatpush.msra.mxu3 %v2359_v57  ;;  %v3463_v58 = vmov 1   ;;  %584 = vmatpush.msrb.mxu0 %v1980_v0 }
  0x23   :  { %3622 = vst [vmem:[#allocation28_spill] sm:$0xff] %v2323_v59  ;;  %1737 = vset.pattern.permute.xlu0 %v3463_v58  ;;  %v1946_v59 = vmov 0.0   ;;  %604 = vmatpush.msrb.mxu1 %v1985_v1 }
  0x24   :  { %3623 = vst [vmem:[#allocation29_spill] sm:$0xff] %v2328_v60  ;;  %v27_v60 = vld [vmem:[%s3448_s0 + $0x8] sm:$0xff]  ;;  %447 = vmatmul.f32.vlgmr.msra.gmra.mxu0 %v1946_v59  ;;  %467 = vmatmul.f32.vlgmr.msra.gmra.mxu1 %v1946_v59 }
  0x25   :  { %3624 = vst [vmem:[#allocation30_spill] sm:$0xff] %v2335_v61  ;;  %487 = vmatmul.f32.vlgmr.msra.gmra.mxu2 %v1946_v59  ;;  %507 = vmatmul.f32.vlgmr.msra.gmra.mxu3 %v1946_v59  ;;  %v3630_v59 = vmov 0  }
  0x26   :  { %3625 = vst [vmem:[#allocation31_spill] sm:$0xff] %v2340_v62  ;;  %225 = vperm.xlu0 %1737, %v26_v49   ;;  %43 = vperm.xlu1 %1738, %v27_v60   ;;  %v2400_v49 = vld [vmem:[%s3448_s0 + $0x18] sm:$0xff] }
  0x27   :  { %3626 = vst [vmem:[#allocation32_spill] sm:$0xff] %v2347_v63  ;;  %624 = vmatpush.msrb.mxu2 %v1990_v2  ;;  %644 = vmatpush.msrb.mxu3 %v1999_v4 }
  0x28   :  { %3627 = vst [vmem:[#allocation33_spill] sm:$0xff] %v2352_v3  ;;  %585 = vmatpush.msrb.mxu0 %v2004_v5  ;;  %605 = vmatpush.msrb.mxu1 %v2009_v6 }
  0x29   :  { %3628 = vst [vmem:[#allocation34_spill] sm:$0xff] %v2359_v57  ;;  %625 = vmatpush.msrb.mxu2 %v2016_v7  ;;  %645 = vmatpush.msrb.mxu3 %v2021_v8 }
  0x2a   :  { %586 = vmatpush.msrb.mxu0 %v2026_v9  ;;  %606 = vmatpush.msrb.mxu1 %v2033_v10  ;;  %3629 = vst [vmem:[#allocation35_spill] sm:$0xff] %v2400_v49 }
  0x2b   :  { %626 = vmatpush.msrb.mxu2 %v2038_v11  ;;  %646 = vmatpush.msrb.mxu3 %v2043_v12 }
  0x2c   :  { %587 = vmatpush.msrb.mxu0 %v2050_v13  ;;  %607 = vmatpush.msrb.mxu1 %v2055_v14 }
  0x2d   :  { %627 = vmatpush.msrb.mxu2 %v2062_v15  ;;  %647 = vmatpush.msrb.mxu3 %v2067_v16 }
  0x2e   :  { %1739 = vset.pattern.permute.xlu1 %v3463_v58  ;;  %588 = vmatpush.msrb.mxu0 %v2074_v17 }
  0x2f   :  { %229 = vperm.xlu1 %1739, %v27_v60   ;;  %608 = vmatpush.msrb.mxu1 %v2079_v18  ;;  %v3631_v60 = vld [vmem:[#allocation26_spill] sm:$0xff] }
  0x30   :  { %628 = vmatpush.msrb.mxu2 %v2086_v19  ;;  %648 = vmatpush.msrb.mxu3 %v2091_v20 }
  0x31   :  { %589 = vmatpush.msrb.mxu0 %v2098_v21  ;;  %609 = vmatpush.msrb.mxu1 %v2103_v22 }
  0x32   :  { %629 = vmatpush.msrb.mxu2 %v2110_v23  ;;  %649 = vmatpush.msrb.mxu3 %v2115_v24 }
  0x33   :  { %590 = vmatpush.msrb.mxu0 %v2122_v25  ;;  %610 = vmatpush.msrb.mxu1 %v2127_v26 }
  0x34   :  { %630 = vmatpush.msrb.mxu2 %v2134_v27  ;;  %650 = vmatpush.msrb.mxu3 %v2139_v28 }
  0x35   :  { %591 = vmatpush.msrb.mxu0 %v2146_v29  ;;  %611 = vmatpush.msrb.mxu1 %v2151_v30 }
  0x36   :  { %631 = vmatpush.msrb.mxu2 %v2158_v31  ;;  %651 = vmatpush.msrb.mxu3 %v2163_v32 }
  0x37   :  { %1742 = vset.pattern.permute.xlu1 %v3630_v59  ;;  %592 = vmatpush.msrb.mxu0 %v2170_v33 }
  0x38   :  { %53 = vperm.xlu1 %1742, %v2400_v49   ;;  %612 = vmatpush.msrb.mxu1 %v2175_v34  ;;  %v3633_v49 = vld [vmem:[#allocation28_spill] sm:$0xff] }
  0x39   :  { %632 = vmatpush.msrb.mxu2 %v2182_v35  ;;  %652 = vmatpush.msrb.mxu3 %v2187_v36 }
  0x3a   :  { %593 = vmatpush.msrb.mxu0 %v2194_v37  ;;  %613 = vmatpush.msrb.mxu1 %v2199_v38 }
  0x3b   :  { %633 = vmatpush.msrb.mxu2 %v2206_v39  ;;  %653 = vmatpush.msrb.mxu3 %v2211_v40 }
  0x3c   :  { %594 = vmatpush.msrb.mxu0 %v2218_v41  ;;  %614 = vmatpush.msrb.mxu1 %v2223_v42 }
  0x3d   :  { %634 = vmatpush.msrb.mxu2 %v2230_v43  ;;  %654 = vmatpush.msrb.mxu3 %v2235_v44 }
  0x3e   :  { %595 = vmatpush.msrb.mxu0 %v2242_v45  ;;  %615 = vmatpush.msrb.mxu1 %v2247_v46 }
  0x3f   :  { %635 = vmatpush.msrb.mxu2 %v2254_v47  ;;  %655 = vmatpush.msrb.mxu3 %v2259_v48  ;;  %v3634_v48 = vld [vmem:[#allocation29_spill] sm:$0xff] }
  0x40   :  { %1744 = vset.pattern.permute.xlu1 %v3463_v58  ;;  %596 = vmatpush.msrb.mxu0 %v2269_v50  ;;  %v3632_v58 = vld [vmem:[#allocation27_spill] sm:$0xff] }
  0x41   :  { %616 = vmatpush.msrb.mxu1 %v2276_v51  ;;  %636 = vmatpush.msrb.mxu2 %v2281_v52 }
  0x42   :  { %656 = vmatpush.msrb.mxu3 %v2288_v53  ;;  %597 = vmatpush.msrb.mxu0 %v2293_v54 }
  0x43   :  { %617 = vmatpush.msrb.mxu1 %v2299_v55  ;;  %637 = vmatpush.msrb.mxu2 %v2304_v56 }
  0x44   :  { %657 = vmatpush.msrb.mxu3 %v3631_v60  ;;  %598 = vmatpush.msrb.mxu0 %v3632_v58 }
  0x45   :  { %618 = vmatpush.msrb.mxu1 %v3633_v49  ;;  %638 = vmatpush.msrb.mxu2 %v3634_v48 }
  0x46   :  { %658 = vmatpush.msrb.mxu3 %v2335_v61  ;;  %599 = vmatpush.msrb.mxu0 %v2340_v62 }
  0x47   :  { %619 = vmatpush.msrb.mxu1 %v2347_v63  ;;  %639 = vmatpush.msrb.mxu2 %v2352_v3 }
  0x48   :  { %659 = vmatpush.msrb.mxu3 %v2359_v57  ;;  %1740 = vset.pattern.permute.xlu2 %v3630_v59 }
  0x49   :  { %738 = vmatpush.msra.mxu0 %v1980_v0  ;;  %758 = vmatpush.msra.mxu1 %v1985_v1 }
  0x4a   :  { %778 = vmatpush.msra.mxu2 %v1990_v2  ;;  %798 = vmatpush.msra.mxu3 %v1999_v4 }
  0x4b   :  { %739 = vmatpush.msra.mxu0 %v2004_v5  ;;  %759 = vmatpush.msra.mxu1 %v2009_v6 }
  0x4c   :  { %779 = vmatpush.msra.mxu2 %v2016_v7  ;;  %799 = vmatpush.msra.mxu3 %v2021_v8 }
  0x4d   :  { %740 = vmatpush.msra.mxu0 %v2026_v9  ;;  %760 = vmatpush.msra.mxu1 %v2033_v10 }
  0x4e   :  { %780 = vmatpush.msra.mxu2 %v2038_v11  ;;  %800 = vmatpush.msra.mxu3 %v2043_v12 }
  0x4f   :  { %741 = vmatpush.msra.mxu0 %v2050_v13  ;;  %761 = vmatpush.msra.mxu1 %v2055_v14 }
  0x50   :  { %781 = vmatpush.msra.mxu2 %v2062_v15  ;;  %801 = vmatpush.msra.mxu3 %v2067_v16 }
  0x51   :  { %742 = vmatpush.msra.mxu0 %v2074_v17  ;;  %762 = vmatpush.msra.mxu1 %v2079_v18 }
  0x52   :  { %782 = vmatpush.msra.mxu2 %v2086_v19  ;;  %802 = vmatpush.msra.mxu3 %v2091_v20 }
  0x53   :  { %743 = vmatpush.msra.mxu0 %v2098_v21  ;;  %763 = vmatpush.msra.mxu1 %v2103_v22 }
  0x54   :  { %783 = vmatpush.msra.mxu2 %v2110_v23  ;;  %803 = vmatpush.msra.mxu3 %v2115_v24 }
  0x55   :  { %744 = vmatpush.msra.mxu0 %v2122_v25  ;;  %764 = vmatpush.msra.mxu1 %v2127_v26 }
  0x56   :  { %784 = vmatpush.msra.mxu2 %v2134_v27  ;;  %804 = vmatpush.msra.mxu3 %v2139_v28 }
  0x57   :  { %745 = vmatpush.msra.mxu0 %v2146_v29  ;;  %765 = vmatpush.msra.mxu1 %v2151_v30 }
  0x58   :  { %785 = vmatpush.msra.mxu2 %v2158_v31  ;;  %805 = vmatpush.msra.mxu3 %v2163_v32 }
  0x59   :  { %746 = vmatpush.msra.mxu0 %v2170_v33  ;;  %766 = vmatpush.msra.mxu1 %v2175_v34 }
  0x5a   :  { %786 = vmatpush.msra.mxu2 %v2182_v35  ;;  %806 = vmatpush.msra.mxu3 %v2187_v36 }
  0x5b   :  { %747 = vmatpush.msra.mxu0 %v2194_v37  ;;  %767 = vmatpush.msra.mxu1 %v2199_v38  ;;  %v3635_v37 = vld [vmem:[#allocation18_spill] sm:$0xff] }
  0x5c   :  { %787 = vmatpush.msra.mxu2 %v2206_v39  ;;  %807 = vmatpush.msra.mxu3 %v2211_v40 }
  0x5d   :  { %748 = vmatpush.msra.mxu0 %v2218_v41  ;;  %768 = vmatpush.msra.mxu1 %v2223_v42 }
  0x5e   :  { %788 = vmatpush.msra.mxu2 %v2230_v43  ;;  %808 = vmatpush.msra.mxu3 %v2235_v44 }
  0x5f   :  { %749 = vmatpush.msra.mxu0 %v2242_v45  ;;  %769 = vmatpush.msra.mxu1 %v2247_v46 }
  0x60   :  { %789 = vmatpush.msra.mxu2 %v2254_v47  ;;  %809 = vmatpush.msra.mxu3 %v3635_v37 }
  0x61   :  { %750 = vmatpush.msra.mxu0 %v2269_v50  ;;  %770 = vmatpush.msra.mxu1 %v2276_v51 }
  0x62   :  { %790 = vmatpush.msra.mxu2 %v2281_v52  ;;  %810 = vmatpush.msra.mxu3 %v2288_v53 }
  0x63   :  { %751 = vmatpush.msra.mxu0 %v2293_v54  ;;  %771 = vmatpush.msra.mxu1 %v2299_v55 }
  0x64   :  { %791 = vmatpush.msra.mxu2 %v2304_v56  ;;  %811 = vmatpush.msra.mxu3 %v3631_v60  ;;  %v1708_v60 = vld [vmem:[%s3450_s1 + $0x1] ss:$2 sm:$0xf] }
  0x65   :  { %752 = vmatpush.msra.mxu0 %v3632_v58  ;;  %772 = vmatpush.msra.mxu1 %v3633_v49  ;;  %v30_v58 = vld [vmem:[%s3448_s0 + $0x20] sm:$0xff]  ;;  %v3636_v49 = vmov 1   ;;  %v2547_v52 = vperm.slane %v1708_v60, 1 }
  0x66   :  { %792 = vmatpush.msra.mxu2 %v3634_v48  ;;  %812 = vmatpush.msra.mxu3 %v2335_v61  ;;  %v34_v48 = vld [vmem:[%s3451_s2] sm:$0xf] }
  0x67   :  { %753 = vmatpush.msra.mxu0 %v2340_v62  ;;  %773 = vmatpush.msra.mxu1 %v2347_v63  ;;  %v2516_v62 = vld [vmem:[%s3448_s0 + $0x28] sm:$0xff]  ;;  %v2539_v56 = vperm.slane %v34_v48, 0  ;;  %v2545_v53 = vperm.slane %v34_v48, 1  ;;  %3643 = vst [vmem:[#allocation42_spill] sm:$0xff] %v2547_v52 }
  0x68   :  { %793 = vmatpush.msra.mxu2 %v2352_v3  ;;  %813 = vmatpush.msra.mxu3 %v2359_v57  ;;  %v2523_v57 = vld [vmem:[%s3448_s0 + $0x38] sm:$0xff] }
  0x69   :  { %1743 = vset.pattern.permute.xlu0 %v3630_v59  ;;  %241 = vperm.xlu1 %1744, %v30_v58   ;;  %3637 = vst [vmem:[#allocation36_spill] sm:$0xff] %v2523_v57 }
  0x6a   :  { %58 = vperm.xlu0 %1743, %v30_v58   ;;  %v35_v58 = vld [vmem:[%s3450_s1] ss:$2 sm:$0xf]  ;;  %3640 = vst [vmem:[#allocation39_spill] sm:$0xff] %v2539_v56 }
  0x6b   :  { %v2529_v63 = vperm.slane %v35_v58, 0  ;;  %v2531_v61 = vperm.slane %v35_v58, 1  ;;  %3642 = vst [vmem:[#allocation41_spill] sm:$0xff] %v2545_v53  ;;  %v2549_v50 = vperm.slane %v35_v58, 3 }
  0x6d   :  { %3638 = vst [vmem:[#allocation37_spill] sm:$0xff] %v2529_v63 }
  0x6e   :  { %3639 = vst [vmem:[#allocation38_spill] sm:$0xff] %v2531_v61 }
  0x6f   :  { %3644 = vst [vmem:[#allocation43_spill] sm:$0xff] %v2549_v50 }
  0x71   :  { %245 = vperm.xlu1 %1744, %v2516_v62  }
  0x72   :  { %1746 = vset.pattern.permute.xlu0 %v3636_v49 }
  0x79   :  { %1747 = vset.pattern.permute.xlu1 %v3630_v59 }
  0x7a   :  { %73 = vperm.xlu1 %1747, %v2523_v57   ;;  %v2541_v57 = vperm.slane %v1708_v60, 0 }
  0x7c   :  { %3641 = vst [vmem:[#allocation40_spill] sm:$0xff] %v2541_v57 }
  0x8c   :  { %v39_v3 = vpop.permute.xlu0 %38 }
  0x8d   :  { %v85_v55 = vmul.f32 %v2529_v63, %v39_v3  ;;  %v86_v54 = vmul.f32 %v2531_v61, %v39_v3  ;;  %v88_v44 = vmul.f32 %v2549_v50, %v39_v3  ;;  %v2556_v63 = vperm.slane %v34_v48, 3 }
  0x8e   :  { %v2558_v61 = vperm.slane %v1708_v60, 3 }
  0x8f   :  { %v126_v37 = vadd.f32 %v2539_v56, %v85_v55  ;;  %v127_v46 = vadd.f32 %v2545_v53, %v86_v54  ;;  %3645 = vst [vmem:[#allocation44_spill] sm:$0xff] %v2556_v63  ;;  %v129_v55 = vadd.f32 %v2556_v63, %v88_v44 }
  0x90   :  { %3646 = vst [vmem:[#allocation45_spill] sm:$0xff] %v2558_v61 }
  0x98   :  { %v226_v51 = vpop.permute.xlu0 %225 }
  0x99   :  { %v265_v47 = vmul.f32 %v2541_v57, %v226_v51  ;;  %v266_v45 = vmul.f32 %v2547_v52, %v226_v51  ;;  %v268_v57 = vmul.f32 %v2558_v61, %v226_v51  ;;  %v2562_v52 = vperm.slane %v35_v58, 2 }
  0x9b   :  { %v297_v43 = vadd.f32 %v265_v47, %v126_v37  ;;  %v298_v42 = vadd.f32 %v266_v45, %v127_v46  ;;  %3647 = vst [vmem:[#allocation46_spill] sm:$0xff] %v2562_v52  ;;  %v300_v50 = vadd.f32 %v268_v57, %v129_v55  ;;  %v87_v37 = vmul.f32 %v2562_v52, %v39_v3  ;;  %v28_v3 = vld [vmem:[%s3448_s0 + $0x10] sm:$0xff] }
  0x9c   :  { %v2565_v45 = vperm.slane %v34_v48, 2  ;;  %v2567_v46 = vperm.slane %v1708_v60, 2  ;;  %48 = vperm.xlu2 %1740, %v28_v3  }
  0x9e   :  { %3648 = vst [vmem:[#allocation47_spill] sm:$0xff] %v2565_v45  ;;  %v267_v44 = vmul.f32 %v2567_v46, %v226_v51 }
  0x9f   :  { %3649 = vst [vmem:[#allocation48_spill] sm:$0xff] %v2567_v46 }
  0xa1   :  { %v448_v41 = vpop.f32.mrf.mxu0  ;;  %v468_v40 = vpop.f32.mrf.mxu1 }
  0xa2   :  { %v511_v39 = vadd.f32 %v448_v41, %v297_v43  ;;  %v512_v38 = vadd.f32 %v468_v40, %v298_v42 }
  0xa4   :  { %v1709_v56 = vmul.f32 -1.442695, %v511_v39  ;;  %v1710_v54 = vmul.f32 -1.442695, %v512_v38  ;;  %v128_v38 = vadd.f32 %v2565_v45, %v87_v37  ;;  %1741 = vset.pattern.permute.xlu2 %v3636_v49 }
  0xa5   :  { %233 = vperm.xlu2 %1741, %v28_v3  }
  0xa6   :  { %1750 = vpow2.f32 %v1709_v56 }
  0xa7   :  { %1752 = vpow2.f32 %v1710_v54 }
  0xa8   :  { %v508_v53 = vpop.f32.mrf.mxu3  ;;  %v488_v47 = vpop.f32.mrf.mxu2 }
  0xa9   :  { %v514_v36 = vadd.f32 %v508_v53, %v300_v50  ;;  %v299_v50 = vadd.f32 %v267_v44, %v128_v38 }
  0xab   :  { %v1711_v40 = vmul.f32 -1.442695, %v514_v36  ;;  %v513_v56 = vadd.f32 %v488_v47, %v299_v50 }
  0xac   :  { %v1751_v41 = vpop.eup %1750 }
  0xad   :  { %v1753_v42 = vpop.eup %1752  ;;  %v518_v43 = vadd.f32 1.0, %v1751_v41  ;;  %1754 = vpow2.f32 %v1711_v40 }
  0xae   :  { %v537_v39 = vadd.f32 1.0, %v1753_v42 }
  0xaf   :  { %1756 = vrcp.f32 %v518_v43  ;;  %v530_v37 = vand.u32 2147483648, %v518_v43  ;;  %v528_v41 = vand.u32 2147483647, %v518_v43  ;;  %vm524_vm2 = vweird.f32 %v518_v43 }
  0xb0   :  { %1758 = vrcp.f32 %v537_v39  ;;  %v549_v51 = vand.u32 2147483648, %v537_v39  ;;  %v547_v38 = vand.u32 2147483647, %v537_v39  ;;  %vm543_vm3 = vweird.f32 %v537_v39 }
  0xb1   :  { %vm529_vm5 = vcmp.eq.f32.partialorder %v528_v41, 8.507059e+37 }
  0xb2   :  { %vm548_vm7 = vcmp.eq.f32.partialorder %v547_v38, 8.507059e+37  ;;  %v3684_v38 = vmov 1  }
  0xb3   :  { %v1755_v48 = vpop.eup %1754 }
  0xb4   :  { %v557_v36 = vadd.f32 1.0, %v1755_v48  ;;  %v531_v48 = vor.u32 1.1754944e-38, %v530_v37 }
  0xb5   :  { %v1757_v53 = vpop.eup %1756 }
  0xb6   :  { %v1759_v57 = vpop.eup %1758  ;;  %v520_v60 = vmul.f32 %v1757_v53, %v518_v43  ;;  %1760 = vrcp.f32 %v557_v36  ;;  %vm525_vm0 = vweird.f32 %v1757_v53  ;;  %vm563_vm9 = vweird.f32 %v557_v36 }
  0xb7   :  { %v539_v58 = vmul.f32 %v1759_v57, %v537_v39  ;;  %1762 = vtanh.f32 %v513_v56  ;;  %vm544_vm1 = vweird.f32 %v1759_v57  ;;  %vm526_vm4 = vmor %vm524_vm2, %vm525_vm0  ;;  %v567_v37 = vand.u32 2147483647, %v557_v36 }
  0xb8   :  { %v521_v55 = vsub.f32 1.0, %v520_v60  ;;  %vm545_vm6 = vmor %vm543_vm3, %vm544_vm1 }
  0xb9   :  { %v540_v54 = vsub.f32 1.0, %v539_v58  ;;  %v550_v58 = vor.u32 1.1754944e-38, %v549_v51  ;;  %vm568_vm11 = vcmp.eq.f32.partialorder %v567_v37, 8.507059e+37 }
  0xba   :  { %v522_v40 = vmul.f32 %v1757_v53, %v521_v55 }
  0xbb   :  { %v541_v42 = vmul.f32 %v1759_v57, %v540_v54 }
  0xbc   :  { %v1761_v44 = vpop.eup %1760  ;;  %v523_v47 = vadd.f32 %v1757_v53, %v522_v40  ;;  %v3650_v40 = vld [vmem:[#allocation35_spill] sm:$0xff] }
  0xbd   :  { %v542_v50 = vadd.f32 %v1759_v57, %v541_v42  ;;  %v559_v60 = vmul.f32 %v1761_v44, %v557_v36  ;;  %v1763_v61 = vpop.eup %1762  ;;  %237 = vperm.xlu2 %1741, %v3650_v40   ;;  %vm564_vm8 = vweird.f32 %v1761_v44  ;;  %v3691_v40 = vld [vmem:[#allocation40_spill] sm:$0xff] }
  0xbe   :  { %v527_v56 = vsel %vm526_vm4, %v1757_v53, %v523_v47  ;;  %v569_v53 = vand.u32 2147483648, %v557_v36  ;;  %vm565_vm10 = vmor %vm563_vm9, %vm564_vm8  ;;  %v32_v36 = vld [vmem:[%s3448_s0 + $0x30] sm:$0xff] }
  0xbf   :  { %v532_v55 = vsel %vm529_vm5, %v531_v48, %v527_v56  ;;  %v546_v63 = vsel %vm545_vm6, %v1759_v57, %v542_v50  ;;  %v560_v3 = vsub.f32 1.0, %v559_v60  ;;  %249 = vperm.xlu0 %1746, %v32_v36   ;;  %v3688_v50 = vld [vmem:[#allocation37_spill] sm:$0xff] }
  0xc0   :  { %v551_v54 = vsel %vm548_vm7, %v550_v58, %v546_v63  ;;  %v574_v49 = vmul.f32 %v1763_v61, %v532_v55  ;;  %v570_v57 = vor.u32 1.1754944e-38, %v569_v53  ;;  %v2582_v61 = vld [vmem:[%s3449_s4] ss:$0 sm:$0xff]  ;;  %v3692_v53 = vld [vmem:[#allocation41_spill] sm:$0xff] }
  0xc1   :  { %v573_v46 = vmul.f32 0.0, %v551_v54  ;;  %v561_v45 = vmul.f32 %v1761_v44, %v560_v3  ;;  %v3689_v58 = vld [vmem:[#allocation38_spill] sm:$0xff]  ;;  %v3690_v3 = vld [vmem:[#allocation39_spill] sm:$0xff] }
  0xc3   :  { %v2576_v43 = vadd.f32 %v574_v49, %v573_v46  ;;  %v562_v39 = vadd.f32 %v1761_v44, %v561_v45 }
  0xc5   :  { %1764 = vtanh.f32 %v2576_v43  ;;  %v566_v51 = vsel %vm565_vm10, %v1761_v44, %v562_v39  ;;  %1745 = vset.pattern.permute.xlu2 %v3630_v59  ;;  %v3685_v44 = vld [vmem:[#allocation36_spill] sm:$0xff] }
  0xc6   :  { %v571_v49 = vsel %vm568_vm11, %v570_v57, %v566_v51  ;;  %63 = vperm.xlu2 %1745, %v2516_v62   ;;  %v3682_v62 = vld [vmem:[#allocation48_spill] sm:$0xff]  ;;  %v3693_v51 = vld [vmem:[#allocation42_spill] sm:$0xff] }
  0xcb   :  { %v1765_v63 = vpop.eup %1764 }
  0xcc   :  { %v577_v45 = vmul.f32 %v1765_v63, %v571_v49  ;;  %v3694_v63 = vld [vmem:[#allocation43_spill] sm:$0xff] }
  0xce   :  { %600 = vmatmul.f32.vlgmr.msrb.gmra.mxu0 %v577_v45  ;;  %620 = vmatmul.f32.vlgmr.msrb.gmra.mxu1 %v577_v45  ;;  %v1671_v46 = vmul.f32 %v2582_v61, %v577_v45 }
  0xcf   :  { %640 = vmatmul.f32.vlgmr.msrb.gmra.mxu2 %v577_v45  ;;  %660 = vmatmul.f32.vlgmr.msrb.gmra.mxu3 %v577_v45 }
  0xd0   :  { %1679 = vadd.xlane.f32.xlu1 %v1671_v46  ;;  %892 = vmatpush.msrb.mxu0 %v1980_v0  ;;  %v3651_v0 = vld [vmem:[#allocation6_spill] sm:$0xff] }
  0xd1   :  { %912 = vmatpush.msrb.mxu1 %v1985_v1  ;;  %932 = vmatpush.msrb.mxu2 %v1990_v2  ;;  %v3652_v1 = vld [vmem:[#allocation7_spill] sm:$0xff]  ;;  %v3653_v2 = vld [vmem:[#allocation8_spill] sm:$0xff] }
  0xd2   :  { %952 = vmatpush.msrb.mxu3 %v1999_v4  ;;  %893 = vmatpush.msrb.mxu0 %v2004_v5  ;;  %v3654_v4 = vld [vmem:[#allocation9_spill] sm:$0xff]  ;;  %v3655_v5 = vld [vmem:[#allocation10_spill] sm:$0xff] }
  0xd3   :  { %913 = vmatpush.msrb.mxu1 %v2009_v6  ;;  %933 = vmatpush.msrb.mxu2 %v2016_v7  ;;  %v3656_v6 = vld [vmem:[#allocation11_spill] sm:$0xff]  ;;  %v3657_v7 = vld [vmem:[#allocation12_spill] sm:$0xff] }
  0xd4   :  { %953 = vmatpush.msrb.mxu3 %v2021_v8  ;;  %894 = vmatpush.msrb.mxu0 %v2026_v9  ;;  %v3658_v8 = vld [vmem:[#allocation13_spill] sm:$0xff]  ;;  %v3659_v9 = vld [vmem:[#allocation14_spill] sm:$0xff] }
  0xd5   :  { %914 = vmatpush.msrb.mxu1 %v2033_v10  ;;  %934 = vmatpush.msrb.mxu2 %v2038_v11  ;;  %v3660_v10 = vld [vmem:[#allocation15_spill] sm:$0xff]  ;;  %v3661_v11 = vld [vmem:[#allocation16_spill] sm:$0xff] }
  0xd6   :  { %954 = vmatpush.msrb.mxu3 %v2043_v12  ;;  %895 = vmatpush.msrb.mxu0 %v2050_v13  ;;  %v3662_v12 = vld [vmem:[#allocation17_spill] sm:$0xff]  ;;  %v3663_v13 = vld [vmem:[#allocation18_spill] sm:$0xff] }
  0xd7   :  { %915 = vmatpush.msrb.mxu1 %v2055_v14  ;;  %935 = vmatpush.msrb.mxu2 %v2062_v15  ;;  %v3664_v14 = vld [vmem:[#allocation19_spill] sm:$0xff]  ;;  %v3665_v15 = vld [vmem:[#allocation20_spill] sm:$0xff] }
  0xd8   :  { %955 = vmatpush.msrb.mxu3 %v2067_v16  ;;  %896 = vmatpush.msrb.mxu0 %v2074_v17  ;;  %v3666_v16 = vld [vmem:[#allocation21_spill] sm:$0xff]  ;;  %v3667_v17 = vld [vmem:[#allocation22_spill] sm:$0xff] }
  0xd9   :  { %916 = vmatpush.msrb.mxu1 %v2079_v18  ;;  %936 = vmatpush.msrb.mxu2 %v2086_v19  ;;  %v3668_v18 = vld [vmem:[#allocation23_spill] sm:$0xff]  ;;  %v3669_v19 = vld [vmem:[#allocation24_spill] sm:$0xff] }
  0xda   :  { %956 = vmatpush.msrb.mxu3 %v2091_v20  ;;  %897 = vmatpush.msrb.mxu0 %v2098_v21  ;;  %v3670_v20 = vld [vmem:[#allocation25_spill] sm:$0xff]  ;;  %v3671_v21 = vld [vmem:[#allocation26_spill] sm:$0xff] }
  0xdb   :  { %917 = vmatpush.msrb.mxu1 %v2103_v22  ;;  %937 = vmatpush.msrb.mxu2 %v2110_v23  ;;  %v3672_v22 = vld [vmem:[#allocation27_spill] sm:$0xff]  ;;  %v3673_v23 = vld [vmem:[#allocation28_spill] sm:$0xff] }
  0xdc   :  { %957 = vmatpush.msrb.mxu3 %v2115_v24  ;;  %898 = vmatpush.msrb.mxu0 %v2122_v25  ;;  %v3674_v24 = vld [vmem:[#allocation29_spill] sm:$0xff]  ;;  %v3675_v25 = vld [vmem:[#allocation30_spill] sm:$0xff] }
  0xdd   :  { %918 = vmatpush.msrb.mxu1 %v2127_v26  ;;  %938 = vmatpush.msrb.mxu2 %v2134_v27  ;;  %v3676_v26 = vld [vmem:[#allocation31_spill] sm:$0xff]  ;;  %v3677_v27 = vld [vmem:[#allocation32_spill] sm:$0xff] }
  0xde   :  { %958 = vmatpush.msrb.mxu3 %v2139_v28  ;;  %899 = vmatpush.msrb.mxu0 %v2146_v29  ;;  %v3678_v28 = vld [vmem:[#allocation33_spill] sm:$0xff]  ;;  %v3679_v29 = vld [vmem:[#allocation34_spill] sm:$0xff] }
  0xdf   :  { %919 = vmatpush.msrb.mxu1 %v2151_v30  ;;  %939 = vmatpush.msrb.mxu2 %v2158_v31  ;;  %v44_v30 = vpop.permute.xlu1 %43 }
  0xe0   :  { %959 = vmatpush.msrb.mxu3 %v2163_v32  ;;  %900 = vmatpush.msrb.mxu0 %v2170_v33  ;;  %v91_v33 = vmul.f32 %v2562_v52, %v44_v30  ;;  %v89_v60 = vmul.f32 %v3688_v50, %v44_v30  ;;  %v90_v56 = vmul.f32 %v3689_v58, %v44_v30 }
  0xe1   :  { %920 = vmatpush.msrb.mxu1 %v2175_v34  ;;  %940 = vmatpush.msrb.mxu2 %v2182_v35  ;;  %v3681_v34 = vld [vmem:[#allocation47_spill] sm:$0xff]  ;;  %v92_v49 = vmul.f32 %v3694_v63, %v44_v30 }
  0xe2   :  { %960 = vmatpush.msrb.mxu3 %v3651_v0  ;;  %901 = vmatpush.msrb.mxu0 %v3652_v1  ;;  %v132_v35 = vadd.f32 %v3681_v34, %v91_v33  ;;  %v130_v54 = vadd.f32 %v3690_v3, %v89_v60  ;;  %v131_v37 = vadd.f32 %v3692_v53, %v90_v56 }
  0xe3   :  { %921 = vmatpush.msrb.mxu1 %v3653_v2  ;;  %941 = vmatpush.msrb.mxu2 %v3654_v4 }
  0xe4   :  { %961 = vmatpush.msrb.mxu3 %v3655_v5  ;;  %902 = vmatpush.msrb.mxu0 %v3656_v6  ;;  %v3695_v5 = vld [vmem:[#allocation44_spill] sm:$0xff] }
  0xe5   :  { %922 = vmatpush.msrb.mxu1 %v3657_v7  ;;  %942 = vmatpush.msrb.mxu2 %v3658_v8  ;;  %v133_v6 = vadd.f32 %v3695_v5, %v92_v49  ;;  %v3696_v7 = vld [vmem:[#allocation45_spill] sm:$0xff] }
  0xe6   :  { %962 = vmatpush.msrb.mxu3 %v3659_v9  ;;  %903 = vmatpush.msrb.mxu0 %v3660_v10 }
  0xe7   :  { %923 = vmatpush.msrb.mxu1 %v3661_v11  ;;  %943 = vmatpush.msrb.mxu2 %v3662_v12  ;;  %v230_v31 = vpop.permute.xlu1 %229 }
  0xe8   :  { %963 = vmatpush.msrb.mxu3 %v3663_v13  ;;  %904 = vmatpush.msrb.mxu0 %v3664_v14  ;;  %v271_v59 = vmul.f32 %v3682_v62, %v230_v31  ;;  %v269_v39 = vmul.f32 %v3691_v40, %v230_v31  ;;  %v270_v57 = vmul.f32 %v3693_v51, %v230_v31 }
  0xe9   :  { %924 = vmatpush.msrb.mxu1 %v3665_v15  ;;  %944 = vmatpush.msrb.mxu2 %v3666_v16  ;;  %v272_v8 = vmul.f32 %v3696_v7, %v230_v31 }
  0xea   :  { %964 = vmatpush.msrb.mxu3 %v3667_v17  ;;  %905 = vmatpush.msrb.mxu0 %v3668_v18  ;;  %v303_v42 = vadd.f32 %v271_v59, %v132_v35  ;;  %v301_v45 = vadd.f32 %v269_v39, %v130_v54  ;;  %v302_v46 = vadd.f32 %v270_v57, %v131_v37 }
  0xeb   :  { %925 = vmatpush.msrb.mxu1 %v3669_v19  ;;  %945 = vmatpush.msrb.mxu2 %v3670_v20  ;;  %v304_v11 = vadd.f32 %v272_v8, %v133_v6 }
  0xec   :  { %965 = vmatpush.msrb.mxu3 %v3671_v21  ;;  %906 = vmatpush.msrb.mxu0 %v3672_v22 }
  0xed   :  { %926 = vmatpush.msrb.mxu1 %v3673_v23  ;;  %946 = vmatpush.msrb.mxu2 %v3674_v24 }
  0xee   :  { %966 = vmatpush.msrb.mxu3 %v3675_v25  ;;  %907 = vmatpush.msrb.mxu0 %v3676_v26 }
  0xef   :  { %927 = vmatpush.msrb.mxu1 %v3677_v27  ;;  %947 = vmatpush.msrb.mxu2 %v3678_v28  ;;  %v2651_v32 = vpop.permute.xlu1 %53 }
  0xf0   :  { %967 = vmatpush.msrb.mxu3 %v3679_v29  ;;  %3680 = vst [vmem:[#allocation35_spill] sm:$0xff] %v2651_v32  ;;  %68 = vperm.xlu2 %1745, %v32_v36   ;;  %v2982_v32 = vld [vmem:[%s3447_s3 + $0x68] sm:$0xff] }
  0xf1   :  { %3710 = vst [vmem:[#allocation22_spill] sm:$0xff] %v2982_v32 }
  0xf7   :  { %v2659_v41 = vpop.permute.xlu1 %241 }
  0xf8   :  { %3683 = vst [vmem:[#allocation6_spill] sm:$0xff] %v2659_v41  ;;  %1748 = vset.pattern.permute.xlu2 %v3684_v38  ;;  %v2976_v41 = vld [vmem:[%s3447_s3 + $0x60] sm:$0xff] }
  0xf9   :  { %253 = vperm.xlu2 %1748, %v3685_v44   ;;  %3709 = vst [vmem:[#allocation21_spill] sm:$0xff] %v2976_v41 }
  0xff   :  { %v2663_v47 = vpop.permute.xlu1 %245 }
 0x100   :  { %3686 = vst [vmem:[#allocation7_spill] sm:$0xff] %v2663_v47  ;;  %v2970_v47 = vld [vmem:[%s3447_s3 + $0x98] sm:$0xff] }
 0x101   :  { %3708 = vst [vmem:[#allocation20_spill] sm:$0xff] %v2970_v47 }
 0x107   :  { %v2665_v48 = vpop.permute.xlu1 %73 }
 0x108   :  { %3687 = vst [vmem:[#allocation8_spill] sm:$0xff] %v2665_v48  ;;  %v2964_v48 = vld [vmem:[%s3447_s3 + $0x90] sm:$0xff] }
 0x109   :  { %3707 = vst [vmem:[#allocation19_spill] sm:$0xff] %v2964_v48 }
 0x143   :  { %v1680_v55 = vpop.xlane.xlu1 %1679 }
 0x144   :  { %1696 = vst.msk [vmem:[%s3452_s5] sm:$0xff] %vm1695_vm12, %v1680_v55 }
 0x14b   :  { %v601_v0 = vpop.f32.mrf.mxu0  ;;  %v621_v1 = vpop.f32.mrf.mxu1 }
 0x14c   :  { %v664_v2 = vadd.f32 %v601_v0, %v301_v45  ;;  %v665_v4 = vadd.f32 %v621_v1, %v302_v46 }
 0x14e   :  { %v1712_v9 = vmul.f32 -1.442695, %v664_v2  ;;  %v1713_v10 = vmul.f32 -1.442695, %v665_v4 }
 0x150   :  { %1766 = vpow2.f32 %v1712_v9 }
 0x151   :  { %1768 = vpow2.f32 %v1713_v10 }
 0x152   :  { %v661_v12 = vpop.f32.mrf.mxu3  ;;  %v641_v19 = vpop.f32.mrf.mxu2 }
 0x153   :  { %v667_v13 = vadd.f32 %v661_v12, %v304_v11  ;;  %v666_v23 = vadd.f32 %v641_v19, %v303_v42  ;;  %v2724_v19 = vld [vmem:[%s3447_s3 + $0x1d0] sm:$0xff] }
 0x155   :  { %v1714_v14 = vmul.f32 -1.442695, %v667_v13  ;;  %v2688_v13 = vld [vmem:[%s3447_s3 + $0x1e0] sm:$0xff] }
 0x156   :  { %v1767_v15 = vpop.eup %1766 }
 0x157   :  { %v1769_v16 = vpop.eup %1768  ;;  %v671_v17 = vadd.f32 1.0, %v1767_v15  ;;  %1770 = vpow2.f32 %v1714_v14  ;;  %v2694_v14 = vld [vmem:[%s3447_s3 + $0x1e8] sm:$0xff]  ;;  %v2700_v15 = vld [vmem:[%s3447_s3 + $0x1f0] sm:$0xff] }
 0x158   :  { %v690_v18 = vadd.f32 1.0, %v1769_v16  ;;  %v2706_v16 = vld [vmem:[%s3447_s3 + $0x1f8] sm:$0xff] }
 0x159   :  { %1772 = vrcp.f32 %v671_v17  ;;  %v683_v29 = vand.u32 2147483648, %v671_v17  ;;  %v681_v33 = vand.u32 2147483647, %v671_v17  ;;  %vm677_vm15 = vweird.f32 %v671_v17 }
 0x15a   :  { %1774 = vrcp.f32 %v690_v18  ;;  %v702_v30 = vand.u32 2147483648, %v690_v18  ;;  %v700_v59 = vand.u32 2147483647, %v690_v18  ;;  %vm696_vm0 = vweird.f32 %v690_v18 }
 0x15b   :  { %v684_v42 = vor.u32 1.1754944e-38, %v683_v29  ;;  %vm682_vm3 = vcmp.eq.f32.partialorder %v681_v33, 8.507059e+37  ;;  %v2784_v29 = vld [vmem:[%s3447_s3 + $0x160] sm:$0xff]  ;;  %v2802_v33 = vld [vmem:[%s3447_s3 + $0x178] sm:$0xff] }
 0x15c   :  { %v703_v56 = vor.u32 1.1754944e-38, %v702_v30  ;;  %vm701_vm4 = vcmp.eq.f32.partialorder %v700_v59, 8.507059e+37  ;;  %v2790_v30 = vld [vmem:[%s3447_s3 + $0x168] sm:$0xff] }
 0x15d   :  { %v1771_v20 = vpop.eup %1770  ;;  %v2814_v59 = vld [vmem:[%s3447_s3 + $0x148] sm:$0xff] }
 0x15e   :  { %v710_v21 = vadd.f32 1.0, %v1771_v20  ;;  %v2730_v20 = vld [vmem:[%s3447_s3 + $0x1d8] sm:$0xff] }
 0x15f   :  { %v1773_v22 = vpop.eup %1772 }
 0x160   :  { %v1775_v24 = vpop.eup %1774  ;;  %v673_v25 = vmul.f32 %v1773_v22, %v671_v17  ;;  %1776 = vrcp.f32 %v710_v21  ;;  %vm678_vm13 = vweird.f32 %v1773_v22  ;;  %v722_v4 = vand.u32 2147483648, %v710_v21  ;;  %v2712_v17 = vld [vmem:[%s3447_s3 + $0x1c0] sm:$0xff] }
 0x161   :  { %v692_v26 = vmul.f32 %v1775_v24, %v690_v18  ;;  %1778 = vtanh.f32 %v666_v23  ;;  %vm697_vm14 = vweird.f32 %v1775_v24  ;;  %vm679_vm1 = vmor %vm677_vm15, %vm678_vm13  ;;  %vm716_vm6 = vweird.f32 %v710_v21  ;;  %v2718_v18 = vld [vmem:[%s3447_s3 + $0x1c8] sm:$0xff]  ;;  %v2748_v23 = vld [vmem:[%s3447_s3 + $0x1b0] sm:$0xff] }
 0x162   :  { %v674_v27 = vsub.f32 1.0, %v673_v25  ;;  %vm698_vm2 = vmor %vm696_vm0, %vm697_vm14  ;;  %v720_v6 = vand.u32 2147483647, %v710_v21  ;;  %v723_v9 = vor.u32 1.1754944e-38, %v722_v4  ;;  %v2760_v25 = vld [vmem:[%s3447_s3 + $0x180] sm:$0xff]  ;;  %v2916_v4 = vld [vmem:[%s3447_s3 + $0xd0] sm:$0xff] }
 0x163   :  { %v693_v28 = vsub.f32 1.0, %v692_v26  ;;  %v2766_v26 = vld [vmem:[%s3447_s3 + $0x188] sm:$0xff]  ;;  %3699 = vst [vmem:[#allocation11_spill] sm:$0xff] %v2916_v4 }
 0x164   :  { %v675_v31 = vmul.f32 %v1773_v22, %v674_v27  ;;  %vm721_vm8 = vcmp.eq.f32.partialorder %v720_v6, 8.507059e+37  ;;  %v2772_v27 = vld [vmem:[%s3447_s3 + $0x190] sm:$0xff]  ;;  %v2922_v6 = vld [vmem:[%s3447_s3 + $0xd8] sm:$0xff] }
 0x165   :  { %v694_v35 = vmul.f32 %v1775_v24, %v693_v28  ;;  %v2778_v28 = vld [vmem:[%s3447_s3 + $0x198] sm:$0xff]  ;;  %3700 = vst [vmem:[#allocation12_spill] sm:$0xff] %v2922_v6 }
 0x166   :  { %v1777_v36 = vpop.eup %1776  ;;  %v676_v38 = vadd.f32 %v1773_v22, %v675_v31  ;;  %v2796_v31 = vld [vmem:[%s3447_s3 + $0x170] sm:$0xff] }
 0x167   :  { %v695_v44 = vadd.f32 %v1775_v24, %v694_v35  ;;  %v712_v60 = vmul.f32 %v1777_v36, %v710_v21  ;;  %v1779_v54 = vpop.eup %1778  ;;  %vm717_vm5 = vweird.f32 %v1777_v36  ;;  %v2736_v21 = vld [vmem:[%s3447_s3 + $0x1a0] sm:$0xff] }
 0x168   :  { %v680_v55 = vsel %vm679_vm1, %v1773_v22, %v676_v38  ;;  %vm718_vm7 = vmor %vm716_vm6, %vm717_vm5  ;;  %v2742_v22 = vld [vmem:[%s3447_s3 + $0x1a8] sm:$0xff]  ;;  %v2808_v35 = vld [vmem:[%s3447_s3 + $0x140] sm:$0xff] }
 0x169   :  { %v685_v39 = vsel %vm682_vm3, %v684_v42, %v680_v55  ;;  %v699_v37 = vsel %vm698_vm2, %v1775_v24, %v695_v44  ;;  %v713_v57 = vsub.f32 1.0, %v712_v60  ;;  %v2754_v24 = vld [vmem:[%s3447_s3 + $0x1b8] sm:$0xff]  ;;  %v2832_v42 = vld [vmem:[%s3447_s3 + $0x120] sm:$0xff]  ;;  %v2838_v44 = vld [vmem:[%s3447_s3 + $0x128] sm:$0xff] }
 0x16a   :  { %v704_v49 = vsel %vm701_vm4, %v703_v56, %v699_v37  ;;  %v727_v45 = vmul.f32 %v1779_v54, %v685_v39  ;;  %v2826_v38 = vld [vmem:[%s3447_s3 + $0x158] sm:$0xff]  ;;  %v2844_v60 = vld [vmem:[%s3447_s3 + $0x130] sm:$0xff]  ;;  %v2856_v55 = vld [vmem:[%s3447_s3 + $0x100] sm:$0xff] }
 0x16b   :  { %v726_v46 = vmul.f32 %v704_v49, %v2576_v43  ;;  %v714_v0 = vmul.f32 %v1777_v36, %v713_v57  ;;  %v2850_v56 = vld [vmem:[%s3447_s3 + $0x138] sm:$0xff]  ;;  %v2862_v54 = vld [vmem:[%s3447_s3 + $0x108] sm:$0xff]  ;;  %v2868_v39 = vld [vmem:[%s3447_s3 + $0x110] sm:$0xff] }
 0x16c   :  { %v2874_v37 = vld [vmem:[%s3447_s3 + $0x118] sm:$0xff]  ;;  %v2880_v57 = vld [vmem:[%s3447_s3 + $0xe0] sm:$0xff]  ;;  %v2886_v49 = vld [vmem:[%s3447_s3 + $0xe8] sm:$0xff] }
 0x16d   :  { %v2681_v1 = vadd.f32 %v727_v45, %v726_v46  ;;  %v715_v2 = vadd.f32 %v1777_v36, %v714_v0  ;;  %v2892_v45 = vld [vmem:[%s3447_s3 + $0xf0] sm:$0xff]  ;;  %v2898_v46 = vld [vmem:[%s3447_s3 + $0xf8] sm:$0xff]  ;;  %v2904_v0 = vld [vmem:[%s3447_s3 + $0xc0] sm:$0xff] }
 0x16e   :  { %3697 = vst [vmem:[#allocation9_spill] sm:$0xff] %v2904_v0 }
 0x16f   :  { %1780 = vtanh.f32 %v2681_v1  ;;  %v719_v8 = vsel %vm718_vm7, %v1777_v36, %v715_v2  ;;  %v2820_v36 = vld [vmem:[%s3447_s3 + $0x150] sm:$0xff]  ;;  %v2910_v2 = vld [vmem:[%s3447_s3 + $0xc8] sm:$0xff] }
 0x170   :  { %v724_v11 = vsel %vm721_vm8, %v723_v9, %v719_v8  ;;  %3698 = vst [vmem:[#allocation10_spill] sm:$0xff] %v2910_v2  ;;  %v2928_v8 = vld [vmem:[%s3447_s3 + $0xa0] sm:$0xff]  ;;  %v2934_v9 = vld [vmem:[%s3447_s3 + $0xa8] sm:$0xff] }
 0x171   :  { %3701 = vst [vmem:[#allocation13_spill] sm:$0xff] %v2928_v8 }
 0x172   :  { %3702 = vst [vmem:[#allocation14_spill] sm:$0xff] %v2934_v9 }
 0x175   :  { %v1781_v10 = vpop.eup %1780 }
 0x176   :  { %v730_v12 = vmul.f32 %v1781_v10, %v724_v11  ;;  %v2940_v10 = vld [vmem:[%s3447_s3 + $0xb0] sm:$0xff]  ;;  %v2946_v11 = vld [vmem:[%s3447_s3 + $0xb8] sm:$0xff] }
 0x177   :  { %3703 = vst [vmem:[#allocation15_spill] sm:$0xff] %v2940_v10 }
 0x178   :  { %754 = vmatmul.f32.vlgmr.msra.gmra.mxu0 %v730_v12  ;;  %774 = vmatmul.f32.vlgmr.msra.gmra.mxu1 %v730_v12  ;;  %v1672_v43 = vmul.f32 %v2582_v61, %v730_v12  ;;  %3704 = vst [vmem:[#allocation16_spill] sm:$0xff] %v2946_v11 }
 0x179   :  { %794 = vmatmul.f32.vlgmr.msra.gmra.mxu2 %v730_v12  ;;  %814 = vmatmul.f32.vlgmr.msra.gmra.mxu3 %v730_v12  ;;  %v2952_v12 = vld [vmem:[%s3447_s3 + $0x80] sm:$0xff] }
 0x17a   :  { %1681 = vadd.xlane.f32.xlu2 %v1672_v43  ;;  %1046 = vmatpush.msra.mxu0 %v2688_v13  ;;  %3705 = vst [vmem:[#allocation17_spill] sm:$0xff] %v2952_v12  ;;  %v2958_v43 = vld [vmem:[%s3447_s3 + $0x88] sm:$0xff] }
 0x17b   :  { %1066 = vmatpush.msra.mxu1 %v2694_v14  ;;  %1086 = vmatpush.msra.mxu2 %v2700_v15  ;;  %3706 = vst [vmem:[#allocation18_spill] sm:$0xff] %v2958_v43 }
 0x17c   :  { %1106 = vmatpush.msra.mxu3 %v2706_v16  ;;  %1047 = vmatpush.msra.mxu0 %v2712_v17 }
 0x17d   :  { %1067 = vmatpush.msra.mxu1 %v2718_v18  ;;  %1087 = vmatpush.msra.mxu2 %v2724_v19 }
 0x17e   :  { %1107 = vmatpush.msra.mxu3 %v2730_v20  ;;  %1048 = vmatpush.msra.mxu0 %v2736_v21 }
 0x17f   :  { %1068 = vmatpush.msra.mxu1 %v2742_v22  ;;  %1088 = vmatpush.msra.mxu2 %v2748_v23 }
 0x180   :  { %1108 = vmatpush.msra.mxu3 %v2754_v24  ;;  %1049 = vmatpush.msra.mxu0 %v2760_v25 }
 0x181   :  { %1069 = vmatpush.msra.mxu1 %v2766_v26  ;;  %1089 = vmatpush.msra.mxu2 %v2772_v27 }
 0x182   :  { %1109 = vmatpush.msra.mxu3 %v2778_v28  ;;  %1050 = vmatpush.msra.mxu0 %v2784_v29 }
 0x183   :  { %1070 = vmatpush.msra.mxu1 %v2790_v30  ;;  %1090 = vmatpush.msra.mxu2 %v2796_v31 }
 0x184   :  { %1110 = vmatpush.msra.mxu3 %v2802_v33  ;;  %1051 = vmatpush.msra.mxu0 %v2808_v35 }
 0x185   :  { %1071 = vmatpush.msra.mxu1 %v2814_v59  ;;  %1091 = vmatpush.msra.mxu2 %v2820_v36 }
 0x186   :  { %1111 = vmatpush.msra.mxu3 %v2826_v38  ;;  %1052 = vmatpush.msra.mxu0 %v2832_v42 }
 0x187   :  { %1072 = vmatpush.msra.mxu1 %v2838_v44  ;;  %1092 = vmatpush.msra.mxu2 %v2844_v60 }
 0x188   :  { %1112 = vmatpush.msra.mxu3 %v2850_v56  ;;  %1053 = vmatpush.msra.mxu0 %v2856_v55 }
 0x189   :  { %1073 = vmatpush.msra.mxu1 %v2862_v54  ;;  %1093 = vmatpush.msra.mxu2 %v2868_v39 }
 0x18a   :  { %1113 = vmatpush.msra.mxu3 %v2874_v37  ;;  %1054 = vmatpush.msra.mxu0 %v2880_v57 }
 0x18b   :  { %1074 = vmatpush.msra.mxu1 %v2886_v49  ;;  %1094 = vmatpush.msra.mxu2 %v2892_v45 }
 0x18c   :  { %1114 = vmatpush.msra.mxu3 %v2898_v46  ;;  %1055 = vmatpush.msra.mxu0 %v2904_v0 }
 0x18d   :  { %1075 = vmatpush.msra.mxu1 %v2910_v2  ;;  %1095 = vmatpush.msra.mxu2 %v2916_v4 }
 0x18e   :  { %1115 = vmatpush.msra.mxu3 %v2922_v6  ;;  %1056 = vmatpush.msra.mxu0 %v2928_v8 }
 0x18f   :  { %1076 = vmatpush.msra.mxu1 %v2934_v9  ;;  %1096 = vmatpush.msra.mxu2 %v2940_v10 }
 0x190   :  { %1116 = vmatpush.msra.mxu3 %v2946_v11  ;;  %1057 = vmatpush.msra.mxu0 %v2952_v12 }
 0x191   :  { %1077 = vmatpush.msra.mxu1 %v2958_v43  ;;  %1097 = vmatpush.msra.mxu2 %v2964_v48  ;;  %v2988_v48 = vld [vmem:[%s3447_s3 + $0x70] sm:$0xff] }
 0x192   :  { %1117 = vmatpush.msra.mxu3 %v2970_v47  ;;  %1058 = vmatpush.msra.mxu0 %v2976_v41  ;;  %3711 = vst [vmem:[#allocation23_spill] sm:$0xff] %v2988_v48  ;;  %v2994_v47 = vld [vmem:[%s3447_s3 + $0x78] sm:$0xff]  ;;  %v3000_v41 = vld [vmem:[%s3447_s3 + $0x40] sm:$0xff] }
 0x193   :  { %1078 = vmatpush.msra.mxu1 %v2982_v32  ;;  %1098 = vmatpush.msra.mxu2 %v2988_v48  ;;  %3712 = vst [vmem:[#allocation24_spill] sm:$0xff] %v2994_v47  ;;  %v3006_v32 = vld [vmem:[%s3447_s3 + $0x48] sm:$0xff]  ;;  %v3012_v48 = vld [vmem:[%s3447_s3 + $0x50] sm:$0xff] }
 0x194   :  { %1118 = vmatpush.msra.mxu3 %v2994_v47  ;;  %3713 = vst [vmem:[#allocation25_spill] sm:$0xff] %v3000_v41  ;;  %1059 = vmatpush.msra.mxu0 %v3000_v41  ;;  %v3018_v47 = vld [vmem:[%s3447_s3 + $0x58] sm:$0xff]  ;;  %v3024_v41 = vld [vmem:[%s3447_s3 + $0x20] sm:$0xff] }
 0x195   :  { %3714 = vst [vmem:[#allocation26_spill] sm:$0xff] %v3006_v32  ;;  %1079 = vmatpush.msra.mxu1 %v3006_v32  ;;  %1099 = vmatpush.msra.mxu2 %v3012_v48  ;;  %v3030_v32 = vld [vmem:[%s3447_s3 + $0x28] sm:$0xff] }
 0x196   :  { %3715 = vst [vmem:[#allocation27_spill] sm:$0xff] %v3012_v48  ;;  %1119 = vmatpush.msra.mxu3 %v3018_v47  ;;  %1060 = vmatpush.msra.mxu0 %v3024_v41  ;;  %v3036_v48 = vld [vmem:[%s3447_s3 + $0x30] sm:$0xff] }
 0x197   :  { %3716 = vst [vmem:[#allocation28_spill] sm:$0xff] %v3018_v47  ;;  %1080 = vmatpush.msra.mxu1 %v3030_v32  ;;  %1100 = vmatpush.msra.mxu2 %v3036_v48  ;;  %v3042_v47 = vld [vmem:[%s3447_s3 + $0x38] sm:$0xff] }
 0x198   :  { %3717 = vst [vmem:[#allocation29_spill] sm:$0xff] %v3024_v41  ;;  %1120 = vmatpush.msra.mxu3 %v3042_v47  ;;  %v3048_v41 = vld [vmem:[%s3447_s3] sm:$0xff] }
 0x199   :  { %3718 = vst [vmem:[#allocation30_spill] sm:$0xff] %v3030_v32  ;;  %1061 = vmatpush.msra.mxu0 %v3048_v41  ;;  %v3054_v32 = vld [vmem:[%s3447_s3 + $0x8] sm:$0xff] }
 0x19a   :  { %3719 = vst [vmem:[#allocation31_spill] sm:$0xff] %v3036_v48  ;;  %1081 = vmatpush.msra.mxu1 %v3054_v32  ;;  %v3060_v48 = vld [vmem:[%s3447_s3 + $0x10] sm:$0xff] }
 0x19b   :  { %3720 = vst [vmem:[#allocation32_spill] sm:$0xff] %v3042_v47  ;;  %1101 = vmatpush.msra.mxu2 %v3060_v48  ;;  %v3066_v47 = vld [vmem:[%s3447_s3 + $0x18] sm:$0xff] }
 0x19c   :  { %3721 = vst [vmem:[#allocation33_spill] sm:$0xff] %v3048_v41  ;;  %1121 = vmatpush.msra.mxu3 %v3066_v47  ;;  %v49_v41 = vpop.permute.xlu2 %48 }
 0x19d   :  { %3722 = vst [vmem:[#allocation34_spill] sm:$0xff] %v3054_v32  ;;  %v95_v32 = vmul.f32 %v2562_v52, %v49_v41  ;;  %v93_v4 = vmul.f32 %v3688_v50, %v49_v41 }
 0x19e   :  { %3723 = vst [vmem:[#allocation36_spill] sm:$0xff] %v3060_v48 }
 0x19f   :  { %3724 = vst [vmem:[#allocation49_spill] sm:$0xff] %v3066_v47  ;;  %v136_v11 = vadd.f32 %v3681_v34, %v95_v32  ;;  %v94_v47 = vmul.f32 %v3689_v58, %v49_v41  ;;  %v134_v32 = vadd.f32 %v3690_v3, %v93_v4 }
 0x1a4   :  { %v234_v43 = vpop.permute.xlu2 %233 }
 0x1a5   :  { %v275_v10 = vmul.f32 %v3682_v62, %v234_v43  ;;  %v273_v62 = vmul.f32 %v3691_v40, %v234_v43 }
 0x1a7   :  { %v307_v48 = vadd.f32 %v275_v10, %v136_v11  ;;  %v135_v10 = vadd.f32 %v3692_v53, %v94_v47  ;;  %v274_v11 = vmul.f32 %v3693_v51, %v234_v43 }
 0x1ac   :  { %v3069_v12 = vpop.permute.xlu2 %237 }
 0x1ad   :  { %3725 = vst [vmem:[#allocation50_spill] sm:$0xff] %v3069_v12 }
 0x1b4   :  { %v3074_v9 = vpop.permute.xlu2 %63 }
 0x1b5   :  { %3726 = vst [vmem:[#allocation51_spill] sm:$0xff] %v3074_v9  ;;  %v306_v9 = vadd.f32 %v274_v11, %v135_v10 }
 0x1bc   :  { %v3076_v8 = vpop.permute.xlu2 %68 }
 0x1bd   :  { %3727 = vst [vmem:[#allocation52_spill] sm:$0xff] %v3076_v8  ;;  %v305_v8 = vadd.f32 %v273_v62, %v134_v32 }
 0x1c4   :  { %v3078_v6 = vpop.permute.xlu2 %253 }
 0x1c5   :  { %3728 = vst [vmem:[#allocation53_spill] sm:$0xff] %v3078_v6  ;;  %v96_v6 = vmul.f32 %v3694_v63, %v49_v41 }
 0x1c7   :  { %v137_v50 = vadd.f32 %v3695_v5, %v96_v6 }
 0x1ed   :  { %v1682_v2 = vpop.xlane.xlu2 %1681 }
 0x1ee   :  { %1697 = vst.msk [vmem:[%s3452_s5 + $0x8] sm:$0xff] %vm1695_vm12, %v1682_v2  ;;  %v276_v2 = vmul.f32 %v3696_v7, %v234_v43 }
 0x1f0   :  { %v308_v40 = vadd.f32 %v276_v2, %v137_v50 }
 0x1f5   :  { %v755_v34 = vpop.f32.mrf.mxu0  ;;  %v775_v52 = vpop.f32.mrf.mxu1 }
 0x1f6   :  { %v818_v12 = vadd.f32 %v755_v34, %v305_v8  ;;  %v819_v58 = vadd.f32 %v775_v52, %v306_v9 }
 0x1f8   :  { %v1715_v0 = vmul.f32 -1.442695, %v818_v12  ;;  %v1716_v4 = vmul.f32 -1.442695, %v819_v58 }
 0x1fa   :  { %1782 = vpow2.f32 %v1715_v0 }
 0x1fb   :  { %1784 = vpow2.f32 %v1716_v4 }
 0x1fc   :  { %v815_v47 = vpop.f32.mrf.mxu3  ;;  %v795_v52 = vpop.f32.mrf.mxu2 }
 0x1fd   :  { %v821_v53 = vadd.f32 %v815_v47, %v308_v40  ;;  %v820_v9 = vadd.f32 %v795_v52, %v307_v48 }
 0x1ff   :  { %v1717_v51 = vmul.f32 -1.442695, %v821_v53 }
 0x200   :  { %v1783_v3 = vpop.eup %1782 }
 0x201   :  { %v1785_v41 = vpop.eup %1784  ;;  %v825_v62 = vadd.f32 1.0, %v1783_v3  ;;  %1786 = vpow2.f32 %v1717_v51 }
 0x202   :  { %v844_v32 = vadd.f32 1.0, %v1785_v41 }
 0x203   :  { %1788 = vrcp.f32 %v825_v62  ;;  %v837_v40 = vand.u32 2147483648, %v825_v62  ;;  %v835_v3 = vand.u32 2147483647, %v825_v62  ;;  %vm831_vm11 = vweird.f32 %v825_v62 }
 0x204   :  { %1790 = vrcp.f32 %v844_v32  ;;  %v856_v53 = vand.u32 2147483648, %v844_v32  ;;  %v854_v11 = vand.u32 2147483647, %v844_v32  ;;  %vm850_vm13 = vweird.f32 %v844_v32 }
 0x205   :  { %v838_v48 = vor.u32 1.1754944e-38, %v837_v40  ;;  %vm836_vm0 = vcmp.eq.f32.partialorder %v835_v3, 8.507059e+37 }
 0x206   :  { %v857_v52 = vor.u32 1.1754944e-38, %v856_v53  ;;  %vm855_vm1 = vcmp.eq.f32.partialorder %v854_v11, 8.507059e+37 }
 0x207   :  { %v1787_v34 = vpop.eup %1786 }
 0x208   :  { %v864_v6 = vadd.f32 1.0, %v1787_v34 }
 0x209   :  { %v1789_v8 = vpop.eup %1788 }
 0x20a   :  { %v1791_v12 = vpop.eup %1790  ;;  %v827_v58 = vmul.f32 %v1789_v8, %v825_v62  ;;  %1792 = vrcp.f32 %v864_v6  ;;  %vm832_vm9 = vweird.f32 %v1789_v8  ;;  %v876_v40 = vand.u32 2147483648, %v864_v6 }
 0x20b   :  { %v846_v0 = vmul.f32 %v1791_v12, %v844_v32  ;;  %1794 = vtanh.f32 %v820_v9  ;;  %vm851_vm10 = vweird.f32 %v1791_v12  ;;  %vm833_vm14 = vmor %vm831_vm11, %vm832_vm9  ;;  %vm870_vm3 = vweird.f32 %v864_v6 }
 0x20c   :  { %v828_v50 = vsub.f32 1.0, %v827_v58  ;;  %vm852_vm15 = vmor %vm850_vm13, %vm851_vm10  ;;  %v877_v3 = vor.u32 1.1754944e-38, %v876_v40  ;;  %v3747_v40 = vld [vmem:[#allocation27_spill] sm:$0xff] }
 0x20d   :  { %v847_v43 = vsub.f32 1.0, %v846_v0 }
 0x20e   :  { %v829_v10 = vmul.f32 %v1789_v8, %v828_v50 }
 0x20f   :  { %v848_v51 = vmul.f32 %v1791_v12, %v847_v43 }
 0x210   :  { %v1793_v2 = vpop.eup %1792  ;;  %v830_v4 = vadd.f32 %v1789_v8, %v829_v10 }
 0x211   :  { %v849_v47 = vadd.f32 %v1791_v12, %v848_v51  ;;  %v866_v41 = vmul.f32 %v1793_v2, %v864_v6  ;;  %v1795_v9 = vpop.eup %1794  ;;  %vm871_vm2 = vweird.f32 %v1793_v2 }
 0x212   :  { %v834_v34 = vsel %vm833_vm14, %v1789_v8, %v830_v4  ;;  %v874_v8 = vand.u32 2147483647, %v864_v6  ;;  %vm872_vm4 = vmor %vm870_vm3, %vm871_vm2  ;;  %v3732_v6 = vld [vmem:[#allocation12_spill] sm:$0xff]  ;;  %v3734_v4 = vld [vmem:[#allocation14_spill] sm:$0xff] }
 0x213   :  { %v839_v58 = vsel %vm836_vm0, %v838_v48, %v834_v34  ;;  %v853_v0 = vsel %vm852_vm15, %v1791_v12, %v849_v47  ;;  %v867_v50 = vsub.f32 1.0, %v866_v41  ;;  %v3735_v48 = vld [vmem:[#allocation15_spill] sm:$0xff]  ;;  %v3736_v47 = vld [vmem:[#allocation16_spill] sm:$0xff]  ;;  %v3737_v41 = vld [vmem:[#allocation17_spill] sm:$0xff] }
 0x214   :  { %v858_v43 = vsel %vm855_vm1, %v857_v52, %v853_v0  ;;  %v881_v7 = vmul.f32 %v1795_v9, %v839_v58  ;;  %vm875_vm5 = vcmp.eq.f32.partialorder %v874_v8, 8.507059e+37  ;;  %v3738_v52 = vld [vmem:[#allocation18_spill] sm:$0xff]  ;;  %v3739_v34 = vld [vmem:[#allocation19_spill] sm:$0xff]  ;;  %v3740_v9 = vld [vmem:[#allocation20_spill] sm:$0xff] }
 0x215   :  { %v880_v5 = vmul.f32 %v858_v43, %v2681_v1  ;;  %v868_v10 = vmul.f32 %v1793_v2, %v867_v50  ;;  %v3741_v58 = vld [vmem:[#allocation21_spill] sm:$0xff]  ;;  %v3742_v0 = vld [vmem:[#allocation22_spill] sm:$0xff]  ;;  %v3743_v50 = vld [vmem:[#allocation23_spill] sm:$0xff] }
 0x216   :  { %v3744_v43 = vld [vmem:[#allocation24_spill] sm:$0xff] }
 0x217   :  { %v3094_v62 = vadd.f32 %v881_v7, %v880_v5  ;;  %v869_v32 = vadd.f32 %v1793_v2, %v868_v10  ;;  %v3730_v5 = vld [vmem:[#allocation10_spill] sm:$0xff]  ;;  %v3731_v7 = vld [vmem:[#allocation11_spill] sm:$0xff]  ;;  %v3745_v10 = vld [vmem:[#allocation25_spill] sm:$0xff] }
 0x218   :  { %v3748_v8 = vld [vmem:[#allocation28_spill] sm:$0xff] }
 0x219   :  { %1796 = vtanh.f32 %v3094_v62  ;;  %v873_v53 = vsel %vm872_vm4, %v1793_v2, %v869_v32  ;;  %v3733_v2 = vld [vmem:[#allocation13_spill] sm:$0xff]  ;;  %v3746_v32 = vld [vmem:[#allocation26_spill] sm:$0xff] }
 0x21a   :  { %v878_v51 = vsel %vm875_vm5, %v877_v3, %v873_v53  ;;  %v3749_v53 = vld [vmem:[#allocation29_spill] sm:$0xff]  ;;  %v3750_v3 = vld [vmem:[#allocation30_spill] sm:$0xff] }
 0x21f   :  { %v1797_v12 = vpop.eup %1796 }
 0x220   :  { %v884_v11 = vmul.f32 %v1797_v12, %v878_v51  ;;  %v3751_v12 = vld [vmem:[#allocation31_spill] sm:$0xff]  ;;  %v3752_v51 = vld [vmem:[#allocation32_spill] sm:$0xff] }
 0x222   :  { %908 = vmatmul.f32.vlgmr.msrb.gmra.mxu0 %v884_v11  ;;  %928 = vmatmul.f32.vlgmr.msrb.gmra.mxu1 %v884_v11  ;;  %v1673_v1 = vmul.f32 %v2582_v61, %v884_v11  ;;  %v3729_v61 = vld [vmem:[#allocation9_spill] sm:$0xff] }
 0x223   :  { %948 = vmatmul.f32.vlgmr.msrb.gmra.mxu2 %v884_v11  ;;  %968 = vmatmul.f32.vlgmr.msrb.gmra.mxu3 %v884_v11  ;;  %v3753_v11 = vld [vmem:[#allocation33_spill] sm:$0xff] }
 0x224   :  { %1683 = vadd.xlane.f32.xlu0 %v1673_v1  ;;  %1200 = vmatpush.msrb.mxu0 %v2688_v13  ;;  %v3754_v1 = vld [vmem:[#allocation34_spill] sm:$0xff] }
 0x225   :  { %1220 = vmatpush.msrb.mxu1 %v2694_v14  ;;  %1240 = vmatpush.msrb.mxu2 %v2700_v15 }
 0x226   :  { %1260 = vmatpush.msrb.mxu3 %v2706_v16  ;;  %1201 = vmatpush.msrb.mxu0 %v2712_v17 }
 0x227   :  { %1221 = vmatpush.msrb.mxu1 %v2718_v18  ;;  %1241 = vmatpush.msrb.mxu2 %v2724_v19 }
 0x228   :  { %1261 = vmatpush.msrb.mxu3 %v2730_v20  ;;  %1202 = vmatpush.msrb.mxu0 %v2736_v21 }
 0x229   :  { %1222 = vmatpush.msrb.mxu1 %v2742_v22  ;;  %1242 = vmatpush.msrb.mxu2 %v2748_v23 }
 0x22a   :  { %1262 = vmatpush.msrb.mxu3 %v2754_v24  ;;  %1203 = vmatpush.msrb.mxu0 %v2760_v25 }
 0x22b   :  { %1223 = vmatpush.msrb.mxu1 %v2766_v26  ;;  %1243 = vmatpush.msrb.mxu2 %v2772_v27 }
 0x22c   :  { %1263 = vmatpush.msrb.mxu3 %v2778_v28  ;;  %1204 = vmatpush.msrb.mxu0 %v2784_v29 }
 0x22d   :  { %1224 = vmatpush.msrb.mxu1 %v2790_v30  ;;  %1244 = vmatpush.msrb.mxu2 %v2796_v31 }
 0x22e   :  { %1264 = vmatpush.msrb.mxu3 %v2802_v33  ;;  %1205 = vmatpush.msrb.mxu0 %v2808_v35 }
 0x22f   :  { %1225 = vmatpush.msrb.mxu1 %v2814_v59  ;;  %1245 = vmatpush.msrb.mxu2 %v2820_v36 }
 0x230   :  { %1265 = vmatpush.msrb.mxu3 %v2826_v38  ;;  %1206 = vmatpush.msrb.mxu0 %v2832_v42 }
 0x231   :  { %1226 = vmatpush.msrb.mxu1 %v2838_v44  ;;  %1246 = vmatpush.msrb.mxu2 %v2844_v60 }
 0x232   :  { %1266 = vmatpush.msrb.mxu3 %v2850_v56  ;;  %1207 = vmatpush.msrb.mxu0 %v2856_v55 }
 0x233   :  { %1227 = vmatpush.msrb.mxu1 %v2862_v54  ;;  %1247 = vmatpush.msrb.mxu2 %v2868_v39 }
 0x234   :  { %1267 = vmatpush.msrb.mxu3 %v2874_v37  ;;  %1208 = vmatpush.msrb.mxu0 %v2880_v57 }
 0x235   :  { %1228 = vmatpush.msrb.mxu1 %v2886_v49  ;;  %1248 = vmatpush.msrb.mxu2 %v2892_v45 }
 0x236   :  { %1268 = vmatpush.msrb.mxu3 %v2898_v46  ;;  %1209 = vmatpush.msrb.mxu0 %v3729_v61 }
 0x237   :  { %1229 = vmatpush.msrb.mxu1 %v3730_v5  ;;  %1249 = vmatpush.msrb.mxu2 %v3731_v7 }
 0x238   :  { %1269 = vmatpush.msrb.mxu3 %v3732_v6  ;;  %1210 = vmatpush.msrb.mxu0 %v3733_v2 }
 0x239   :  { %1230 = vmatpush.msrb.mxu1 %v3734_v4  ;;  %1250 = vmatpush.msrb.mxu2 %v3735_v48 }
 0x23a   :  { %1270 = vmatpush.msrb.mxu3 %v3736_v47  ;;  %1211 = vmatpush.msrb.mxu0 %v3737_v41 }
 0x23b   :  { %1231 = vmatpush.msrb.mxu1 %v3738_v52  ;;  %1251 = vmatpush.msrb.mxu2 %v3739_v34 }
 0x23c   :  { %1271 = vmatpush.msrb.mxu3 %v3740_v9  ;;  %1212 = vmatpush.msrb.mxu0 %v3741_v58 }
 0x23d   :  { %1232 = vmatpush.msrb.mxu1 %v3742_v0  ;;  %1252 = vmatpush.msrb.mxu2 %v3743_v50 }
 0x23e   :  { %1272 = vmatpush.msrb.mxu3 %v3744_v43  ;;  %1213 = vmatpush.msrb.mxu0 %v3745_v10  ;;  %v3755_v43 = vld [vmem:[#allocation36_spill] sm:$0xff]  ;;  %v3756_v10 = vld [vmem:[#allocation49_spill] sm:$0xff] }
 0x23f   :  { %1233 = vmatpush.msrb.mxu1 %v3746_v32  ;;  %1253 = vmatpush.msrb.mxu2 %v3747_v40  ;;  %v3162_v32 = vpop.permute.xlu0 %58 }
 0x240   :  { %1273 = vmatpush.msrb.mxu3 %v3748_v8  ;;  %1214 = vmatpush.msrb.mxu0 %v3749_v53  ;;  %3757 = vst [vmem:[#allocation9_spill] sm:$0xff] %v3162_v32  ;;  %v3759_v8 = vld [vmem:[#allocation35_spill] sm:$0xff]  ;;  %v3760_v53 = vld [vmem:[#allocation37_spill] sm:$0xff] }
 0x241   :  { %1234 = vmatpush.msrb.mxu1 %v3750_v3  ;;  %1254 = vmatpush.msrb.mxu2 %v3751_v12  ;;  %v97_v50 = vmul.f32 %v3760_v53, %v3759_v8  ;;  %v3761_v3 = vld [vmem:[#allocation38_spill] sm:$0xff]  ;;  %v3765_v32 = vld [vmem:[#allocation41_spill] sm:$0xff]  ;;  %v100_v53 = vmul.f32 %v3694_v63, %v3759_v8 }
 0x242   :  { %1274 = vmatpush.msrb.mxu3 %v3752_v51  ;;  %1215 = vmatpush.msrb.mxu0 %v3753_v11  ;;  %v98_v12 = vmul.f32 %v3761_v3, %v3759_v8  ;;  %v3763_v11 = vld [vmem:[#allocation50_spill] sm:$0xff] }
 0x243   :  { %1235 = vmatpush.msrb.mxu1 %v3754_v1  ;;  %1255 = vmatpush.msrb.mxu2 %v3755_v43  ;;  %v3762_v1 = vld [vmem:[#allocation39_spill] sm:$0xff]  ;;  %v3769_v63 = vld [vmem:[#allocation46_spill] sm:$0xff] }
 0x244   :  { %1275 = vmatpush.msrb.mxu3 %v3756_v10  ;;  %v138_v43 = vadd.f32 %v3762_v1, %v97_v50  ;;  %v3764_v10 = vld [vmem:[#allocation40_spill] sm:$0xff]  ;;  %v139_v58 = vadd.f32 %v3765_v32, %v98_v12  ;;  %v3768_v50 = vld [vmem:[#allocation45_spill] sm:$0xff] }
 0x245   :  { %v277_v51 = vmul.f32 %v3764_v10, %v3763_v11  ;;  %v280_v1 = vmul.f32 %v3768_v50, %v3763_v11 }
 0x247   :  { %v3164_v40 = vpop.permute.xlu0 %249  ;;  %v309_v3 = vadd.f32 %v277_v51, %v138_v43  ;;  %v99_v43 = vmul.f32 %v3769_v63, %v3759_v8 }
 0x248   :  { %3758 = vst [vmem:[#allocation54_spill] sm:$0xff] %v3164_v40  ;;  %v3766_v40 = vld [vmem:[#allocation42_spill] sm:$0xff] }
 0x249   :  { %v278_v9 = vmul.f32 %v3766_v40, %v3763_v11 }
 0x24b   :  { %v310_v34 = vadd.f32 %v278_v9, %v139_v58 }
 0x297   :  { %v1684_v0 = vpop.xlane.xlu0 %1683 }
 0x298   :  { %1698 = vst.msk [vmem:[%s3452_s5 + $0x10] sm:$0xff] %vm1695_vm12, %v1684_v0  ;;  %v3767_v0 = vld [vmem:[#allocation44_spill] sm:$0xff] }
 0x299   :  { %v141_v4 = vadd.f32 %v3767_v0, %v100_v53 }
 0x29b   :  { %v312_v12 = vadd.f32 %v280_v1, %v141_v4 }
 0x29f   :  { %v909_v52 = vpop.f32.mrf.mxu0  ;;  %v929_v41 = vpop.f32.mrf.mxu1 }
 0x2a0   :  { %v972_v47 = vadd.f32 %v909_v52, %v309_v3  ;;  %v973_v48 = vadd.f32 %v929_v41, %v310_v34  ;;  %v3770_v34 = vld [vmem:[#allocation47_spill] sm:$0xff] }
 0x2a1   :  { %v140_v53 = vadd.f32 %v3770_v34, %v99_v43 }
 0x2a2   :  { %v1718_v10 = vmul.f32 -1.442695, %v972_v47  ;;  %v1719_v2 = vmul.f32 -1.442695, %v973_v48  ;;  %v3771_v47 = vld [vmem:[#allocation48_spill] sm:$0xff] }
 0x2a3   :  { %v279_v48 = vmul.f32 %v3771_v47, %v3763_v11 }
 0x2a4   :  { %1798 = vpow2.f32 %v1718_v10 }
 0x2a5   :  { %1800 = vpow2.f32 %v1719_v2  ;;  %v311_v10 = vadd.f32 %v279_v48, %v140_v53 }
 0x2a6   :  { %v969_v40 = vpop.f32.mrf.mxu3  ;;  %v949_v2 = vpop.f32.mrf.mxu2 }
 0x2a7   :  { %v975_v32 = vadd.f32 %v969_v40, %v312_v12  ;;  %v974_v1 = vadd.f32 %v949_v2, %v311_v10 }
 0x2a9   :  { %v1720_v9 = vmul.f32 -1.442695, %v975_v32 }
 0x2aa   :  { %v1799_v58 = vpop.eup %1798 }
 0x2ab   :  { %v1801_v51 = vpop.eup %1800  ;;  %v979_v52 = vadd.f32 1.0, %v1799_v58  ;;  %1802 = vpow2.f32 %v1720_v9 }
 0x2ac   :  { %v998_v41 = vadd.f32 1.0, %v1801_v51 }
 0x2ad   :  { %1804 = vrcp.f32 %v979_v52  ;;  %v991_v51 = vand.u32 2147483648, %v979_v52  ;;  %v989_v34 = vand.u32 2147483647, %v979_v52  ;;  %vm985_vm8 = vweird.f32 %v979_v52 }
 0x2ae   :  { %1806 = vrcp.f32 %v998_v41  ;;  %v1010_v63 = vand.u32 2147483648, %v998_v41  ;;  %v1008_v47 = vand.u32 2147483647, %v998_v41  ;;  %vm1004_vm9 = vweird.f32 %v998_v41 }
 0x2af   :  { %v992_v48 = vor.u32 1.1754944e-38, %v991_v51  ;;  %vm990_vm13 = vcmp.eq.f32.partialorder %v989_v34, 8.507059e+37 }
 0x2b0   :  { %v1011_v10 = vor.u32 1.1754944e-38, %v1010_v63  ;;  %vm1009_vm14 = vcmp.eq.f32.partialorder %v1008_v47, 8.507059e+37 }
 0x2b1   :  { %v1803_v4 = vpop.eup %1802 }
 0x2b2   :  { %v1018_v40 = vadd.f32 1.0, %v1803_v4 }
 0x2b3   :  { %v1805_v3 = vpop.eup %1804 }
 0x2b4   :  { %v1807_v8 = vpop.eup %1806  ;;  %v981_v32 = vmul.f32 %v1805_v3, %v979_v52  ;;  %1808 = vrcp.f32 %v1018_v40  ;;  %vm986_vm6 = vweird.f32 %v1805_v3  ;;  %v1030_v51 = vand.u32 2147483648, %v1018_v40 }
 0x2b5   :  { %v1000_v12 = vmul.f32 %v1807_v8, %v998_v41  ;;  %1810 = vtanh.f32 %v974_v1  ;;  %vm1005_vm7 = vweird.f32 %v1807_v8  ;;  %vm987_vm10 = vmor %vm985_vm8, %vm986_vm6  ;;  %vm1024_vm0 = vweird.f32 %v1018_v40 }
 0x2b6   :  { %v982_v58 = vsub.f32 1.0, %v981_v32  ;;  %vm1006_vm11 = vmor %vm1004_vm9, %vm1005_vm7  ;;  %v1028_v63 = vand.u32 2147483647, %v1018_v40 }
 0x2b7   :  { %v1001_v9 = vsub.f32 1.0, %v1000_v12 }
 0x2b8   :  { %v983_v43 = vmul.f32 %v1805_v3, %v982_v58  ;;  %vm1029_vm2 = vcmp.eq.f32.partialorder %v1028_v63, 8.507059e+37  ;;  %v3789_v63 = vld [vmem:[#allocation28_spill] sm:$0xff] }
 0x2b9   :  { %v1002_v11 = vmul.f32 %v1807_v8, %v1001_v9 }
 0x2ba   :  { %v1809_v50 = vpop.eup %1808  ;;  %v984_v53 = vadd.f32 %v1805_v3, %v983_v43 }
 0x2bb   :  { %v1003_v2 = vadd.f32 %v1807_v8, %v1002_v11  ;;  %v1020_v4 = vmul.f32 %v1809_v50, %v1018_v40  ;;  %v1811_v1 = vpop.eup %1810  ;;  %vm1025_vm15 = vweird.f32 %v1809_v50  ;;  %v3775_v40 = vld [vmem:[#allocation14_spill] sm:$0xff] }
 0x2bc   :  { %v988_v32 = vsel %vm987_vm10, %v1805_v3, %v984_v53  ;;  %vm1026_vm1 = vmor %vm1024_vm0, %vm1025_vm15  ;;  %v1031_v3 = vor.u32 1.1754944e-38, %v1030_v51  ;;  %v3776_v53 = vld [vmem:[#allocation15_spill] sm:$0xff] }
 0x2bd   :  { %v993_v12 = vsel %vm990_vm13, %v992_v48, %v988_v32  ;;  %v1007_v58 = vsel %vm1006_vm11, %v1807_v8, %v1003_v2  ;;  %v1021_v0 = vsub.f32 1.0, %v1020_v4  ;;  %v3777_v48 = vld [vmem:[#allocation16_spill] sm:$0xff]  ;;  %v3778_v2 = vld [vmem:[#allocation17_spill] sm:$0xff]  ;;  %v3779_v4 = vld [vmem:[#allocation18_spill] sm:$0xff] }
 0x2be   :  { %v1012_v9 = vsel %vm1009_vm14, %v1011_v10, %v1007_v58  ;;  %v1035_v6 = vmul.f32 %v1811_v1, %v993_v12  ;;  %v3780_v10 = vld [vmem:[#allocation19_spill] sm:$0xff]  ;;  %v3781_v32 = vld [vmem:[#allocation20_spill] sm:$0xff]  ;;  %v3782_v1 = vld [vmem:[#allocation21_spill] sm:$0xff] }
 0x2bf   :  { %v1034_v7 = vmul.f32 %v1012_v9, %v3094_v62  ;;  %v1022_v43 = vmul.f32 %v1809_v50, %v1021_v0  ;;  %v3197_v62 = vld [vmem:[%s3449_s4] ss:$0 sm:$0xff]  ;;  %v3773_v0 = vld [vmem:[#allocation12_spill] sm:$0xff]  ;;  %v3784_v58 = vld [vmem:[#allocation23_spill] sm:$0xff] }
 0x2c0   :  { %v3783_v12 = vld [vmem:[#allocation22_spill] sm:$0xff]  ;;  %v3785_v9 = vld [vmem:[#allocation24_spill] sm:$0xff]  ;;  %v3788_v51 = vld [vmem:[#allocation27_spill] sm:$0xff] }
 0x2c1   :  { %v3191_v52 = vadd.f32 %v1035_v6, %v1034_v7  ;;  %v1023_v41 = vadd.f32 %v1809_v50, %v1022_v43  ;;  %v3772_v6 = vld [vmem:[#allocation11_spill] sm:$0xff]  ;;  %v3786_v43 = vld [vmem:[#allocation25_spill] sm:$0xff] }
 0x2c3   :  { %1812 = vtanh.f32 %v3191_v52  ;;  %v1027_v34 = vsel %vm1026_vm1, %v1809_v50, %v1023_v41  ;;  %v3774_v50 = vld [vmem:[#allocation13_spill] sm:$0xff]  ;;  %v3787_v41 = vld [vmem:[#allocation26_spill] sm:$0xff] }
 0x2c4   :  { %v1032_v8 = vsel %vm1029_vm2, %v1031_v3, %v1027_v34  ;;  %v3790_v34 = vld [vmem:[#allocation29_spill] sm:$0xff]  ;;  %v3791_v3 = vld [vmem:[#allocation30_spill] sm:$0xff] }
 0x2c9   :  { %v1813_v47 = vpop.eup %1812 }
 0x2ca   :  { %v1038_v11 = vmul.f32 %v1813_v47, %v1032_v8  ;;  %v3792_v47 = vld [vmem:[#allocation31_spill] sm:$0xff]  ;;  %v3793_v8 = vld [vmem:[#allocation32_spill] sm:$0xff] }
 0x2cc   :  { %1062 = vmatmul.f32.vlgmr.msra.gmra.mxu0 %v1038_v11  ;;  %1082 = vmatmul.f32.vlgmr.msra.gmra.mxu1 %v1038_v11  ;;  %v1674_v7 = vmul.f32 %v3197_v62, %v1038_v11 }
 0x2cd   :  { %1102 = vmatmul.f32.vlgmr.msra.gmra.mxu2 %v1038_v11  ;;  %1122 = vmatmul.f32.vlgmr.msra.gmra.mxu3 %v1038_v11  ;;  %v3794_v11 = vld [vmem:[#allocation33_spill] sm:$0xff] }
 0x2ce   :  { %1685 = vadd.xlane.f32.xlu2 %v1674_v7  ;;  %1354 = vmatpush.msra.mxu0 %v2688_v13  ;;  %v3795_v7 = vld [vmem:[#allocation34_spill] sm:$0xff] }
 0x2cf   :  { %1374 = vmatpush.msra.mxu1 %v2694_v14  ;;  %1394 = vmatpush.msra.mxu2 %v2700_v15 }
 0x2d0   :  { %1414 = vmatpush.msra.mxu3 %v2706_v16  ;;  %1355 = vmatpush.msra.mxu0 %v2712_v17 }
 0x2d1   :  { %1375 = vmatpush.msra.mxu1 %v2718_v18  ;;  %1395 = vmatpush.msra.mxu2 %v2724_v19 }
 0x2d2   :  { %1415 = vmatpush.msra.mxu3 %v2730_v20  ;;  %1356 = vmatpush.msra.mxu0 %v2736_v21 }
 0x2d3   :  { %1376 = vmatpush.msra.mxu1 %v2742_v22  ;;  %1396 = vmatpush.msra.mxu2 %v2748_v23 }
 0x2d4   :  { %1416 = vmatpush.msra.mxu3 %v2754_v24  ;;  %1357 = vmatpush.msra.mxu0 %v2760_v25 }
 0x2d5   :  { %1377 = vmatpush.msra.mxu1 %v2766_v26  ;;  %1397 = vmatpush.msra.mxu2 %v2772_v27 }
 0x2d6   :  { %1417 = vmatpush.msra.mxu3 %v2778_v28  ;;  %1358 = vmatpush.msra.mxu0 %v2784_v29 }
 0x2d7   :  { %1378 = vmatpush.msra.mxu1 %v2790_v30  ;;  %1398 = vmatpush.msra.mxu2 %v2796_v31 }
 0x2d8   :  { %1418 = vmatpush.msra.mxu3 %v2802_v33  ;;  %1359 = vmatpush.msra.mxu0 %v2808_v35 }
 0x2d9   :  { %1379 = vmatpush.msra.mxu1 %v2814_v59  ;;  %1399 = vmatpush.msra.mxu2 %v2820_v36 }
 0x2da   :  { %1419 = vmatpush.msra.mxu3 %v2826_v38  ;;  %1360 = vmatpush.msra.mxu0 %v2832_v42 }
 0x2db   :  { %1380 = vmatpush.msra.mxu1 %v2838_v44  ;;  %1400 = vmatpush.msra.mxu2 %v2844_v60 }
 0x2dc   :  { %1420 = vmatpush.msra.mxu3 %v2850_v56  ;;  %1361 = vmatpush.msra.mxu0 %v2856_v55 }
 0x2dd   :  { %1381 = vmatpush.msra.mxu1 %v2862_v54  ;;  %1401 = vmatpush.msra.mxu2 %v2868_v39 }
 0x2de   :  { %1421 = vmatpush.msra.mxu3 %v2874_v37  ;;  %1362 = vmatpush.msra.mxu0 %v2880_v57 }
 0x2df   :  { %1382 = vmatpush.msra.mxu1 %v2886_v49  ;;  %1402 = vmatpush.msra.mxu2 %v2892_v45 }
 0x2e0   :  { %1422 = vmatpush.msra.mxu3 %v2898_v46  ;;  %1363 = vmatpush.msra.mxu0 %v3729_v61 }
 0x2e1   :  { %1383 = vmatpush.msra.mxu1 %v3730_v5  ;;  %1403 = vmatpush.msra.mxu2 %v3772_v6 }
 0x2e2   :  { %1423 = vmatpush.msra.mxu3 %v3773_v0  ;;  %1364 = vmatpush.msra.mxu0 %v3774_v50 }
 0x2e3   :  { %1384 = vmatpush.msra.mxu1 %v3775_v40  ;;  %1404 = vmatpush.msra.mxu2 %v3776_v53 }
 0x2e4   :  { %1424 = vmatpush.msra.mxu3 %v3777_v48  ;;  %1365 = vmatpush.msra.mxu0 %v3778_v2 }
 0x2e5   :  { %1385 = vmatpush.msra.mxu1 %v3779_v4  ;;  %1405 = vmatpush.msra.mxu2 %v3780_v10 }
 0x2e6   :  { %1425 = vmatpush.msra.mxu3 %v3781_v32  ;;  %1366 = vmatpush.msra.mxu0 %v3782_v1 }
 0x2e7   :  { %1386 = vmatpush.msra.mxu1 %v3783_v12  ;;  %1406 = vmatpush.msra.mxu2 %v3784_v58 }
 0x2e8   :  { %1426 = vmatpush.msra.mxu3 %v3785_v9  ;;  %1367 = vmatpush.msra.mxu0 %v3786_v43  ;;  %v3796_v9 = vld [vmem:[#allocation36_spill] sm:$0xff]  ;;  %v3797_v43 = vld [vmem:[#allocation49_spill] sm:$0xff] }
 0x2e9   :  { %1387 = vmatpush.msra.mxu1 %v3787_v41  ;;  %1407 = vmatpush.msra.mxu2 %v3788_v51  ;;  %v3798_v41 = vld [vmem:[#allocation9_spill] sm:$0xff] }
 0x2ea   :  { %1427 = vmatpush.msra.mxu3 %v3789_v63  ;;  %1368 = vmatpush.msra.mxu0 %v3790_v34  ;;  %v3799_v51 = vld [vmem:[#allocation37_spill] sm:$0xff]  ;;  %v3800_v63 = vld [vmem:[#allocation38_spill] sm:$0xff] }
 0x2eb   :  { %1388 = vmatpush.msra.mxu1 %v3791_v3  ;;  %1408 = vmatpush.msra.mxu2 %v3792_v47  ;;  %v101_v58 = vmul.f32 %v3799_v51, %v3798_v41  ;;  %v102_v34 = vmul.f32 %v3800_v63, %v3798_v41  ;;  %v3802_v47 = vld [vmem:[#allocation6_spill] sm:$0xff]  ;;  %v3806_v63 = vld [vmem:[#allocation43_spill] sm:$0xff] }
 0x2ec   :  { %1428 = vmatpush.msra.mxu3 %v3793_v8  ;;  %1369 = vmatpush.msra.mxu0 %v3794_v11  ;;  %v3801_v8 = vld [vmem:[#allocation39_spill] sm:$0xff]  ;;  %v104_v4 = vmul.f32 %v3806_v63, %v3798_v41 }
 0x2ed   :  { %1389 = vmatpush.msra.mxu1 %v3795_v7  ;;  %1409 = vmatpush.msra.mxu2 %v3796_v9  ;;  %v142_v11 = vadd.f32 %v3801_v8, %v101_v58  ;;  %v3803_v7 = vld [vmem:[#allocation40_spill] sm:$0xff]  ;;  %v3804_v9 = vld [vmem:[#allocation41_spill] sm:$0xff] }
 0x2ee   :  { %1429 = vmatpush.msra.mxu3 %v3797_v43  ;;  %v281_v3 = vmul.f32 %v3803_v7, %v3802_v47  ;;  %v143_v1 = vadd.f32 %v3804_v9, %v102_v34  ;;  %v3805_v43 = vld [vmem:[#allocation42_spill] sm:$0xff]  ;;  %v3808_v58 = vld [vmem:[#allocation45_spill] sm:$0xff] }
 0x2ef   :  { %v282_v32 = vmul.f32 %v3805_v43, %v3802_v47  ;;  %v284_v8 = vmul.f32 %v3808_v58, %v3802_v47 }
 0x2f0   :  { %v313_v51 = vadd.f32 %v281_v3, %v142_v11 }
 0x2f1   :  { %v314_v10 = vadd.f32 %v282_v32, %v143_v1  ;;  %v3809_v32 = vld [vmem:[#allocation46_spill] sm:$0xff] }
 0x2f2   :  { %v103_v1 = vmul.f32 %v3809_v32, %v3798_v41 }
 0x341   :  { %v1686_v12 = vpop.xlane.xlu2 %1685 }
 0x342   :  { %1699 = vst.msk [vmem:[%s3452_s5 + $0x18] sm:$0xff] %vm1695_vm12, %v1686_v12  ;;  %v3807_v12 = vld [vmem:[#allocation44_spill] sm:$0xff] }
 0x343   :  { %v145_v50 = vadd.f32 %v3807_v12, %v104_v4  ;;  %v3810_v4 = vld [vmem:[#allocation47_spill] sm:$0xff] }
 0x345   :  { %v316_v34 = vadd.f32 %v284_v8, %v145_v50 }
 0x349   :  { %v1063_v2 = vpop.f32.mrf.mxu0  ;;  %v1083_v48 = vpop.f32.mrf.mxu1 }
 0x34a   :  { %v1126_v53 = vadd.f32 %v1063_v2, %v313_v51  ;;  %v1127_v40 = vadd.f32 %v1083_v48, %v314_v10  ;;  %v144_v10 = vadd.f32 %v3810_v4, %v103_v1 }
 0x34c   :  { %v1721_v7 = vmul.f32 -1.442695, %v1126_v53  ;;  %v1722_v0 = vmul.f32 -1.442695, %v1127_v40  ;;  %v3811_v53 = vld [vmem:[#allocation48_spill] sm:$0xff] }
 0x34d   :  { %v283_v40 = vmul.f32 %v3811_v53, %v3802_v47 }
 0x34e   :  { %1814 = vpow2.f32 %v1721_v7 }
 0x34f   :  { %1816 = vpow2.f32 %v1722_v0  ;;  %v315_v51 = vadd.f32 %v283_v40, %v144_v10 }
 0x350   :  { %v1123_v43 = vpop.f32.mrf.mxu3  ;;  %v1103_v0 = vpop.f32.mrf.mxu2 }
 0x351   :  { %v1129_v3 = vadd.f32 %v1123_v43, %v316_v34  ;;  %v1128_v7 = vadd.f32 %v1103_v0, %v315_v51 }
 0x353   :  { %v1723_v11 = vmul.f32 -1.442695, %v1129_v3 }
 0x354   :  { %v1815_v63 = vpop.eup %1814 }
 0x355   :  { %v1817_v9 = vpop.eup %1816  ;;  %v1133_v2 = vadd.f32 1.0, %v1815_v63  ;;  %1818 = vpow2.f32 %v1723_v11 }
 0x356   :  { %v1152_v48 = vadd.f32 1.0, %v1817_v9 }
 0x357   :  { %1820 = vrcp.f32 %v1133_v2  ;;  %v1145_v9 = vand.u32 2147483648, %v1133_v2  ;;  %v1143_v4 = vand.u32 2147483647, %v1133_v2  ;;  %vm1139_vm5 = vweird.f32 %v1133_v2 }
 0x358   :  { %1822 = vrcp.f32 %v1152_v48  ;;  %v1164_v32 = vand.u32 2147483648, %v1152_v48  ;;  %v1162_v53 = vand.u32 2147483647, %v1152_v48  ;;  %vm1158_vm6 = vweird.f32 %v1152_v48 }
 0x359   :  { %v1146_v40 = vor.u32 1.1754944e-38, %v1145_v9  ;;  %vm1144_vm9 = vcmp.eq.f32.partialorder %v1143_v4, 8.507059e+37 }
 0x35a   :  { %v1165_v51 = vor.u32 1.1754944e-38, %v1164_v32  ;;  %vm1163_vm10 = vcmp.eq.f32.partialorder %v1162_v53, 8.507059e+37 }
 0x35b   :  { %v1819_v50 = vpop.eup %1818 }
 0x35c   :  { %v1172_v43 = vadd.f32 1.0, %v1819_v50 }
 0x35d   :  { %v1821_v8 = vpop.eup %1820 }
 0x35e   :  { %v1823_v41 = vpop.eup %1822  ;;  %v1135_v34 = vmul.f32 %v1821_v8, %v1133_v2  ;;  %1824 = vrcp.f32 %v1172_v43  ;;  %vm1140_vm3 = vweird.f32 %v1821_v8  ;;  %v1184_v9 = vand.u32 2147483648, %v1172_v43 }
 0x35f   :  { %v1154_v3 = vmul.f32 %v1823_v41, %v1152_v48  ;;  %1826 = vtanh.f32 %v1128_v7  ;;  %vm1159_vm4 = vweird.f32 %v1823_v41  ;;  %vm1141_vm7 = vmor %vm1139_vm5, %vm1140_vm3  ;;  %vm1178_vm13 = vweird.f32 %v1172_v43 }
 0x360   :  { %v1136_v63 = vsub.f32 1.0, %v1135_v34  ;;  %vm1160_vm8 = vmor %vm1158_vm6, %vm1159_vm4  ;;  %v1182_v32 = vand.u32 2147483647, %v1172_v43 }
 0x361   :  { %v1155_v11 = vsub.f32 1.0, %v1154_v3 }
 0x362   :  { %v1137_v1 = vmul.f32 %v1821_v8, %v1136_v63  ;;  %vm1183_vm15 = vcmp.eq.f32.partialorder %v1182_v32, 8.507059e+37 }
 0x363   :  { %v1156_v47 = vmul.f32 %v1823_v41, %v1155_v11 }
 0x364   :  { %v1825_v58 = vpop.eup %1824  ;;  %v1138_v10 = vadd.f32 %v1821_v8, %v1137_v1 }
 0x365   :  { %v1157_v0 = vadd.f32 %v1823_v41, %v1156_v47  ;;  %v1174_v50 = vmul.f32 %v1825_v58, %v1172_v43  ;;  %v1827_v7 = vpop.eup %1826  ;;  %vm1179_vm11 = vweird.f32 %v1825_v58 }
 0x366   :  { %v1142_v34 = vsel %vm1141_vm7, %v1821_v8, %v1138_v10  ;;  %vm1180_vm14 = vmor %vm1178_vm13, %vm1179_vm11  ;;  %v1185_v8 = vor.u32 1.1754944e-38, %v1184_v9  ;;  %v3847_v10 = vld [vmem:[#allocation43_spill] sm:$0xff] }
 0x367   :  { %v1147_v3 = vsel %vm1144_vm9, %v1146_v40, %v1142_v34  ;;  %v1161_v63 = vsel %vm1160_vm8, %v1823_v41, %v1157_v0  ;;  %v1175_v12 = vsub.f32 1.0, %v1174_v50 }
 0x368   :  { %v1166_v11 = vsel %vm1163_vm10, %v1165_v51, %v1161_v63  ;;  %v1189_v6 = vmul.f32 %v1827_v7, %v1147_v3  ;;  %v3848_v63 = vld [vmem:[#allocation44_spill] sm:$0xff] }
 0x369   :  { %v1188_v5 = vmul.f32 %v1166_v11, %v3191_v52  ;;  %v1176_v1 = vmul.f32 %v1825_v58, %v1175_v12 }
 0x36b   :  { %v3289_v2 = vadd.f32 %v1189_v6, %v1188_v5  ;;  %v1177_v48 = vadd.f32 %v1825_v58, %v1176_v1  ;;  %v3845_v6 = vld [vmem:[#allocation41_spill] sm:$0xff] }
 0x36c   :  { %v3849_v1 = vld [vmem:[#allocation45_spill] sm:$0xff] }
 0x36d   :  { %1828 = vtanh.f32 %v3289_v2  ;;  %v1181_v4 = vsel %vm1180_vm14, %v1825_v58, %v1177_v48  ;;  %v3846_v58 = vld [vmem:[#allocation42_spill] sm:$0xff] }
 0x36e   :  { %v1186_v41 = vsel %vm1183_vm15, %v1185_v8, %v1181_v4 }
 0x373   :  { %v1829_v53 = vpop.eup %1828 }
 0x374   :  { %v1192_v47 = vmul.f32 %v1829_v53, %v1186_v41  ;;  %v3850_v41 = vld [vmem:[#allocation46_spill] sm:$0xff] }
 0x376   :  { %1216 = vmatmul.f32.vlgmr.msrb.gmra.mxu0 %v1192_v47  ;;  %1236 = vmatmul.f32.vlgmr.msrb.gmra.mxu1 %v1192_v47  ;;  %v1675_v52 = vmul.f32 %v3197_v62, %v1192_v47 }
 0x377   :  { %1256 = vmatmul.f32.vlgmr.msrb.gmra.mxu2 %v1192_v47  ;;  %1276 = vmatmul.f32.vlgmr.msrb.gmra.mxu3 %v1192_v47 }
 0x378   :  { %1687 = vadd.xlane.f32.xlu1 %v1675_v52  ;;  %1508 = vmatpush.msrb.mxu0 %v2688_v13  ;;  %v3812_v13 = vld [vmem:[#allocation10_spill] sm:$0xff] }
 0x379   :  { %1528 = vmatpush.msrb.mxu1 %v2694_v14  ;;  %1548 = vmatpush.msrb.mxu2 %v2700_v15  ;;  %v3813_v14 = vld [vmem:[#allocation11_spill] sm:$0xff]  ;;  %v3814_v15 = vld [vmem:[#allocation12_spill] sm:$0xff] }
 0x37a   :  { %1568 = vmatpush.msrb.mxu3 %v2706_v16  ;;  %1509 = vmatpush.msrb.mxu0 %v2712_v17  ;;  %v3815_v16 = vld [vmem:[#allocation13_spill] sm:$0xff]  ;;  %v3816_v17 = vld [vmem:[#allocation14_spill] sm:$0xff] }
 0x37b   :  { %1529 = vmatpush.msrb.mxu1 %v2718_v18  ;;  %1549 = vmatpush.msrb.mxu2 %v2724_v19  ;;  %v3817_v18 = vld [vmem:[#allocation15_spill] sm:$0xff]  ;;  %v3818_v19 = vld [vmem:[#allocation16_spill] sm:$0xff] }
 0x37c   :  { %1569 = vmatpush.msrb.mxu3 %v2730_v20  ;;  %1510 = vmatpush.msrb.mxu0 %v2736_v21  ;;  %v3819_v20 = vld [vmem:[#allocation17_spill] sm:$0xff]  ;;  %v3820_v21 = vld [vmem:[#allocation18_spill] sm:$0xff] }
 0x37d   :  { %1530 = vmatpush.msrb.mxu1 %v2742_v22  ;;  %1550 = vmatpush.msrb.mxu2 %v2748_v23  ;;  %v3821_v22 = vld [vmem:[#allocation19_spill] sm:$0xff]  ;;  %v3822_v23 = vld [vmem:[#allocation20_spill] sm:$0xff] }
 0x37e   :  { %1570 = vmatpush.msrb.mxu3 %v2754_v24  ;;  %1511 = vmatpush.msrb.mxu0 %v2760_v25  ;;  %v3823_v24 = vld [vmem:[#allocation21_spill] sm:$0xff]  ;;  %v3824_v25 = vld [vmem:[#allocation22_spill] sm:$0xff] }
 0x37f   :  { %1531 = vmatpush.msrb.mxu1 %v2766_v26  ;;  %1551 = vmatpush.msrb.mxu2 %v2772_v27  ;;  %v3825_v26 = vld [vmem:[#allocation23_spill] sm:$0xff]  ;;  %v3826_v27 = vld [vmem:[#allocation24_spill] sm:$0xff] }
 0x380   :  { %1571 = vmatpush.msrb.mxu3 %v2778_v28  ;;  %1512 = vmatpush.msrb.mxu0 %v2784_v29  ;;  %v3827_v28 = vld [vmem:[#allocation25_spill] sm:$0xff]  ;;  %v3828_v29 = vld [vmem:[#allocation26_spill] sm:$0xff] }
 0x381   :  { %1532 = vmatpush.msrb.mxu1 %v2790_v30  ;;  %1552 = vmatpush.msrb.mxu2 %v2796_v31  ;;  %v3829_v30 = vld [vmem:[#allocation27_spill] sm:$0xff]  ;;  %v3830_v31 = vld [vmem:[#allocation28_spill] sm:$0xff] }
 0x382   :  { %1572 = vmatpush.msrb.mxu3 %v2802_v33  ;;  %1513 = vmatpush.msrb.mxu0 %v2808_v35  ;;  %v3831_v33 = vld [vmem:[#allocation29_spill] sm:$0xff]  ;;  %v3832_v35 = vld [vmem:[#allocation30_spill] sm:$0xff] }
 0x383   :  { %1533 = vmatpush.msrb.mxu1 %v2814_v59  ;;  %1553 = vmatpush.msrb.mxu2 %v2820_v36  ;;  %v3833_v59 = vld [vmem:[#allocation31_spill] sm:$0xff]  ;;  %v3834_v36 = vld [vmem:[#allocation32_spill] sm:$0xff] }
 0x384   :  { %1573 = vmatpush.msrb.mxu3 %v2826_v38  ;;  %1514 = vmatpush.msrb.mxu0 %v2832_v42  ;;  %v3835_v38 = vld [vmem:[#allocation33_spill] sm:$0xff]  ;;  %v3836_v42 = vld [vmem:[#allocation34_spill] sm:$0xff] }
 0x385   :  { %1534 = vmatpush.msrb.mxu1 %v2838_v44  ;;  %1554 = vmatpush.msrb.mxu2 %v2844_v60  ;;  %v3837_v44 = vld [vmem:[#allocation36_spill] sm:$0xff]  ;;  %v3838_v60 = vld [vmem:[#allocation49_spill] sm:$0xff] }
 0x386   :  { %1574 = vmatpush.msrb.mxu3 %v2850_v56  ;;  %1515 = vmatpush.msrb.mxu0 %v2856_v55  ;;  %v3839_v56 = vld [vmem:[#allocation51_spill] sm:$0xff]  ;;  %v3840_v55 = vld [vmem:[#allocation37_spill] sm:$0xff] }
 0x387   :  { %1535 = vmatpush.msrb.mxu1 %v2862_v54  ;;  %1555 = vmatpush.msrb.mxu2 %v2868_v39  ;;  %v105_v54 = vmul.f32 %v3840_v55, %v3839_v56  ;;  %v3841_v39 = vld [vmem:[#allocation38_spill] sm:$0xff]  ;;  %v108_v40 = vmul.f32 %v3847_v10, %v3839_v56  ;;  %v107_v47 = vmul.f32 %v3850_v41, %v3839_v56 }
 0x388   :  { %1575 = vmatpush.msrb.mxu3 %v2874_v37  ;;  %1516 = vmatpush.msrb.mxu0 %v2880_v57  ;;  %v106_v37 = vmul.f32 %v3841_v39, %v3839_v56 }
 0x389   :  { %1536 = vmatpush.msrb.mxu1 %v2886_v49  ;;  %1556 = vmatpush.msrb.mxu2 %v2892_v45  ;;  %v3842_v49 = vld [vmem:[#allocation39_spill] sm:$0xff]  ;;  %v149_v11 = vadd.f32 %v3848_v63, %v108_v40 }
 0x38a   :  { %1576 = vmatpush.msrb.mxu3 %v2898_v46  ;;  %1517 = vmatpush.msrb.mxu0 %v3729_v61  ;;  %v146_v45 = vadd.f32 %v3842_v49, %v105_v54  ;;  %v3843_v46 = vld [vmem:[#allocation7_spill] sm:$0xff]  ;;  %v3844_v61 = vld [vmem:[#allocation40_spill] sm:$0xff]  ;;  %v147_v12 = vadd.f32 %v3845_v6, %v106_v37 }
 0x38b   :  { %1537 = vmatpush.msrb.mxu1 %v3812_v13  ;;  %1557 = vmatpush.msrb.mxu2 %v3813_v14  ;;  %v285_v5 = vmul.f32 %v3844_v61, %v3843_v46  ;;  %v286_v43 = vmul.f32 %v3846_v58, %v3843_v46  ;;  %v288_v48 = vmul.f32 %v3849_v1, %v3843_v46 }
 0x38c   :  { %1577 = vmatpush.msrb.mxu3 %v3814_v15  ;;  %1518 = vmatpush.msrb.mxu0 %v3815_v16 }
 0x38d   :  { %1538 = vmatpush.msrb.mxu1 %v3816_v17  ;;  %1558 = vmatpush.msrb.mxu2 %v3817_v18  ;;  %v317_v0 = vadd.f32 %v285_v5, %v146_v45  ;;  %v318_v50 = vadd.f32 %v286_v43, %v147_v12  ;;  %v320_v4 = vadd.f32 %v288_v48, %v149_v11  ;;  %v3851_v17 = vld [vmem:[#allocation47_spill] sm:$0xff] }
 0x38e   :  { %1578 = vmatpush.msrb.mxu3 %v3818_v19  ;;  %1519 = vmatpush.msrb.mxu0 %v3819_v20  ;;  %v148_v18 = vadd.f32 %v3851_v17, %v107_v47  ;;  %v3852_v19 = vld [vmem:[#allocation48_spill] sm:$0xff] }
 0x38f   :  { %1539 = vmatpush.msrb.mxu1 %v3820_v21  ;;  %1559 = vmatpush.msrb.mxu2 %v3821_v22  ;;  %v287_v20 = vmul.f32 %v3852_v19, %v3843_v46 }
 0x390   :  { %1579 = vmatpush.msrb.mxu3 %v3822_v23  ;;  %1520 = vmatpush.msrb.mxu0 %v3823_v24 }
 0x391   :  { %1540 = vmatpush.msrb.mxu1 %v3824_v25  ;;  %1560 = vmatpush.msrb.mxu2 %v3825_v26  ;;  %v319_v23 = vadd.f32 %v287_v20, %v148_v18 }
 0x392   :  { %1580 = vmatpush.msrb.mxu3 %v3826_v27  ;;  %1521 = vmatpush.msrb.mxu0 %v3827_v28 }
 0x393   :  { %1541 = vmatpush.msrb.mxu1 %v3828_v29  ;;  %1561 = vmatpush.msrb.mxu2 %v3829_v30 }
 0x394   :  { %1581 = vmatpush.msrb.mxu3 %v3830_v31  ;;  %1522 = vmatpush.msrb.mxu0 %v3831_v33 }
 0x395   :  { %1542 = vmatpush.msrb.mxu1 %v3832_v35  ;;  %1562 = vmatpush.msrb.mxu2 %v3833_v59 }
 0x396   :  { %1582 = vmatpush.msrb.mxu3 %v3834_v36  ;;  %1523 = vmatpush.msrb.mxu0 %v3835_v38 }
 0x397   :  { %1543 = vmatpush.msrb.mxu1 %v3836_v42  ;;  %1563 = vmatpush.msrb.mxu2 %v3837_v44 }
 0x398   :  { %1583 = vmatpush.msrb.mxu3 %v3838_v60 }
 0x3eb   :  { %v1688_v57 = vpop.xlane.xlu1 %1687 }
 0x3ec   :  { %1700 = vst.msk [vmem:[%s3452_s5 + $0x20] sm:$0xff] %vm1695_vm12, %v1688_v57 }
 0x3f3   :  { %v1217_v51 = vpop.f32.mrf.mxu0  ;;  %v1237_v34 = vpop.f32.mrf.mxu1 }
 0x3f4   :  { %v1280_v7 = vadd.f32 %v1217_v51, %v317_v0  ;;  %v1281_v3 = vadd.f32 %v1237_v34, %v318_v50 }
 0x3f6   :  { %v1724_v9 = vmul.f32 -1.442695, %v1280_v7  ;;  %v1725_v32 = vmul.f32 -1.442695, %v1281_v3 }
 0x3f8   :  { %1830 = vpow2.f32 %v1724_v9 }
 0x3f9   :  { %1832 = vpow2.f32 %v1725_v32 }
 0x3fa   :  { %v1277_v8 = vpop.f32.mrf.mxu3  ;;  %v1257_v21 = vpop.f32.mrf.mxu2 }
 0x3fb   :  { %v1283_v53 = vadd.f32 %v1277_v8, %v320_v4  ;;  %v1282_v26 = vadd.f32 %v1257_v21, %v319_v23 }
 0x3fd   :  { %v1726_v52 = vmul.f32 -1.442695, %v1283_v53  ;;  %v3853_v53 = vld [vmem:[#allocation52_spill] sm:$0xff] }
 0x3fe   :  { %v1831_v13 = vpop.eup %1830  ;;  %v109_v47 = vmul.f32 %v3840_v55, %v3853_v53  ;;  %v112_v21 = vmul.f32 %v3847_v10, %v3853_v53 }
 0x3ff   :  { %v1833_v14 = vpop.eup %1832  ;;  %v1287_v15 = vadd.f32 1.0, %v1831_v13  ;;  %1834 = vpow2.f32 %v1726_v52  ;;  %v110_v52 = vmul.f32 %v3841_v39, %v3853_v53 }
 0x400   :  { %v1306_v16 = vadd.f32 1.0, %v1833_v14  ;;  %v150_v14 = vadd.f32 %v3842_v49, %v109_v47 }
 0x401   :  { %1836 = vrcp.f32 %v1287_v15  ;;  %v1299_v33 = vand.u32 2147483648, %v1287_v15  ;;  %v1297_v36 = vand.u32 2147483647, %v1287_v15  ;;  %vm1293_vm2 = vweird.f32 %v1287_v15 }
 0x402   :  { %1838 = vrcp.f32 %v1306_v16  ;;  %v1318_v35 = vand.u32 2147483648, %v1306_v16  ;;  %v1316_v42 = vand.u32 2147483647, %v1306_v16  ;;  %vm1312_vm3 = vweird.f32 %v1306_v16 }
 0x403   :  { %v1300_v56 = vor.u32 1.1754944e-38, %v1299_v33  ;;  %vm1298_vm6 = vcmp.eq.f32.partialorder %v1297_v36, 8.507059e+37  ;;  %v151_v18 = vadd.f32 %v3845_v6, %v110_v52  ;;  %v111_v36 = vmul.f32 %v3850_v41, %v3853_v53 }
 0x404   :  { %v1319_v57 = vor.u32 1.1754944e-38, %v1318_v35  ;;  %vm1317_vm7 = vcmp.eq.f32.partialorder %v1316_v42, 8.507059e+37 }
 0x405   :  { %v1835_v22 = vpop.eup %1834 }
 0x406   :  { %v1326_v24 = vadd.f32 1.0, %v1835_v22 }
 0x407   :  { %v1837_v25 = vpop.eup %1836 }
 0x408   :  { %v1839_v27 = vpop.eup %1838  ;;  %v1289_v28 = vmul.f32 %v1837_v25, %v1287_v15  ;;  %1840 = vrcp.f32 %v1326_v24  ;;  %vm1294_vm0 = vweird.f32 %v1837_v25  ;;  %v1338_v3 = vand.u32 2147483648, %v1326_v24  ;;  %v3854_v15 = vld [vmem:[#allocation54_spill] sm:$0xff] }
 0x409   :  { %v1308_v29 = vmul.f32 %v1839_v27, %v1306_v16  ;;  %1842 = vtanh.f32 %v1282_v26  ;;  %vm1313_vm1 = vweird.f32 %v1839_v27  ;;  %vm1295_vm4 = vmor %vm1293_vm2, %vm1294_vm0  ;;  %vm1332_vm9 = vweird.f32 %v1326_v24 }
 0x40a   :  { %v1290_v30 = vsub.f32 1.0, %v1289_v28  ;;  %vm1314_vm5 = vmor %vm1312_vm3, %vm1313_vm1  ;;  %v1336_v11 = vand.u32 2147483647, %v1326_v24  ;;  %v1339_v9 = vor.u32 1.1754944e-38, %v1338_v3  ;;  %v289_v16 = vmul.f32 %v3844_v61, %v3854_v15 }
 0x40b   :  { %v1309_v31 = vsub.f32 1.0, %v1308_v29  ;;  %v290_v20 = vmul.f32 %v3846_v58, %v3854_v15  ;;  %v153_v28 = vadd.f32 %v3848_v63, %v112_v21  ;;  %v292_v29 = vmul.f32 %v3849_v1, %v3854_v15 }
 0x40c   :  { %v1291_v59 = vmul.f32 %v1837_v25, %v1290_v30  ;;  %vm1337_vm11 = vcmp.eq.f32.partialorder %v1336_v11, 8.507059e+37  ;;  %v321_v22 = vadd.f32 %v289_v16, %v150_v14 }
 0x40d   :  { %v1310_v38 = vmul.f32 %v1839_v27, %v1309_v31  ;;  %v322_v23 = vadd.f32 %v290_v20, %v151_v18  ;;  %v324_v33 = vadd.f32 %v292_v29, %v153_v28 }
 0x40e   :  { %v1841_v44 = vpop.eup %1840  ;;  %v1292_v60 = vadd.f32 %v1837_v25, %v1291_v59 }
 0x40f   :  { %v1311_v54 = vadd.f32 %v1839_v27, %v1310_v38  ;;  %v1328_v37 = vmul.f32 %v1841_v44, %v1326_v24  ;;  %v1843_v46 = vpop.eup %1842  ;;  %vm1333_vm8 = vweird.f32 %v1841_v44 }
 0x410   :  { %v1296_v45 = vsel %vm1295_vm4, %v1837_v25, %v1292_v60  ;;  %vm1334_vm10 = vmor %vm1332_vm9, %vm1333_vm8 }
 0x411   :  { %v1301_v5 = vsel %vm1298_vm6, %v1300_v56, %v1296_v45  ;;  %v1315_v12 = vsel %vm1314_vm5, %v1839_v27, %v1311_v54  ;;  %v1329_v43 = vsub.f32 1.0, %v1328_v37  ;;  %v152_v54 = vadd.f32 %v3851_v17, %v111_v36 }
 0x412   :  { %v1320_v40 = vsel %vm1317_vm7, %v1319_v57, %v1315_v12  ;;  %v1343_v0 = vmul.f32 %v1843_v46, %v1301_v5  ;;  %v291_v37 = vmul.f32 %v3852_v19, %v3854_v15 }
 0x413   :  { %v1342_v50 = vmul.f32 %v1320_v40, %v3289_v2  ;;  %v1330_v51 = vmul.f32 %v1841_v44, %v1329_v43 }
 0x414   :  { %v323_v46 = vadd.f32 %v291_v37, %v152_v54 }
 0x415   :  { %v3382_v34 = vadd.f32 %v1343_v0, %v1342_v50  ;;  %v1331_v7 = vadd.f32 %v1841_v44, %v1330_v51 }
 0x417   :  { %1844 = vtanh.f32 %v3382_v34  ;;  %v1335_v48 = vsel %vm1334_vm10, %v1841_v44, %v1331_v7 }
 0x418   :  { %v1340_v4 = vsel %vm1337_vm11, %v1339_v9, %v1335_v48 }
 0x41d   :  { %v1845_v32 = vpop.eup %1844 }
 0x41e   :  { %v1346_v8 = vmul.f32 %v1845_v32, %v1340_v4 }
 0x420   :  { %1370 = vmatmul.f32.vlgmr.msra.gmra.mxu0 %v1346_v8  ;;  %1390 = vmatmul.f32.vlgmr.msra.gmra.mxu1 %v1346_v8  ;;  %v1676_v2 = vmul.f32 %v3197_v62, %v1346_v8 }
 0x421   :  { %1410 = vmatmul.f32.vlgmr.msra.gmra.mxu2 %v1346_v8  ;;  %1430 = vmatmul.f32.vlgmr.msra.gmra.mxu3 %v1346_v8 }
 0x422   :  { %1689 = vadd.xlane.f32.xlu2 %v1676_v2 }
 0x495   :  { %v1690_v13 = vpop.xlane.xlu2 %1689 }
 0x496   :  { %1701 = vst.msk [vmem:[%s3452_s5 + $0x28] sm:$0xff] %vm1695_vm12, %v1690_v13 }
 0x49d   :  { %v1371_v24 = vpop.f32.mrf.mxu0  ;;  %v1391_v25 = vpop.f32.mrf.mxu1 }
 0x49e   :  { %v1434_v26 = vadd.f32 %v1371_v24, %v321_v22  ;;  %v1435_v27 = vadd.f32 %v1391_v25, %v322_v23 }
 0x4a0   :  { %v1727_v30 = vmul.f32 -1.442695, %v1434_v26  ;;  %v1728_v31 = vmul.f32 -1.442695, %v1435_v27 }
 0x4a2   :  { %1846 = vpow2.f32 %v1727_v30 }
 0x4a3   :  { %1848 = vpow2.f32 %v1728_v31 }
 0x4a4   :  { %v1431_v35 = vpop.f32.mrf.mxu3  ;;  %v1411_v57 = vpop.f32.mrf.mxu2 }
 0x4a5   :  { %v1437_v59 = vadd.f32 %v1431_v35, %v324_v33  ;;  %v1436_v43 = vadd.f32 %v1411_v57, %v323_v46 }
 0x4a7   :  { %v1729_v38 = vmul.f32 -1.442695, %v1437_v59  ;;  %v3855_v59 = vld [vmem:[#allocation8_spill] sm:$0xff] }
 0x4a8   :  { %v1847_v42 = vpop.eup %1846  ;;  %v113_v36 = vmul.f32 %v3840_v55, %v3855_v59 }
 0x4a9   :  { %v1849_v44 = vpop.eup %1848  ;;  %v1441_v60 = vadd.f32 1.0, %v1847_v42  ;;  %1850 = vpow2.f32 %v1729_v38  ;;  %v114_v38 = vmul.f32 %v3841_v39, %v3855_v59  ;;  %v116_v39 = vmul.f32 %v3847_v10, %v3855_v59 }
 0x4aa   :  { %v1460_v56 = vadd.f32 1.0, %v1849_v44  ;;  %v154_v44 = vadd.f32 %v3842_v49, %v113_v36 }
 0x4ab   :  { %1852 = vrcp.f32 %v1441_v60  ;;  %v1453_v3 = vand.u32 2147483648, %v1441_v60  ;;  %v1451_v9 = vand.u32 2147483647, %v1441_v60  ;;  %vm1447_vm15 = vweird.f32 %v1441_v60 }
 0x4ac   :  { %1854 = vrcp.f32 %v1460_v56  ;;  %v1472_v11 = vand.u32 2147483648, %v1460_v56  ;;  %v1470_v4 = vand.u32 2147483647, %v1460_v56  ;;  %vm1466_vm0 = vweird.f32 %v1460_v56 }
 0x4ad   :  { %v1454_v53 = vor.u32 1.1754944e-38, %v1453_v3  ;;  %vm1452_vm3 = vcmp.eq.f32.partialorder %v1451_v9, 8.507059e+37 }
 0x4ae   :  { %v1473_v13 = vor.u32 1.1754944e-38, %v1472_v11  ;;  %vm1471_vm4 = vcmp.eq.f32.partialorder %v1470_v4, 8.507059e+37 }
 0x4af   :  { %v1851_v45 = vpop.eup %1850 }
 0x4b0   :  { %v1480_v5 = vadd.f32 1.0, %v1851_v45 }
 0x4b1   :  { %v1853_v12 = vpop.eup %1852 }
 0x4b2   :  { %v1855_v40 = vpop.eup %1854  ;;  %v1443_v0 = vmul.f32 %v1853_v12, %v1441_v60  ;;  %1856 = vrcp.f32 %v1480_v5  ;;  %vm1448_vm13 = vweird.f32 %v1853_v12  ;;  %v1492_v27 = vand.u32 2147483648, %v1480_v5  ;;  %v3856_v60 = vld [vmem:[#allocation53_spill] sm:$0xff] }
 0x4b3   :  { %v1462_v50 = vmul.f32 %v1855_v40, %v1460_v56  ;;  %1858 = vtanh.f32 %v1436_v43  ;;  %vm1467_vm14 = vweird.f32 %v1855_v40  ;;  %vm1449_vm1 = vmor %vm1447_vm15, %vm1448_vm13  ;;  %vm1486_vm6 = vweird.f32 %v1480_v5 }
 0x4b4   :  { %v1444_v51 = vsub.f32 1.0, %v1443_v0  ;;  %vm1468_vm2 = vmor %vm1466_vm0, %vm1467_vm14  ;;  %v1490_v28 = vand.u32 2147483647, %v1480_v5  ;;  %v1493_v30 = vor.u32 1.1754944e-38, %v1492_v27  ;;  %v155_v56 = vadd.f32 %v3845_v6, %v114_v38 }
 0x4b5   :  { %v1463_v7 = vsub.f32 1.0, %v1462_v50  ;;  %v294_v54 = vmul.f32 %v3846_v58, %v3856_v60  ;;  %v296_v49 = vmul.f32 %v3849_v1, %v3856_v60  ;;  %v115_v0 = vmul.f32 %v3850_v41, %v3855_v59 }
 0x4b6   :  { %v1445_v48 = vmul.f32 %v1853_v12, %v1444_v51  ;;  %vm1491_vm8 = vcmp.eq.f32.partialorder %v1490_v28, 8.507059e+37  ;;  %v295_v1 = vmul.f32 %v3852_v19, %v3856_v60 }
 0x4b7   :  { %v1464_v32 = vmul.f32 %v1855_v40, %v1463_v7  ;;  %v326_v37 = vadd.f32 %v294_v54, %v155_v56 }
 0x4b8   :  { %v1857_v8 = vpop.eup %1856  ;;  %v1446_v2 = vadd.f32 %v1853_v12, %v1445_v48 }
 0x4b9   :  { %v1465_v47 = vadd.f32 %v1855_v40, %v1464_v32  ;;  %v1482_v52 = vmul.f32 %v1857_v8, %v1480_v5  ;;  %v1859_v15 = vpop.eup %1858  ;;  %vm1487_vm5 = vweird.f32 %v1857_v8 }
 0x4ba   :  { %v1450_v14 = vsel %vm1449_vm1, %v1853_v12, %v1446_v2  ;;  %vm1488_vm7 = vmor %vm1486_vm6, %vm1487_vm5  ;;  %v157_v12 = vadd.f32 %v3848_v63, %v116_v39  ;;  %v156_v63 = vadd.f32 %v3851_v17, %v115_v0 }
 0x4bb   :  { %v1455_v16 = vsel %vm1452_vm3, %v1454_v53, %v1450_v14  ;;  %v1469_v18 = vsel %vm1468_vm2, %v1855_v40, %v1465_v47  ;;  %v1483_v20 = vsub.f32 1.0, %v1482_v52 }
 0x4bc   :  { %v1474_v21 = vsel %vm1471_vm4, %v1473_v13, %v1469_v18  ;;  %v1497_v22 = vmul.f32 %v1859_v15, %v1455_v16  ;;  %v328_v6 = vadd.f32 %v296_v49, %v157_v12  ;;  %v327_v9 = vadd.f32 %v295_v1, %v156_v63 }
 0x4bd   :  { %v1496_v23 = vmul.f32 %v1474_v21, %v3382_v34  ;;  %v1484_v24 = vmul.f32 %v1857_v8, %v1483_v20 }
 0x4bf   :  { %v3411_v25 = vadd.f32 %v1497_v22, %v1496_v23  ;;  %v1485_v26 = vadd.f32 %v1857_v8, %v1484_v24 }
 0x4c1   :  { %1860 = vtanh.f32 %v3411_v25  ;;  %v1489_v29 = vsel %vm1488_vm7, %v1857_v8, %v1485_v26 }
 0x4c2   :  { %v1494_v33 = vsel %vm1491_vm8, %v1493_v30, %v1489_v29 }
 0x4c7   :  { %v1861_v31 = vpop.eup %1860 }
 0x4c8   :  { %v1500_v35 = vmul.f32 %v1861_v31, %v1494_v33 }
 0x4ca   :  { %1524 = vmatmul.f32.vlgmr.msrb.gmra.mxu0 %v1500_v35  ;;  %1544 = vmatmul.f32.vlgmr.msrb.gmra.mxu1 %v1500_v35  ;;  %v1677_v34 = vmul.f32 %v3197_v62, %v1500_v35  ;;  %v293_v62 = vmul.f32 %v3844_v61, %v3856_v60 }
 0x4cb   :  { %1564 = vmatmul.f32.vlgmr.msrb.gmra.mxu2 %v1500_v35  ;;  %1584 = vmatmul.f32.vlgmr.msrb.gmra.mxu3 %v1500_v35 }
 0x4cc   :  { %1691 = vadd.xlane.f32.xlu0 %v1677_v34  ;;  %v325_v55 = vadd.f32 %v293_v62, %v154_v44 }
 0x53f   :  { %v1692_v42 = vpop.xlane.xlu0 %1691 }
 0x540   :  { %1702 = vst.msk [vmem:[%s3452_s5 + $0x30] sm:$0xff] %vm1695_vm12, %v1692_v42 }
 0x547   :  { %v1525_v57 = vpop.f32.mrf.mxu0  ;;  %v1545_v45 = vpop.f32.mrf.mxu1 }
 0x548   :  { %v1588_v46 = vadd.f32 %v1525_v57, %v325_v55  ;;  %v1589_v5 = vadd.f32 %v1545_v45, %v326_v37  ;;  %v1943_v55 = vld [vmem:[%s3449_s4] ss:$0 sm:$0xff] }
 0x54a   :  { %v1730_v61 = vmul.f32 -1.442695, %v1588_v46  ;;  %v1731_v43 = vmul.f32 -1.442695, %v1589_v5 }
 0x54c   :  { %1862 = vpow2.f32 %v1730_v61 }
 0x54d   :  { %1864 = vpow2.f32 %v1731_v43 }
 0x54e   :  { %v1585_v58 = vpop.f32.mrf.mxu3  ;;  %v1565_v11 = vpop.f32.mrf.mxu2 }
 0x54f   :  { %v1591_v40 = vadd.f32 %v1585_v58, %v328_v6  ;;  %v1590_v8 = vadd.f32 %v1565_v11, %v327_v9 }
 0x551   :  { %v1732_v10 = vmul.f32 -1.442695, %v1591_v40 }
 0x552   :  { %v1863_v50 = vpop.eup %1862 }
 0x553   :  { %v1865_v51 = vpop.eup %1864  ;;  %v1595_v7 = vadd.f32 1.0, %v1863_v50  ;;  %1866 = vpow2.f32 %v1732_v10 }
 0x554   :  { %v1614_v3 = vadd.f32 1.0, %v1865_v51 }
 0x555   :  { %1868 = vrcp.f32 %v1595_v7  ;;  %v1607_v13 = vand.u32 2147483648, %v1595_v7  ;;  %v1605_v15 = vand.u32 2147483647, %v1595_v7  ;;  %vm1601_vm11 = vweird.f32 %v1595_v7 }
 0x556   :  { %1870 = vrcp.f32 %v1614_v3  ;;  %v1626_v14 = vand.u32 2147483648, %v1614_v3  ;;  %v1624_v16 = vand.u32 2147483647, %v1614_v3  ;;  %vm1620_vm13 = vweird.f32 %v1614_v3 }
 0x557   :  { %v1608_v21 = vor.u32 1.1754944e-38, %v1607_v13  ;;  %vm1606_vm0 = vcmp.eq.f32.partialorder %v1605_v15, 8.507059e+37 }
 0x558   :  { %v1627_v24 = vor.u32 1.1754944e-38, %v1626_v14  ;;  %vm1625_vm1 = vcmp.eq.f32.partialorder %v1624_v16, 8.507059e+37 }
 0x559   :  { %v1867_v48 = vpop.eup %1866 }
 0x55a   :  { %v1634_v32 = vadd.f32 1.0, %v1867_v48 }
 0x55b   :  { %v1869_v4 = vpop.eup %1868 }
 0x55c   :  { %v1871_v41 = vpop.eup %1870  ;;  %v1597_v2 = vmul.f32 %v1869_v4, %v1595_v7  ;;  %1872 = vrcp.f32 %v1634_v32  ;;  %vm1602_vm9 = vweird.f32 %v1869_v4  ;;  %v1646_v38 = vand.u32 2147483648, %v1634_v32 }
 0x55d   :  { %v1616_v53 = vmul.f32 %v1871_v41, %v1614_v3  ;;  %1874 = vtanh.f32 %v1590_v8  ;;  %vm1621_vm10 = vweird.f32 %v1871_v41  ;;  %vm1603_vm14 = vmor %vm1601_vm11, %vm1602_vm9  ;;  %vm1640_vm3 = vweird.f32 %v1634_v32 }
 0x55e   :  { %v1598_v47 = vsub.f32 1.0, %v1597_v2  ;;  %vm1622_vm15 = vmor %vm1620_vm13, %vm1621_vm10  ;;  %v1644_v42 = vand.u32 2147483647, %v1634_v32  ;;  %v1647_v60 = vor.u32 1.1754944e-38, %v1646_v38 }
 0x55f   :  { %v1617_v52 = vsub.f32 1.0, %v1616_v53 }
 0x560   :  { %v1599_v17 = vmul.f32 %v1869_v4, %v1598_v47  ;;  %vm1645_vm5 = vcmp.eq.f32.partialorder %v1644_v42, 8.507059e+37 }
 0x561   :  { %v1618_v19 = vmul.f32 %v1871_v41, %v1617_v52 }
 0x562   :  { %v1873_v18 = vpop.eup %1872  ;;  %v1600_v20 = vadd.f32 %v1869_v4, %v1599_v17 }
 0x563   :  { %v1619_v22 = vadd.f32 %v1871_v41, %v1618_v19  ;;  %v1636_v23 = vmul.f32 %v1873_v18, %v1634_v32  ;;  %v1875_v27 = vpop.eup %1874  ;;  %vm1641_vm2 = vweird.f32 %v1873_v18 }
 0x564   :  { %v1604_v26 = vsel %vm1603_vm14, %v1869_v4, %v1600_v20  ;;  %vm1642_vm4 = vmor %vm1640_vm3, %vm1641_vm2 }
 0x565   :  { %v1609_v28 = vsel %vm1606_vm0, %v1608_v21, %v1604_v26  ;;  %v1623_v29 = vsel %vm1622_vm15, %v1871_v41, %v1619_v22  ;;  %v1637_v30 = vsub.f32 1.0, %v1636_v23 }
 0x566   :  { %v1628_v31 = vsel %vm1625_vm1, %v1627_v24, %v1623_v29  ;;  %v1651_v33 = vmul.f32 %v1875_v27, %v1609_v28 }
 0x567   :  { %v1650_v35 = vmul.f32 %v1628_v31, %v3411_v25  ;;  %v1638_v34 = vmul.f32 %v1873_v18, %v1637_v30 }
 0x569   :  { %v1652_v59 = vadd.f32 %v1651_v33, %v1650_v35  ;;  %v1639_v36 = vadd.f32 %v1873_v18, %v1638_v34 }
 0x56b   :  { %1876 = vtanh.f32 %v1652_v59  ;;  %v1643_v44 = vsel %vm1642_vm4, %v1873_v18, %v1639_v36 }
 0x56c   :  { %v1648_v56 = vsel %vm1645_vm5, %v1647_v60, %v1643_v44 }
 0x571   :  { %v1877_v62 = vpop.eup %1876 }
 0x572   :  { %v1654_v54 = vmul.f32 %v1877_v62, %v1648_v56 }
 0x574   :  { %v1678_v25 = vmul.f32 %v1943_v55, %v1654_v54 }
 0x576   :  { %1693 = vadd.xlane.f32.xlu1 %v1678_v25 }
 0x5e9   :  { %v1694_v37 = vpop.xlane.xlu1 %1693 }
 0x5ea   :  { %1703 = vst.msk [vmem:[%s3452_s5 + $0x38] sm:$0xff] %vm1695_vm12, %v1694_v37 }

</bundles_post_ra>
